<compile_context>
chip_gen: v5e
topology: v5e:2x2
jax: 0.10.0
libtpu: 0.0.40
codegen_flags: <defaults>
</compile_context>

<pallas_src>
import collections
import functools

import numpy as np
import jax
import jax.numpy as jnp
from jax.experimental import pallas as pl
from jax.experimental.pallas import tpu as pltpu

BackboneOutput = collections.namedtuple("BackboneOutput", ["encodings"])

# (cout, cin, kernel, stride) for the three convs of the canonical backbone.
_CONV_CFGS = ((32, 1, 4, 2), (64, 32, 4, 2), (64, 64, 3, 1))


def _out_size(n, k, s):
    return (n - k) // s + 1


def _round_up(n, m):
    return ((n + m - 1) // m) * m


def _geom(h, w):
    """Static geometry shared by init and forward."""
    (c1, _, k1, s1), (c2, _, k2, s2), (c3, _, k3, s3) = _CONV_CFGS
    g = {}
    g["oh1"], g["ow1"] = _out_size(h, k1, s1), _out_size(w, k1, s1)
    g["oh2"], g["ow2"] = _out_size(g["oh1"], k2, s2), _out_size(g["ow1"], k2, s2)
    g["oh3"], g["ow3"] = _out_size(g["oh2"], k3, s3), _out_size(g["ow2"], k3, s3)
    g["w1cols"] = _round_up(g["ow1"] * c1, 128)      # conv1 activation row width (lane-padded)
    g["w2cols"] = g["ow2"] * c2                      # 384 (already lane-aligned)
    g["w3cols"] = g["ow3"] * c3                      # 256
    g["x1rows"] = _round_up(g["oh1"], 8)             # per-image padded row count of X1 / a1

    # conv1 output rows are produced in "evens then odds" order so that conv2's
    # stride-2 row selection becomes contiguous slabs.
    n_even = (g["oh1"] + 1) // 2
    g["perm"] = tuple(range(0, g["oh1"], 2)) + tuple(range(1, g["oh1"], 2))
    g["l2_starts"] = tuple((ki // 2) + (ki % 2) * n_even for ki in range(k2))
    for ki in range(k2):  # slabs must stay inside the even / odd blocks
        if ki % 2 == 0:
            assert ki // 2 + g["oh2"] <= n_even
        else:
            assert n_even + ki // 2 + g["oh2"] <= g["oh1"]
    return g


# ------------------------------ Pallas kernel ------------------------------ #

def _canonical_fused_kernel(x1_ref, m1_ref, b1_ref, m2_ref, b2_ref, m3_ref, b3_ref,
                            o_ref, *, tb, x1rows, w1cols, oh2, l2_starts,
                            w2cols, oh3, kh3, ow3, c3):
    f32, bf16 = jnp.float32, jnp.bfloat16

    # ---- conv1 + ReLU: single stacked-K contraction (row-im2col built in the wrapper) ----
    a1 = jnp.dot(x1_ref[...], m1_ref[...], preferred_element_type=f32)   # (tb*x1rows, w1cols)
    a1 = jnp.maximum(a1 + b1_ref[...], 0.0).astype(bf16)
    a1 = a1.reshape(tb, x1rows, w1cols)

    # ---- conv2 + ReLU: contiguous even/odd row slabs stacked along K (one matmul) ----
    l2 = jnp.concatenate([a1[:, s:s + oh2, :] for s in l2_starts], axis=-1)
    l2 = l2.reshape(tb * oh2, len(l2_starts) * w1cols)
    a2 = jnp.dot(l2, m2_ref[...], preferred_element_type=f32)            # (tb*oh2, w2cols)
    a2 = jnp.maximum(a2 + b2_ref[...], 0.0).astype(bf16)
    a2 = a2.reshape(tb, oh2, w2cols)

    # ---- conv3 + ReLU: stride-1 contiguous slabs stacked along K (one matmul) ----
    l3 = jnp.concatenate([a2[:, s:s + oh3, :] for s in range(kh3)], axis=-1)
    l3 = l3.reshape(tb * oh3, kh3 * w2cols)
    a3 = jnp.dot(l3, m3_ref[...], preferred_element_type=f32)            # (tb*oh3, ow3*c3)
    a3 = jnp.maximum(a3 + b3_ref[...], 0.0)

    # ---- AdaptiveAvgPool2d((1,1)) + flatten: lane-block sums (VPU) + sublane mean ----
    col = a3[:, 0:c3]
    for wb in range(1, ow3):
        col = col + a3[:, wb * c3:(wb + 1) * c3]
    col = col.reshape(tb, oh3, c3)
    o_ref[...] = (jnp.sum(col, axis=1) * (1.0 / (oh3 * ow3))).astype(o_ref.dtype)


# --------------------------- Parameter preparation -------------------------- #

def _build_conv_mats(w_oihw, b_vec, *, in_w, stride, in_row_width, out_cols_pad):
    """Stacked-K structured conv weights for one layer.

    M[ki*in_row_width + col*cin + ci, ox*cout + co] = W[co, ci, ki, col - stride*ox]
    (0 <= col - stride*ox < kw); padded rows / columns stay zero.
    bias_row[0, ox*cout + co] = b[co].
    """
    cout, cin, kh, kw = w_oihw.shape
    ow = _out_size(in_w, kw, stride)
    w_np = np.asarray(w_oihw, np.float32)
    m = np.zeros((kh * in_row_width, out_cols_pad), np.float32)
    for ki in range(kh):
        for ox in range(ow):
            for kj in range(kw):
                col = stride * ox + kj
                r0 = ki * in_row_width + col * cin
                m[r0:r0 + cin, ox * cout:(ox + 1) * cout] = w_np[:, :, ki, kj].T
    bias = np.zeros((1, out_cols_pad), np.float32)
    bias[0, :ow * cout] = np.tile(np.asarray(b_vec, np.float32), ow)
    return m, bias


def init_canonical_params(key, output_dim=64, input_hw=(32, 32)):
    res = int(round((output_dim / 64) ** 0.5))
    assert res * res * 64 == output_dim, "canonical backbone resolution error"
    assert res == 1  # TODO(synk): adaptive-pool binning for res > 1 (output_dim > 64).

    h, w = input_hw
    g = _geom(h, w)

    keys = jax.random.split(key, len(_CONV_CFGS))
    raw = {}
    for i, ((cout, cin, k, s), kk) in enumerate(zip(_CONV_CFGS, keys), start=1):
        kw_, kb_ = jax.random.split(kk)
        fan_in = cin * k * k
        bound = 1.0 / np.sqrt(fan_in)      # PyTorch default Conv2d init bounds
        raw[f"w{i}"] = jax.random.uniform(kw_, (cout, cin, k, k), jnp.float32, -bound, bound)
        raw[f"b{i}"] = jax.random.uniform(kb_, (cout,), jnp.float32, -bound, bound)

    # Precompute stacked-K structured weights + lane-padded bias rows ONCE at init.
    m1, bias1 = _build_conv_mats(raw["w1"], raw["b1"], in_w=w, stride=_CONV_CFGS[0][3],
                                 in_row_width=w, out_cols_pad=g["w1cols"])
    m2, bias2 = _build_conv_mats(raw["w2"], raw["b2"], in_w=g["ow1"], stride=_CONV_CFGS[1][3],
                                 in_row_width=g["w1cols"], out_cols_pad=g["w2cols"])
    m3, bias3 = _build_conv_mats(raw["w3"], raw["b3"], in_w=g["ow2"], stride=_CONV_CFGS[2][3],
                                 in_row_width=g["w2cols"], out_cols_pad=g["w3cols"])

    # conv1 row-im2col gather indices (even/odd-permuted output rows, padded to x1rows).
    kh1, s1 = _CONV_CFGS[0][2], _CONV_CFGS[0][3]
    row_idx = np.zeros((g["x1rows"], kh1), np.int32)
    for pos, oy in enumerate(g["perm"]):
        row_idx[pos] = [s1 * oy + ki for ki in range(kh1)]

    return {
        "input_hw": (h, w),
        "geom": g,
        "x1_row_idx": row_idx,
        "M1": jnp.asarray(m1, jnp.bfloat16), "bias1": jnp.asarray(bias1, jnp.float32),
        "M2": jnp.asarray(m2, jnp.bfloat16), "bias2": jnp.asarray(bias2, jnp.float32),
        "M3": jnp.asarray(m3, jnp.bfloat16), "bias3": jnp.asarray(bias3, jnp.float32),
        "raw": raw,
    }


# -------------------------------- Forward ----------------------------------- #

def canonical_forward(params, x_nchw):
    h, w = params["input_hw"]
    g = params["geom"]
    b = int(x_nchw.shape[0])
    assert x_nchw.shape[1:] == (1, h, w), "input spatial size must match init_canonical_params"
    c3 = _CONV_CFGS[-1][0]
    kh3 = _CONV_CFGS[-1][2]

    # Batch tile: single step (block == full array) for tiny batches; otherwise a
    # multiple-of-8 tile capped at 32 so the grid has >=2 steps (v7x megacore) and all
    # block shapes stay (8, .)-aligned.
    if b <= 8:
        tb, bp = b, b
    else:
        tb = min(32, 8 * ((b + 15) // 16))
        bp = _round_up(b, tb)

    x = x_nchw.astype(jnp.float32).reshape(b, h, w)           # Cin == 1 -> drop channel axis
    if bp != b:
        x = jnp.concatenate([x, jnp.zeros((bp - b, h, w), jnp.float32)], axis=0)

    # One-time lane-dense row-im2col for conv1 (plain XLA gather, ~2x input size):
    #   X1[(img, pos), ki*w : (ki+1)*w] = x[img, stride*perm[pos] + ki, :]
    x1 = x[:, params["x1_row_idx"], :]                        # (bp, x1rows, kh1, w)
    x1 = x1.reshape(bp * g["x1rows"], params["M1"].shape[0]).astype(jnp.bfloat16)

    kern = functools.partial(
        _canonical_fused_kernel, tb=tb, x1rows=g["x1rows"], w1cols=g["w1cols"],
        oh2=g["oh2"], l2_starts=g["l2_starts"], w2cols=g["w2cols"],
        oh3=g["oh3"], kh3=kh3, ow3=g["ow3"], c3=c3)

    def inv(arr):  # grid-invariant (weight / bias) operand: whole array, constant block
        return pl.BlockSpec(arr.shape, lambda i: (0, 0))

    out = pl.pallas_call(
        kern,
        out_shape=jax.ShapeDtypeStruct((bp, c3), jnp.float32),
        grid=(bp // tb,),
        in_specs=[
            pl.BlockSpec((tb * g["x1rows"], params["M1"].shape[0]), lambda i: (i, 0)),
            inv(params["M1"]), inv(params["bias1"]),
            inv(params["M2"]), inv(params["bias2"]),
            inv(params["M3"]), inv(params["bias3"]),
        ],
        out_specs=pl.BlockSpec((tb, c3), lambda i: (i, 0)),
        compiler_params=pltpu.CompilerParams(
            dimension_semantics=("parallel",),                # shards batch tiles on v7x
        ),
    )(x1,
      params["M1"], params["bias1"],
      params["M2"], params["bias2"],
      params["M3"], params["bias3"])

    return BackboneOutput(encodings=out[:b])


# -------------------------- Pure-JAX reference (f32) ------------------------ #

def _reference_forward(raw, x_nchw):
    dn = ("NCHW", "OIHW", "NCHW")
    x = x_nchw.astype(jnp.float32)
    for i, (_, _, k, s) in enumerate(_CONV_CFGS, start=1):
        x = jax.lax.conv_general_dilated(x, raw[f"w{i}"], (s, s), "VALID",
                                         dimension_numbers=dn)
        x = jax.nn.relu(x + raw[f"b{i}"][None, :, None, None])
    return jnp.mean(x, axis=(2, 3))                           # AdaptiveAvgPool2d((1,1)) + flatten


if __name__ == "__main__":
    key = jax.random.PRNGKey(0)
    pkey, xkey = jax.random.split(key)
    params = init_canonical_params(pkey, output_dim=64, input_hw=(32, 32))

    # (B, C=1, H, W); 32x32 survives the three valid convs (32 -> 15 -> 6 -> 4).
    x = jax.random.normal(xkey, (2, 1, 32, 32), dtype=jnp.float32)

    out = canonical_forward(params, x)
    enc = jax.block_until_ready(out.encodings)
    assert enc.shape == (2, 64) and enc.dtype == jnp.float32
    assert bool(jnp.all(jnp.isfinite(enc)))

    # Loose tolerance: all matmuls feed bf16 to the MXU (f32 accumulation).
    ref = jax.block_until_ready(_reference_forward(params["raw"], x))
    max_err = float(jnp.max(jnp.abs(enc - ref)))
    scale = float(jnp.max(jnp.abs(ref)))
    assert max_err <= 0.05 * scale + 0.02, (max_err, scale)

    print("KERNEL_OK")
</pallas_src>

<mosaic_0001>
module attributes {stable_mosaic.version = 11 : i64} {
  func.func @_canonical_fused_kernel(%arg0: i32, %arg1: memref<32x128xbf16, #tpu.memory_space<vmem>>, %arg2: memref<128x512xbf16, #tpu.memory_space<vmem>>, %arg3: memref<1x512xf32, #tpu.memory_space<vmem>>, %arg4: memref<2048x384xbf16, #tpu.memory_space<vmem>>, %arg5: memref<1x384xf32, #tpu.memory_space<vmem>>, %arg6: memref<1152x256xbf16, #tpu.memory_space<vmem>>, %arg7: memref<1x256xf32, #tpu.memory_space<vmem>>, %arg8: memref<2x64xf32, #tpu.memory_space<vmem>>) attributes {dimension_semantics = [#tpu.dimension_semantics<parallel>], iteration_bounds = array<i64: 1>, scalar_prefetch = 0 : i64, scratch_operands = 0 : i64, tpu.core_type = #tpu.core_type<tc>, window_params = [{transform_indices = @transform_0, window_bounds = array<i64: 32, 128>}, {pipeline_mode = #tpu.pipeline_mode<synchronous>, transform_indices = @transform_1, window_bounds = array<i64: 128, 512>}, {pipeline_mode = #tpu.pipeline_mode<synchronous>, transform_indices = @transform_2, window_bounds = array<i64: 1, 512>}, {pipeline_mode = #tpu.pipeline_mode<synchronous>, transform_indices = @transform_3, window_bounds = array<i64: 2048, 384>}, {pipeline_mode = #tpu.pipeline_mode<synchronous>, transform_indices = @transform_4, window_bounds = array<i64: 1, 384>}, {pipeline_mode = #tpu.pipeline_mode<synchronous>, transform_indices = @transform_5, window_bounds = array<i64: 1152, 256>}, {pipeline_mode = #tpu.pipeline_mode<synchronous>, transform_indices = @transform_6, window_bounds = array<i64: 1, 256>}, {transform_indices = @transform_7, window_bounds = array<i64: 2, 64>}]} {
    %c0 = arith.constant 0 : index
    %c0_0 = arith.constant 0 : index
    %0 = vector.load %arg1[%c0, %c0_0] : memref<32x128xbf16, #tpu.memory_space<vmem>>, vector<32x128xbf16>
    %c0_1 = arith.constant 0 : index
    %c0_2 = arith.constant 0 : index
    %1 = vector.load %arg2[%c0_1, %c0_2] : memref<128x512xbf16, #tpu.memory_space<vmem>>, vector<128x512xbf16>
    %cst = arith.constant dense<0.000000e+00> : vector<32x512xf32>
    %2 = tpu.matmul %0, %1, %cst {dimension_numbers = #tpu.dot_dimension_numbers<[1], [0], [0], [1], [0, 0, 1, 1], [], []>} : vector<32x128xbf16>, vector<128x512xbf16>, vector<32x512xf32> -> vector<32x512xf32>
    %c0_3 = arith.constant 0 : index
    %c0_4 = arith.constant 0 : index
    %3 = vector.load %arg3[%c0_3, %c0_4] : memref<1x512xf32, #tpu.memory_space<vmem>>, vector<1x512xf32>
    %4 = vector.broadcast %3 : vector<1x512xf32> to vector<32x512xf32>
    %5 = arith.addf %2, %4 : vector<32x512xf32>
    %cst_5 = arith.constant 0.000000e+00 : f32
    %6 = vector.broadcast %cst_5 : f32 to vector<32x512xf32>
    %7 = arith.maximumf %5, %6 : vector<32x512xf32>
    %8 = arith.truncf %7 : vector<32x512xf32> to vector<32x512xbf16>
    %9 = vector.shape_cast %8 : vector<32x512xbf16> to vector<2x16x512xbf16>
    %10 = vector.extract_strided_slice %9 {offsets = [0, 0, 0], sizes = [2, 6, 512], strides = [1, 1, 1]} : vector<2x16x512xbf16> to vector<2x6x512xbf16>
    %11 = vector.extract_strided_slice %9 {offsets = [0, 8, 0], sizes = [2, 6, 512], strides = [1, 1, 1]} : vector<2x16x512xbf16> to vector<2x6x512xbf16>
    %12 = vector.extract_strided_slice %9 {offsets = [0, 1, 0], sizes = [2, 6, 512], strides = [1, 1, 1]} : vector<2x16x512xbf16> to vector<2x6x512xbf16>
    %13 = vector.extract_strided_slice %9 {offsets = [0, 9, 0], sizes = [2, 6, 512], strides = [1, 1, 1]} : vector<2x16x512xbf16> to vector<2x6x512xbf16>
    %14 = tpu.concatenate %10, %11, %12, %13 in 2 : vector<2x6x512xbf16>, vector<2x6x512xbf16>, vector<2x6x512xbf16>, vector<2x6x512xbf16> -> vector<2x6x2048xbf16>
    %15 = vector.shape_cast %14 : vector<2x6x2048xbf16> to vector<12x2048xbf16>
    %c0_6 = arith.constant 0 : index
    %c0_7 = arith.constant 0 : index
    %16 = vector.load %arg4[%c0_6, %c0_7] : memref<2048x384xbf16, #tpu.memory_space<vmem>>, vector<2048x384xbf16>
    %cst_8 = arith.constant dense<0.000000e+00> : vector<12x384xf32>
    %17 = tpu.matmul %15, %16, %cst_8 {dimension_numbers = #tpu.dot_dimension_numbers<[1], [0], [0], [1], [0, 0, 1, 1], [], []>} : vector<12x2048xbf16>, vector<2048x384xbf16>, vector<12x384xf32> -> vector<12x384xf32>
    %c0_9 = arith.constant 0 : index
    %c0_10 = arith.constant 0 : index
    %18 = vector.load %arg5[%c0_9, %c0_10] : memref<1x384xf32, #tpu.memory_space<vmem>>, vector<1x384xf32>
    %19 = vector.broadcast %18 : vector<1x384xf32> to vector<12x384xf32>
    %20 = arith.addf %17, %19 : vector<12x384xf32>
    %cst_11 = arith.constant 0.000000e+00 : f32
    %21 = vector.broadcast %cst_11 : f32 to vector<12x384xf32>
    %22 = arith.maximumf %20, %21 : vector<12x384xf32>
    %23 = arith.truncf %22 : vector<12x384xf32> to vector<12x384xbf16>
    %24 = vector.shape_cast %23 : vector<12x384xbf16> to vector<2x6x384xbf16>
    %25 = vector.extract_strided_slice %24 {offsets = [0, 0, 0], sizes = [2, 4, 384], strides = [1, 1, 1]} : vector<2x6x384xbf16> to vector<2x4x384xbf16>
    %26 = vector.extract_strided_slice %24 {offsets = [0, 1, 0], sizes = [2, 4, 384], strides = [1, 1, 1]} : vector<2x6x384xbf16> to vector<2x4x384xbf16>
    %27 = vector.extract_strided_slice %24 {offsets = [0, 2, 0], sizes = [2, 4, 384], strides = [1, 1, 1]} : vector<2x6x384xbf16> to vector<2x4x384xbf16>
    %28 = tpu.concatenate %25, %26, %27 in 2 : vector<2x4x384xbf16>, vector<2x4x384xbf16>, vector<2x4x384xbf16> -> vector<2x4x1152xbf16>
    %29 = vector.shape_cast %28 : vector<2x4x1152xbf16> to vector<8x1152xbf16>
    %c0_12 = arith.constant 0 : index
    %c0_13 = arith.constant 0 : index
    %30 = vector.load %arg6[%c0_12, %c0_13] : memref<1152x256xbf16, #tpu.memory_space<vmem>>, vector<1152x256xbf16>
    %cst_14 = arith.constant dense<0.000000e+00> : vector<8x256xf32>
    %31 = tpu.matmul %29, %30, %cst_14 {dimension_numbers = #tpu.dot_dimension_numbers<[1], [0], [0], [1], [0, 0, 1, 1], [], []>} : vector<8x1152xbf16>, vector<1152x256xbf16>, vector<8x256xf32> -> vector<8x256xf32>
    %c0_15 = arith.constant 0 : index
    %c0_16 = arith.constant 0 : index
    %32 = vector.load %arg7[%c0_15, %c0_16] : memref<1x256xf32, #tpu.memory_space<vmem>>, vector<1x256xf32>
    %33 = vector.broadcast %32 : vector<1x256xf32> to vector<8x256xf32>
    %34 = arith.addf %31, %33 : vector<8x256xf32>
    %cst_17 = arith.constant 0.000000e+00 : f32
    %35 = vector.broadcast %cst_17 : f32 to vector<8x256xf32>
    %36 = arith.maximumf %34, %35 : vector<8x256xf32>
    %37 = vector.extract_strided_slice %36 {offsets = [0, 0], sizes = [8, 64], strides = [1, 1]} : vector<8x256xf32> to vector<8x64xf32>
    %38 = vector.extract_strided_slice %36 {offsets = [0, 64], sizes = [8, 64], strides = [1, 1]} : vector<8x256xf32> to vector<8x64xf32>
    %39 = arith.addf %37, %38 : vector<8x64xf32>
    %40 = vector.extract_strided_slice %36 {offsets = [0, 128], sizes = [8, 64], strides = [1, 1]} : vector<8x256xf32> to vector<8x64xf32>
    %41 = arith.addf %39, %40 : vector<8x64xf32>
    %42 = vector.extract_strided_slice %36 {offsets = [0, 192], sizes = [8, 64], strides = [1, 1]} : vector<8x256xf32> to vector<8x64xf32>
    %43 = arith.addf %41, %42 : vector<8x64xf32>
    %44 = vector.shape_cast %43 : vector<8x64xf32> to vector<2x4x64xf32>
    %cst_18 = arith.constant dense<0.000000e+00> : vector<2x64xf32>
    %45 = vector.multi_reduction <add>, %44, %cst_18 [1] : vector<2x4x64xf32> to vector<2x64xf32>
    %cst_19 = arith.constant 6.250000e-02 : f32
    %46 = vector.broadcast %cst_19 : f32 to vector<2x64xf32>
    %47 = arith.mulf %45, %46 : vector<2x64xf32>
    %c0_20 = arith.constant 0 : index
    %c0_21 = arith.constant 0 : index
    %48 = vector.load %arg8[%c0_20, %c0_21] : memref<2x64xf32, #tpu.memory_space<vmem>>, vector<2x64xf32>
    tpu.vector_store %arg8[%c0_20, %c0_21], %47 {strides = array<i32>} : memref<2x64xf32, #tpu.memory_space<vmem>>, vector<2x64xf32>,
    return
  }
  func.func @transform_0(%arg0: i32) -> (i32, i32) {
    %c0_i32 = arith.constant 0 : i32
    %c0_i32_0 = arith.constant 0 : i32
    return %arg0, %c0_i32 : i32, i32
  }
  func.func @transform_1(%arg0: i32) -> (i32, i32) {
    %c0_i32 = arith.constant 0 : i32
    %c0_i32_0 = arith.constant 0 : i32
    %c0_i32_1 = arith.constant 0 : i32
    return %c0_i32, %c0_i32_0 : i32, i32
  }
  func.func @transform_2(%arg0: i32) -> (i32, i32) {
    %c0_i32 = arith.constant 0 : i32
    %c0_i32_0 = arith.constant 0 : i32
    %c0_i32_1 = arith.constant 0 : i32
    return %c0_i32, %c0_i32_0 : i32, i32
  }
  func.func @transform_3(%arg0: i32) -> (i32, i32) {
    %c0_i32 = arith.constant 0 : i32
    %c0_i32_0 = arith.constant 0 : i32
    %c0_i32_1 = arith.constant 0 : i32
    return %c0_i32, %c0_i32_0 : i32, i32
  }
  func.func @transform_4(%arg0: i32) -> (i32, i32) {
    %c0_i32 = arith.constant 0 : i32
    %c0_i32_0 = arith.constant 0 : i32
    %c0_i32_1 = arith.constant 0 : i32
    return %c0_i32, %c0_i32_0 : i32, i32
  }
  func.func @transform_5(%arg0: i32) -> (i32, i32) {
    %c0_i32 = arith.constant 0 : i32
    %c0_i32_0 = arith.constant 0 : i32
    %c0_i32_1 = arith.constant 0 : i32
    return %c0_i32, %c0_i32_0 : i32, i32
  }
  func.func @transform_6(%arg0: i32) -> (i32, i32) {
    %c0_i32 = arith.constant 0 : i32
    %c0_i32_0 = arith.constant 0 : i32
    %c0_i32_1 = arith.constant 0 : i32
    return %c0_i32, %c0_i32_0 : i32, i32
  }
  func.func @transform_7(%arg0: i32) -> (i32, i32) {
    %c0_i32 = arith.constant 0 : i32
    %c0_i32_0 = arith.constant 0 : i32
    return %arg0, %c0_i32 : i32, i32
  }
}

</mosaic_0001>

<bundles_post_ra>
// kernel: tpu_custom_call.1
= control target key start
LH: loop header
LB: loop body
LE: loop exit
PB: predicated region body
PF: predicated region fallthrough
CT: control target
= control target key end

     0   :  { %12 = vsyncpa [#allocation3], 0  ;;  %s9118_s0 = inlined_call_operand.hbm [shape: bf16[32,128], index: 0, kind: input, shape index: {}]   ;;  %s9119_s1 = inlined_call_operand.hbm [shape: bf16[128,512], index: 1, kind: input, shape index: {}]   ;;  %s9120_s2 = inlined_call_operand.hbm [shape: f32[1,512], index: 2, kind: input, shape index: {}]   ;;  %s9121_s3 = inlined_call_operand.hbm [shape: bf16[2048,384], index: 3, kind: input, shape index: {}]   ;;  %s9122_s4 = inlined_call_operand.hbm [shape: f32[1,384], index: 4, kind: input, shape index: {}]   ;;  %s9123_s5 = inlined_call_operand.hbm [shape: bf16[1152,256], index: 5, kind: input, shape index: {}]   ;;  %s9124_s6 = inlined_call_operand.hbm [shape: f32[1,256], index: 6, kind: input, shape index: {}]   ;;  %s9125_s7 = inlined_call_operand.hbm [shape: f32[2,64], index: 7, kind: output, shape index: {}]  }
   0x1   :  { %13 = vsyncpa [#allocation6], 0 }
   0x2   :  { %14 = vsyncpa [#allocation9], 0 }
   0x3   :  { %15 = vsyncpa [#allocation12], 0  ;;  %s34_s26 = sshll.u32 %s9119_s1, 4  ;;  %s35_s26 = int_to_ptr.hbm [resolvable:$true] %s34_s26 }
   0x4   :  { %16 = vsyncpa [#allocation4], 0  ;;  %s8484_s27 = smov [#allocation5]   ;;  %s58_s8 = sshll.u32 %s9121_s3, 4  ;;  %s59_s8 = int_to_ptr.hbm [resolvable:$true] %s58_s8 }
   0x5   :  { %s36_s28 = sshll.u32 %s8484_s27, 4  ;;  %s8485_s9 = smov 256   ;;  %s37_s28 = int_to_ptr.vmem [resolvable:$true] %s36_s28 }
   0x6   :  { %s8486_s10 = smov 16   ;;  %s8487_s11 = smov [#allocation8]  }
   0x7   :  { %42 = dma.hbm_to_vmem [thread:$0]  %s35_s26, 4096, %s37_s28, [#allocation6], %s8485_s9, %s8485_s9, %s8486_s10  }
   0x8   :  { %s60_s12 = sshll.u32 %s8487_s11, 4  ;;  %s8488_s13 = smov 192   ;;  %s61_s12 = int_to_ptr.vmem [resolvable:$true] %s60_s12 }
   0x9   :  { %s8489_s14 = smov 12   ;;  %s82_s16 = sshll.u32 %s9123_s5, 4  ;;  %s83_s16 = int_to_ptr.hbm [resolvable:$true] %s82_s16 }
   0xa   :  { %66 = dma.hbm_to_vmem [thread:$0]  %s59_s8, 49152, %s61_s12, [#allocation9], %s8488_s13, %s8488_s13, %s8489_s14  }
   0xb   :  { %s8490_s17 = smov [#allocation11]   ;;  %s21_s20 = sshll.u32 %s9118_s0, 4  ;;  %s22_s20 = int_to_ptr.hbm [resolvable:$true] %s21_s20 }
   0xc   :  { %s84_s18 = sshll.u32 %s8490_s17, 4  ;;  %s8491_s21 = smov 128   ;;  %s85_s18 = int_to_ptr.vmem [resolvable:$true] %s84_s18 }
   0xd   :  { %s8492_s22 = smov 8   ;;  %s8493_s23 = smov [#allocation2]  }
   0xe   :  { %90 = dma.hbm_to_vmem [thread:$0]  %s83_s16, 18432, %s85_s18, [#allocation12], %s8491_s21, %s8491_s21, %s8492_s22  }
   0xf   :  { %s23_s24 = sshll.u32 %s8493_s23, 4  ;;  %s8494_s25 = smov 64   ;;  %s24_s24 = int_to_ptr.vmem [resolvable:$true] %s23_s24 }
  0x10   :  { %s8495_s26 = smov 4   ;;  %s48_s28 = sshll.u32 %s9120_s2, 4  ;;  %s49_s28 = int_to_ptr.hbm [resolvable:$true] %s48_s28 }
  0x11   :  { %29 = dma.hbm_to_vmem [thread:$0]  %s22_s20, 256, %s24_s24, [#allocation3], %s8494_s25, %s8494_s25, %s8495_s26  }
  0x12   :  { %s8496_s29 = smov [#allocation7]   ;;  %s72_s9 = sshll.u32 %s9122_s4, 4  ;;  %s73_s9 = int_to_ptr.hbm [resolvable:$true] %s72_s9 }
  0x13   :  { %s50_s30 = sshll.u32 %s8496_s29, 4  ;;  %s8497_s10 = smov [#allocation10]   ;;  %s51_s30 = int_to_ptr.vmem [resolvable:$true] %s50_s30 }
  0x14   :  { %53 = dma.hbm_to_vmem [thread:$0]  %s49_s28, 64, %s51_s30, [#allocation6]  }
  0x15   :  { %s74_s11 = sshll.u32 %s8497_s10, 4  ;;  %s96_s14 = sshll.u32 %s9124_s6, 4  ;;  %s75_s11 = int_to_ptr.vmem [resolvable:$true] %s74_s11  ;;  %s97_s14 = int_to_ptr.hbm [resolvable:$true] %s96_s14 }
  0x16   :  { %77 = dma.hbm_to_vmem [thread:$0]  %s73_s9, 48, %s75_s11, [#allocation9]  }
  0x17   :  { %s8498_s2 = smov [#allocation13]  }
  0x18   :  { %s98_s1 = sshll.u32 %s8498_s2, 4  ;;  %s99_s1 = int_to_ptr.vmem [resolvable:$true] %s98_s1 }
  0x19   :  { %101 = dma.hbm_to_vmem [thread:$0]  %s97_s14, 32, %s99_s1, [#allocation12]  }
  0x1a   :  { %8474 = dma.done.wait [#allocation3], 256  }
  0x1b   :  { %8475 = vsyncadd [#allocation3], 4294967040 }
  0x1c   :  { %8476 = dma.done.wait [#allocation6], 4160  }
  0x1d   :  { %8477 = vsyncadd [#allocation6], 4294963136 }
  0x1e   :  { %8478 = dma.done.wait [#allocation9], 49200  }
  0x1f   :  { %8479 = vsyncadd [#allocation9], 4294918096 }
  0x20   :  { %8480 = dma.done.wait [#allocation12], 18464  }
  0x21   :  { %8481 = vsyncadd [#allocation12], 4294948832  ;;  %v5561_v0 = vld [vmem:[#allocation5 + $0xe0] sm:$0xf]  ;;  %v7719_v1 = vld [vmem:[#allocation5 + $0xec] sm:$0xf0] }
  0x22   :  { %v7717_v2 = vld [vmem:[#allocation5 + $0xe4] sm:$0xf]  ;;  %v5562_v3 = vor.u32 %v7719_v1, %v5561_v0  ;;  %v5563_v4 = vld [vmem:[#allocation5 + $0xf0] sm:$0xf0]  ;;  %v5569_v5 = vld [vmem:[#allocation5 + $0xe8] sm:$0xf] }
  0x23   :  { %v7720_v6 = vld [vmem:[#allocation5 + $0xf4] sm:$0xf0]  ;;  %v5566_v7 = vor.u32 %v7717_v2, %v5563_v4  ;;  %v7718_v9 = vld [vmem:[#allocation5 + $0xec] sm:$0xf]  ;;  %v5571_v10 = vld [vmem:[#allocation5 + $0xf8] sm:$0xf0] }
  0x24   :  { %v5570_v8 = vor.u32 %v7720_v6, %v5569_v5  ;;  %v5545_v11 = vld [vmem:[#allocation5 + $0xc0] sm:$0xf]  ;;  %348 = vmatpush.bf16.msra.mxu0 %v5562_v3  ;;  %v5574_v12 = vor.u32 %v7718_v9, %v5571_v10  ;;  %v7715_v13 = vld [vmem:[#allocation5 + $0xcc] sm:$0xf0]  ;;  %v7713_v14 = vld [vmem:[#allocation5 + $0xc4] sm:$0xf] }
  0x25   :  { %v5547_v15 = vld [vmem:[#allocation5 + $0xd0] sm:$0xf0]  ;;  %367 = vmatpush.bf16.msra.mxu1 %v5566_v7  ;;  %v5546_v16 = vor.u32 %v7715_v13, %v5545_v11  ;;  %v5553_v18 = vld [vmem:[#allocation5 + $0xc8] sm:$0xf]  ;;  %v7716_v19 = vld [vmem:[#allocation5 + $0xd4] sm:$0xf0] }
  0x26   :  { %386 = vmatpush.bf16.msra.mxu2 %v5570_v8  ;;  %v5550_v17 = vor.u32 %v7713_v14, %v5547_v15  ;;  %v7714_v20 = vld [vmem:[#allocation5 + $0xcc] sm:$0xf]  ;;  %405 = vmatpush.bf16.msra.mxu3 %v5574_v12  ;;  %v5554_v21 = vor.u32 %v7716_v19, %v5553_v18  ;;  %v5555_v22 = vld [vmem:[#allocation5 + $0xd8] sm:$0xf0]  ;;  %v5529_v23 = vld [vmem:[#allocation5 + $0xa0] sm:$0xf] }
  0x27   :  { %v7711_v24 = vld [vmem:[#allocation5 + $0xac] sm:$0xf0]  ;;  %v5558_v25 = vor.u32 %v7714_v20, %v5555_v22  ;;  %v7709_v26 = vld [vmem:[#allocation5 + $0xa4] sm:$0xf]  ;;  %v5531_v27 = vld [vmem:[#allocation5 + $0xb0] sm:$0xf0] }
  0x28   :  { %v5537_v28 = vld [vmem:[#allocation5 + $0xa8] sm:$0xf]  ;;  %349 = vmatpush.bf16.msra.mxu0 %v5546_v16  ;;  %v5530_v29 = vor.u32 %v7711_v24, %v5529_v23  ;;  %v7712_v30 = vld [vmem:[#allocation5 + $0xb4] sm:$0xf0]  ;;  %v7710_v31 = vld [vmem:[#allocation5 + $0xac] sm:$0xf]  ;;  %v5534_v33 = vor.u32 %v7709_v26, %v5531_v27 }
  0x29   :  { %v5539_v32 = vld [vmem:[#allocation5 + $0xb8] sm:$0xf0]  ;;  %368 = vmatpush.bf16.msra.mxu1 %v5550_v17  ;;  %v5538_v34 = vor.u32 %v7712_v30, %v5537_v28  ;;  %v5513_v35 = vld [vmem:[#allocation5 + $0x80] sm:$0xf]  ;;  %v7707_v36 = vld [vmem:[#allocation5 + $0x8c] sm:$0xf0] }
  0x2a   :  { %387 = vmatpush.bf16.msra.mxu2 %v5554_v21  ;;  %v7705_v37 = vld [vmem:[#allocation5 + $0x84] sm:$0xf]  ;;  %406 = vmatpush.bf16.msra.mxu3 %v5558_v25  ;;  %v5542_v38 = vor.u32 %v7710_v31, %v5539_v32  ;;  %v5515_v39 = vld [vmem:[#allocation5 + $0x90] sm:$0xf0]  ;;  %v5521_v40 = vld [vmem:[#allocation5 + $0x88] sm:$0xf]  ;;  %v5514_v44 = vor.u32 %v7707_v36, %v5513_v35 }
  0x2b   :  { %v7708_v41 = vld [vmem:[#allocation5 + $0x94] sm:$0xf0]  ;;  %v7706_v42 = vld [vmem:[#allocation5 + $0x8c] sm:$0xf]  ;;  %v5523_v43 = vld [vmem:[#allocation5 + $0x98] sm:$0xf0]  ;;  %v5518_v45 = vor.u32 %v7705_v37, %v5515_v39 }
  0x2c   :  { %350 = vmatpush.bf16.msra.mxu0 %v5530_v29  ;;  %v5522_v46 = vor.u32 %v7708_v41, %v5521_v40  ;;  %v5497_v47 = vld [vmem:[#allocation5 + $0x60] sm:$0xf]  ;;  %v7703_v48 = vld [vmem:[#allocation5 + $0x6c] sm:$0xf0]  ;;  %v7701_v49 = vld [vmem:[#allocation5 + $0x64] sm:$0xf]  ;;  %v5526_v50 = vor.u32 %v7706_v42, %v5523_v43 }
  0x2d   :  { %369 = vmatpush.bf16.msra.mxu1 %v5534_v33  ;;  %v5499_v51 = vld [vmem:[#allocation5 + $0x70] sm:$0xf0]  ;;  %v5505_v52 = vld [vmem:[#allocation5 + $0x68] sm:$0xf]  ;;  %v7704_v53 = vld [vmem:[#allocation5 + $0x74] sm:$0xf0]  ;;  %v5498_v56 = vor.u32 %v7703_v48, %v5497_v47 }
  0x2e   :  { %388 = vmatpush.bf16.msra.mxu2 %v5538_v34  ;;  %407 = vmatpush.bf16.msra.mxu3 %v5542_v38  ;;  %v7702_v54 = vld [vmem:[#allocation5 + $0x6c] sm:$0xf]  ;;  %v5507_v55 = vld [vmem:[#allocation5 + $0x78] sm:$0xf0]  ;;  %v5502_v57 = vor.u32 %v7701_v49, %v5499_v51  ;;  %v5506_v58 = vor.u32 %v7704_v53, %v5505_v52  ;;  %v5481_v59 = vld [vmem:[#allocation5 + $0x40] sm:$0xf] }
  0x2f   :  { %v7699_v60 = vld [vmem:[#allocation5 + $0x4c] sm:$0xf0]  ;;  %v7697_v61 = vld [vmem:[#allocation5 + $0x44] sm:$0xf]  ;;  %v5510_v62 = vor.u32 %v7702_v54, %v5507_v55  ;;  %v5483_v63 = vld [vmem:[#allocation5 + $0x50] sm:$0xf0] }
  0x30   :  { %351 = vmatpush.bf16.msra.mxu0 %v5514_v44  ;;  %v5489_v0 = vld [vmem:[#allocation5 + $0x48] sm:$0xf]  ;;  %v7700_v1 = vld [vmem:[#allocation5 + $0x54] sm:$0xf0]  ;;  %v7698_v2 = vld [vmem:[#allocation5 + $0x4c] sm:$0xf]  ;;  %v5482_v4 = vor.u32 %v7699_v60, %v5481_v59  ;;  %v5486_v5 = vor.u32 %v7697_v61, %v5483_v63 }
  0x31   :  { %370 = vmatpush.bf16.msra.mxu1 %v5518_v45  ;;  %v5491_v3 = vld [vmem:[#allocation5 + $0x58] sm:$0xf0]  ;;  %v5490_v6 = vor.u32 %v7700_v1, %v5489_v0  ;;  %v5465_v7 = vld [vmem:[#allocation5 + $0x20] sm:$0xf]  ;;  %v7695_v8 = vld [vmem:[#allocation5 + $0x2c] sm:$0xf0] }
  0x32   :  { %389 = vmatpush.bf16.msra.mxu2 %v5522_v46  ;;  %408 = vmatpush.bf16.msra.mxu3 %v5526_v50  ;;  %v7693_v9 = vld [vmem:[#allocation5 + $0x24] sm:$0xf]  ;;  %v5494_v10 = vor.u32 %v7698_v2, %v5491_v3  ;;  %v5467_v11 = vld [vmem:[#allocation5 + $0x30] sm:$0xf0]  ;;  %v5473_v12 = vld [vmem:[#allocation5 + $0x28] sm:$0xf]  ;;  %v5466_v16 = vor.u32 %v7695_v8, %v5465_v7 }
  0x33   :  { %v7696_v13 = vld [vmem:[#allocation5 + $0x34] sm:$0xf0]  ;;  %v7694_v14 = vld [vmem:[#allocation5 + $0x2c] sm:$0xf]  ;;  %v5475_v15 = vld [vmem:[#allocation5 + $0x38] sm:$0xf0]  ;;  %v5470_v18 = vor.u32 %v7693_v9, %v5467_v11 }
  0x34   :  { %352 = vmatpush.bf16.msra.mxu0 %v5498_v56  ;;  %v5449_v17 = vld [vmem:[#allocation5] sm:$0xf]  ;;  %v5474_v19 = vor.u32 %v7696_v13, %v5473_v12  ;;  %v7691_v20 = vld [vmem:[#allocation5 + $0xc] sm:$0xf0]  ;;  %v7689_v21 = vld [vmem:[#allocation5 + $0x4] sm:$0xf]  ;;  %v5478_v23 = vor.u32 %v7694_v14, %v5475_v15 }
  0x35   :  { %371 = vmatpush.bf16.msra.mxu1 %v5502_v57  ;;  %v5451_v22 = vld [vmem:[#allocation5 + $0x10] sm:$0xf0]  ;;  %v5457_v24 = vld [vmem:[#allocation5 + $0x8] sm:$0xf]  ;;  %v7692_v25 = vld [vmem:[#allocation5 + $0x14] sm:$0xf0]  ;;  %v5450_v30 = vor.u32 %v7691_v20, %v5449_v17 }
  0x36   :  { %390 = vmatpush.bf16.msra.mxu2 %v5506_v58  ;;  %409 = vmatpush.bf16.msra.mxu3 %v5510_v62  ;;  %v7690_v26 = vld [vmem:[#allocation5 + $0xc] sm:$0xf]  ;;  %v5459_v27 = vld [vmem:[#allocation5 + $0x18] sm:$0xf0]  ;;  %v7743_v29 = vld [vmem:[#allocation8 + $0xb0] sm:$0xf0]  ;;  %v5454_v33 = vor.u32 %v7689_v21, %v5451_v22  ;;  %v5458_v34 = vor.u32 %v7692_v25, %v5457_v24 }
  0x37   :  { %v5661_v28 = vld [vmem:[#allocation8 + $0xa8] sm:$0xf]  ;;  %v7767_v32 = vld [vmem:[#allocation8 + $0x170] sm:$0xf0]  ;;  %v5462_v35 = vor.u32 %v7690_v26, %v5459_v27  ;;  %v7687_v39 = vld [vmem:[#allocation2] sm:$0xff]  ;;  %vm628_vm0 = vcmask 1040384  }
  0x38   :  { %353 = vmatpush.bf16.msra.mxu0 %v5482_v4  ;;  %v5757_v31 = vld [vmem:[#allocation8 + $0x168] sm:$0xf]  ;;  %v5662_v36 = vor.u32 %v7743_v29, %v5661_v28  ;;  %v7791_v38 = vld [vmem:[#allocation8 + $0x230] sm:$0xf0]  ;;  %v5649_v46 = vld [vmem:[#allocation8 + $0x90] sm:$0xf] }
  0x39   :  { %372 = vmatpush.bf16.msra.mxu1 %v5486_v5  ;;  %v5853_v37 = vld [vmem:[#allocation8 + $0x228] sm:$0xf]  ;;  %v5758_v40 = vor.u32 %v7767_v32, %v5757_v31  ;;  %v7815_v42 = vld [vmem:[#allocation8 + $0x2f0] sm:$0xf0]  ;;  %v7740_v47 = vld [vmem:[#allocation8 + $0x98] sm:$0xf0] }
  0x3a   :  { %391 = vmatpush.bf16.msra.mxu2 %v5490_v6  ;;  %410 = vmatpush.bf16.msra.mxu3 %v5494_v10  ;;  %v5949_v41 = vld [vmem:[#allocation8 + $0x2e8] sm:$0xf]  ;;  %v5854_v43 = vor.u32 %v7791_v38, %v5853_v37  ;;  %v7688_v45 = vld [vmem:[#allocation2 + $0x8] sm:$0xff]  ;;  %v5745_v48 = vld [vmem:[#allocation8 + $0x150] sm:$0xf]  ;;  %v5650_v49 = vor.u32 %v7740_v47, %v5649_v46  ;;  %vm631_vm1 = vcmask 1042434  }
  0x3b   :  { %v5950_v44 = vor.u32 %v7815_v42, %v5949_v41  ;;  %v7764_v50 = vld [vmem:[#allocation8 + $0x158] sm:$0xf0]  ;;  %v5841_v51 = vld [vmem:[#allocation8 + $0x210] sm:$0xf]  ;;  %v5637_v58 = vld [vmem:[#allocation8 + $0x78] sm:$0xf] }
  0x3c   :  { %354 = vmatpush.bf16.msra.mxu0 %v5466_v16  ;;  %v7788_v52 = vld [vmem:[#allocation8 + $0x218] sm:$0xf0]  ;;  %v5746_v53 = vor.u32 %v7764_v50, %v5745_v48  ;;  %v5937_v55 = vld [vmem:[#allocation8 + $0x2d0] sm:$0xf]  ;;  %v7737_v59 = vld [vmem:[#allocation8 + $0x80] sm:$0xf0] }
  0x3d   :  { %373 = vmatpush.bf16.msra.mxu1 %v5470_v18  ;;  %v5842_v54 = vor.u32 %v7788_v52, %v5841_v51  ;;  %v7812_v56 = vld [vmem:[#allocation8 + $0x2d8] sm:$0xf0]  ;;  %v5733_v60 = vld [vmem:[#allocation8 + $0x138] sm:$0xf]  ;;  %v5638_v61 = vor.u32 %v7737_v59, %v5637_v58  ;;  %v7761_v62 = vld [vmem:[#allocation8 + $0x140] sm:$0xf0] }
  0x3e   :  { %392 = vmatpush.bf16.msra.mxu2 %v5474_v19  ;;  %411 = vmatpush.bf16.msra.mxu3 %v5478_v23  ;;  %v5938_v57 = vor.u32 %v7812_v56, %v5937_v55  ;;  %v5829_v63 = vld [vmem:[#allocation8 + $0x1f8] sm:$0xf]  ;;  %v7785_v0 = vld [vmem:[#allocation8 + $0x200] sm:$0xf0]  ;;  %v5734_v1 = vor.u32 %v7761_v62, %v5733_v60  ;;  %v5625_v6 = vld [vmem:[#allocation8 + $0x60] sm:$0xf] }
  0x3f   :  { %v5830_v2 = vor.u32 %v7785_v0, %v5829_v63  ;;  %v5925_v3 = vld [vmem:[#allocation8 + $0x2b8] sm:$0xf]  ;;  %v7809_v4 = vld [vmem:[#allocation8 + $0x2c0] sm:$0xf0]  ;;  %v7734_v7 = vld [vmem:[#allocation8 + $0x68] sm:$0xf0] }
  0x40   :  { %355 = vmatpush.bf16.msra.mxu0 %v5450_v30  ;;  %v5926_v5 = vor.u32 %v7809_v4, %v5925_v3  ;;  %v5721_v8 = vld [vmem:[#allocation8 + $0x120] sm:$0xf]  ;;  %v5626_v9 = vor.u32 %v7734_v7, %v5625_v6  ;;  %v7758_v10 = vld [vmem:[#allocation8 + $0x128] sm:$0xf0]  ;;  %v5613_v18 = vld [vmem:[#allocation8 + $0x48] sm:$0xf] }
  0x41   :  { %374 = vmatpush.bf16.msra.mxu1 %v5454_v33  ;;  %v5817_v11 = vld [vmem:[#allocation8 + $0x1e0] sm:$0xf]  ;;  %v7782_v12 = vld [vmem:[#allocation8 + $0x1e8] sm:$0xf0]  ;;  %v5722_v13 = vor.u32 %v7758_v10, %v5721_v8  ;;  %v7731_v19 = vld [vmem:[#allocation8 + $0x50] sm:$0xf0] }
  0x42   :  { %393 = vmatpush.bf16.msra.mxu2 %v5458_v34  ;;  %412 = vmatpush.bf16.msra.mxu3 %v5462_v35  ;;  %v5818_v14 = vor.u32 %v7782_v12, %v5817_v11  ;;  %v5913_v15 = vld [vmem:[#allocation8 + $0x2a0] sm:$0xf]  ;;  %v7806_v16 = vld [vmem:[#allocation8 + $0x2a8] sm:$0xf0]  ;;  %v166_v20 = vld [vmem:[#allocation7] sm:$0xf]  ;;  %v5614_v21 = vor.u32 %v7731_v19, %v5613_v18 }
  0x43   :  { %356 = vmatmul.bf16.vlgmr.msra.gmra.mxu0 %v7687_v39  ;;  %v5914_v17 = vor.u32 %v7806_v16, %v5913_v15  ;;  %v5709_v22 = vld [vmem:[#allocation8 + $0x108] sm:$0xf]  ;;  %v7755_v23 = vld [vmem:[#allocation8 + $0x110] sm:$0xf0]  ;;  %v8563_v31 = vperm.slane %v166_v20, 0  ;;  %v8565_v32 = vperm.slane %v166_v20, 1 }
  0x44   :  { %3400 = vmatpush.bf16.msrb.mxu0 %v5662_v36  ;;  %375 = vmatmul.bf16.vlgmr.msra.gmra.mxu1 %v7687_v39  ;;  %v5710_v24 = vor.u32 %v7755_v23, %v5709_v22  ;;  %v5805_v25 = vld [vmem:[#allocation8 + $0x1c8] sm:$0xf]  ;;  %v7779_v26 = vld [vmem:[#allocation8 + $0x1d0] sm:$0xf0]  ;;  %v5601_v33 = vld [vmem:[#allocation8 + $0x30] sm:$0xf] }
  0x45   :  { %3414 = vmatpush.bf16.msrb.mxu1 %v5758_v40  ;;  %394 = vmatmul.bf16.vlgmr.msra.gmra.mxu2 %v7687_v39  ;;  %v5901_v27 = vld [vmem:[#allocation8 + $0x288] sm:$0xf]  ;;  %v5806_v28 = vor.u32 %v7779_v26, %v5805_v25  ;;  %v7803_v29 = vld [vmem:[#allocation8 + $0x290] sm:$0xf0]  ;;  %v7728_v34 = vld [vmem:[#allocation8 + $0x38] sm:$0xf0] }
  0x46   :  { %413 = vmatmul.bf16.vlgmr.msra.gmra.mxu3 %v7687_v39  ;;  %3428 = vmatpush.bf16.msrb.mxu2 %v5854_v43  ;;  %v5902_v30 = vor.u32 %v7803_v29, %v5901_v27  ;;  %v5697_v35 = vld [vmem:[#allocation8 + $0xf0] sm:$0xf]  ;;  %v5602_v36 = vor.u32 %v7728_v34, %v5601_v33  ;;  %v7752_v37 = vld [vmem:[#allocation8 + $0xf8] sm:$0xf0]  ;;  %v8569_v51 = vperm.slane %v166_v20, 2  ;;  %v8571_v52 = vperm.slane %v166_v20, 3 }
  0x47   :  { %3442 = vmatpush.bf16.msrb.mxu3 %v5950_v44  ;;  %v5793_v38 = vld [vmem:[#allocation8 + $0x1b0] sm:$0xf]  ;;  %v7776_v39 = vld [vmem:[#allocation8 + $0x1b8] sm:$0xf0]  ;;  %v5698_v40 = vor.u32 %v7752_v37, %v5697_v35  ;;  %v5589_v58 = vld [vmem:[#allocation8 + $0x18] sm:$0xf] }
  0x48   :  { %3401 = vmatpush.bf16.msrb.mxu0 %v5650_v49  ;;  %v5794_v41 = vor.u32 %v7776_v39, %v5793_v38  ;;  %v5889_v42 = vld [vmem:[#allocation8 + $0x270] sm:$0xf]  ;;  %v7800_v43 = vld [vmem:[#allocation8 + $0x278] sm:$0xf0]  ;;  %v7725_v59 = vld [vmem:[#allocation8 + $0x20] sm:$0xf0] }
  0x49   :  { %3415 = vmatpush.bf16.msrb.mxu1 %v5746_v53  ;;  %v5590_v62 = vor.u32 %v7725_v59, %v5589_v58  ;;  %v5685_v63 = vld [vmem:[#allocation8 + $0xd8] sm:$0xf]  ;;  %v7749_v0 = vld [vmem:[#allocation8 + $0xe0] sm:$0xf0]  ;;  %vm9126_vm2 = vcmask 1041409   ;;  %vm637_vm3 = vcmask 1044484  }
  0x4a   :  { %3429 = vmatpush.bf16.msrb.mxu2 %v5842_v54  ;;  %v7773_v6 = vld [vmem:[#allocation8 + $0x1a0] sm:$0xf0]  ;;  %v5877_v7 = vld [vmem:[#allocation8 + $0x258] sm:$0xf]  ;;  %vm666_vm4 = vcmask 1043459   ;;  %vm635_vm5 = vcmask 1041408  }
  0x4b   :  { %3443 = vmatpush.bf16.msrb.mxu3 %v5938_v57  ;;  %v7797_v11 = vld [vmem:[#allocation8 + $0x260] sm:$0xf0]  ;;  %vm668_vm6 = vcmask 1042433   ;;  %vm691_vm7 = vcmask 1043458   ;;  %vm670_vm8 = vcmask 1045509   ;;  %vm641_vm9 = vcmask 1046534  }
  0x4c   :  { %3402 = vmatpush.bf16.msrb.mxu0 %v5638_v61  ;;  %vm672_vm10 = vcmask 1046528   ;;  %vm645_vm11 = vcmask 1045508   ;;  %vm674_vm12 = vcmask 1046533   ;;  %vm647_vm13 = vcmask 1043456   ;;  %s8499_s4 = smov [#allocation14]   ;;  %s5426_s17 = sshll.u32 %s9125_s7, 4  ;;  %s5427_s17 = int_to_ptr.hbm [resolvable:$true] %s5426_s17 }
  0x4d   :  { %3416 = vmatpush.bf16.msrb.mxu1 %v5734_v1  ;;  %v5781_v1 = vld [vmem:[#allocation8 + $0x198] sm:$0xf]  ;;  %vm676_vm14 = vcmask 1044481   ;;  %vm695_vm15 = vcmask 1045504   ;;  %s5424_s6 = sshll.u32 %s8499_s4, 4  ;;  %s5425_s6 = int_to_ptr.vmem [resolvable:$true] %s5424_s6 }
  0x4e   :  { %3430 = vmatpush.bf16.msrb.mxu2 %v5830_v2  ;;  %v5782_v10 = vor.u32 %v7773_v6, %v5781_v1 }
  0x4f   :  { %3444 = vmatpush.bf16.msrb.mxu3 %v5926_v5 }
  0x50   :  { %3403 = vmatpush.bf16.msrb.mxu0 %v5626_v9  ;;  %v5686_v9 = vor.u32 %v7749_v0, %v5685_v63 }
  0x51   :  { %3417 = vmatpush.bf16.msrb.mxu1 %v5722_v13 }
  0x52   :  { %3431 = vmatpush.bf16.msrb.mxu2 %v5818_v14  ;;  %v5878_v14 = vor.u32 %v7797_v11, %v5877_v7 }
  0x53   :  { %361 = vmatmul.bf16.gmra.mxu0 %v7688_v45  ;;  %3445 = vmatpush.bf16.msrb.mxu3 %v5914_v17 }
  0x54   :  { %380 = vmatmul.bf16.gmra.mxu1 %v7688_v45  ;;  %3404 = vmatpush.bf16.msrb.mxu0 %v5614_v21 }
  0x55   :  { %399 = vmatmul.bf16.gmra.mxu2 %v7688_v45  ;;  %3418 = vmatpush.bf16.msrb.mxu1 %v5710_v24 }
  0x56   :  { %418 = vmatmul.bf16.gmra.mxu3 %v7688_v45  ;;  %3432 = vmatpush.bf16.msrb.mxu2 %v5806_v28  ;;  %v5890_v45 = vor.u32 %v7800_v43, %v5889_v42 }
  0x57   :  { %3446 = vmatpush.bf16.msrb.mxu3 %v5902_v30 }
  0x58   :  { %3405 = vmatpush.bf16.msrb.mxu0 %v5602_v36 }
  0x59   :  { %3419 = vmatpush.bf16.msrb.mxu1 %v5698_v40 }
  0x5a   :  { %3433 = vmatpush.bf16.msrb.mxu2 %v5794_v41 }
  0x5b   :  { %3447 = vmatpush.bf16.msrb.mxu3 %v5890_v45 }
  0x5c   :  { %3406 = vmatpush.bf16.msrb.mxu0 %v5590_v62 }
  0x5d   :  { %3420 = vmatpush.bf16.msrb.mxu1 %v5686_v9 }
  0x5e   :  { %3434 = vmatpush.bf16.msrb.mxu2 %v5782_v10 }
  0x5f   :  { %3448 = vmatpush.bf16.msrb.mxu3 %v5878_v14 }
  0xc0   :  { %v357_v44 = vpop.f32.mrf.mxu0 }
  0xc1   :  { %v358_v46 = vadd.f32 %v357_v44, %v8563_v31  ;;  %v376_v47 = vpop.f32.mrf.mxu1 }
  0xc2   :  { %v377_v48 = vadd.f32 %v376_v47, %v8565_v32 }
  0xc3   :  { %v424_v49 = vmax.f32 %v358_v46, 0.0 }
  0xc4   :  { %v425_v50 = vmax.f32 %v377_v48, 0.0 }
  0xc6   :  { %v440_v53 = vpack.c.bf16 %v425_v50, %v424_v49 }
  0xc8   :  { %v395_v54 = vpop.f32.mrf.mxu2  ;;  %v359_v57 = vpop.f32.mrf.mxu0  ;;  %v453_v2 = vunpack.c.h.b16 %v440_v53  ;;  %v452_v12 = vunpack.c.l.b16 %v440_v53 }
  0xc9   :  { %v396_v55 = vadd.f32 %v395_v54, %v8569_v51  ;;  %v414_v56 = vpop.f32.mrf.mxu3  ;;  %v378_v61 = vpop.f32.mrf.mxu1  ;;  %v360_v4 = vadd.f32 %v359_v57, %v8563_v31 }
  0xca   :  { %v415_v60 = vadd.f32 %v414_v56, %v8571_v52  ;;  %v379_v5 = vadd.f32 %v378_v61, %v8565_v32  ;;  %v461_v15 = vpack.c.b16 %v453_v2, %v453_v2  ;;  %v460_v19 = vpack.c.b16 %v452_v12, %v452_v12 }
  0xcb   :  { %v426_v3 = vmax.f32 %v396_v55, 0.0  ;;  %v428_v16 = vmax.f32 %v360_v4, 0.0 }
  0xcc   :  { %v427_v8 = vmax.f32 %v415_v60, 0.0  ;;  %v429_v17 = vmax.f32 %v379_v5, 0.0  ;;  %v498_v24 = vshll.u32 %v461_v15, 16  ;;  %v491_v29 = vshll.u32 %v460_v19, 16 }
  0xcd   :  { %v496_v30 = vshrl.u32 %v461_v15, 16  ;;  %v600_v36 = vrot.slane %v461_v15, 7  ;;  %v489_v41 = vshrl.u32 %v460_v19, 16 }
  0xce   :  { %v441_v13 = vpack.c.bf16 %v427_v8, %v426_v3  ;;  %v442_v26 = vpack.c.bf16 %v429_v17, %v428_v16  ;;  %v500_v35 = vrot.slane %v498_v24, 1  ;;  %v493_v42 = vrot.slane %v491_v29, 1 }
  0xcf   :  { %v630_v48 = vsel %vm628_vm0, %v460_v19, %v600_v36  ;;  %v665_v53 = vsel %vm9126_vm2, %v460_v19, %v600_v36  ;;  %v689_v60 = vsel %vm631_vm1, %v460_v19, %v600_v36  ;;  %vm9127_vm2 = vcmask 1045506  }
  0xd0   :  { %v454_v18 = vunpack.c.l.b16 %v441_v13  ;;  %v455_v20 = vunpack.c.h.b16 %v441_v13  ;;  %v397_v21 = vpop.f32.mrf.mxu2  ;;  %v472_v37 = vunpack.c.l.b16 %v442_v26  ;;  %v473_v38 = vunpack.c.h.b16 %v442_v26  ;;  %v362_v57 = vpop.f32.mrf.mxu0 }
  0xd1   :  { %v416_v22 = vpop.f32.mrf.mxu3  ;;  %v398_v27 = vadd.f32 %v397_v21, %v8569_v51  ;;  %v501_v47 = vor.u32 %v500_v35, %v496_v30  ;;  %v381_v58 = vpop.f32.mrf.mxu1  ;;  %v8585_v59 = vor.u32 %v493_v42, %v489_v41  ;;  %v363_v61 = vadd.f32 %v362_v57, %v8563_v31 }
  0xd2   :  { %v462_v23 = vpack.c.b16 %v454_v18, %v454_v18  ;;  %v463_v25 = vpack.c.b16 %v455_v20, %v455_v20  ;;  %v417_v28 = vadd.f32 %v416_v22, %v8571_v52  ;;  %v8580_v49 = vpack.c.b16 %v472_v37, %v472_v37 }
  0xd3   :  { %v430_v39 = vmax.f32 %v398_v27, 0.0  ;;  %v8582_v50 = vpack.c.b16 %v473_v38, %v473_v38  ;;  %v382_v62 = vadd.f32 %v381_v58, %v8565_v32  ;;  %v8592_v3 = vrot.slane %v501_v47, 7 }
  0xd4   :  { %v505_v33 = vshll.u32 %v462_v23, 16  ;;  %v512_v34 = vshll.u32 %v463_v25, 16  ;;  %v431_v40 = vmax.f32 %v417_v28, 0.0  ;;  %v601_v45 = vrot.slane %v462_v23, 6 }
  0xd5   :  { %v602_v46 = vrot.slane %v463_v25, 5  ;;  %v503_v54 = vshrl.u32 %v462_v23, 16  ;;  %v510_v55 = vshrl.u32 %v463_v25, 16  ;;  %v547_v5 = vshll.u32 %v8580_v49, 16 }
  0xd6   :  { %v507_v43 = vrot.slane %v505_v33, 1  ;;  %v514_v44 = vrot.slane %v512_v34, 1  ;;  %v443_v56 = vpack.c.bf16 %v431_v40, %v430_v39  ;;  %v554_v6 = vshll.u32 %v8582_v50, 16 }
  0xd7   :  { %v634_v1 = vsel %vm631_vm1, %v601_v45, %v602_v46  ;;  %v667_v2 = vsel %vm666_vm4, %v601_v45, %v602_v46  ;;  %v690_v4 = vsel %vm637_vm3, %v601_v45, %v602_v46  ;;  %v603_v7 = vrot.slane %v8580_v49, 4 }
  0xd8   :  { %v508_v63 = vor.u32 %v507_v43, %v503_v54  ;;  %v515_v0 = vor.u32 %v514_v44, %v510_v55  ;;  %v604_v8 = vrot.slane %v8582_v50, 3  ;;  %v474_v9 = vunpack.c.l.b16 %v443_v56  ;;  %v400_v23 = vpop.f32.mrf.mxu2  ;;  %v364_v47 = vpop.f32.mrf.mxu0 }
  0xd9   :  { %v475_v10 = vunpack.c.h.b16 %v443_v56  ;;  %v636_v11 = vsel %vm635_vm5, %v630_v48, %v634_v1  ;;  %v669_v12 = vsel %vm668_vm6, %v665_v53, %v667_v2  ;;  %v432_v13 = vmax.f32 %v363_v61, 0.0  ;;  %v419_v24 = vpop.f32.mrf.mxu3 }
  0xda   :  { %v433_v14 = vmax.f32 %v382_v62, 0.0  ;;  %v8601_v15 = vrot.slane %v508_v63, 6  ;;  %v609_v16 = vrot.slane %v515_v0, 5  ;;  %v482_v17 = vpack.c.b16 %v474_v9, %v474_v9  ;;  %v5769_v9 = vld [vmem:[#allocation8 + $0x180] sm:$0xf] }
  0xdb   :  { %v483_v18 = vpack.c.b16 %v475_v10, %v475_v10  ;;  %v692_v19 = vsel %vm691_vm7, %v689_v60, %v690_v4  ;;  %v545_v20 = vshrl.u32 %v8580_v49, 16  ;;  %v549_v21 = vrot.slane %v547_v5, 1  ;;  %v5577_v5 = vld [vmem:[#allocation8] sm:$0xf]  ;;  %v7770_v10 = vld [vmem:[#allocation8 + $0x188] sm:$0xf0] }
  0xdc   :  { %v556_v22 = vrot.slane %v554_v6, 1  ;;  %v640_v25 = vsel %vm637_vm3, %v603_v7, %v604_v8  ;;  %v671_v26 = vsel %vm670_vm8, %v603_v7, %v604_v8  ;;  %v561_v27 = vshll.u32 %v482_v17, 16  ;;  %v7722_v6 = vld [vmem:[#allocation8 + $0x8] sm:$0xf0] }
  0xdd   :  { %v568_v28 = vshll.u32 %v483_v18, 16  ;;  %v693_v29 = vsel %vm641_vm9, %v603_v7, %v604_v8  ;;  %v605_v30 = vrot.slane %v482_v17, 2  ;;  %v606_v33 = vrot.slane %v483_v18, 1  ;;  %v5673_v7 = vld [vmem:[#allocation8 + $0xc0] sm:$0xf] }
  0xde   :  { %v444_v34 = vpack.c.bf16 %v433_v14, %v432_v13  ;;  %v681_v35 = vsel %vm666_vm4, %v8601_v15, %v609_v16  ;;  %v702_v36 = vsel %vm637_vm3, %v8601_v15, %v609_v16  ;;  %v401_v37 = vadd.f32 %v400_v23, %v8569_v51  ;;  %v7746_v8 = vld [vmem:[#allocation8 + $0xc8] sm:$0xf0]  ;;  %v383_v14 = vpop.f32.mrf.mxu1  ;;  %v6045_v23 = vld [vmem:[#allocation8 + $0x3a8] sm:$0xf] }
  0xdf   :  { %v420_v38 = vadd.f32 %v419_v24, %v8571_v52  ;;  %v644_v39 = vsel %vm641_vm9, %v605_v30, %v606_v33  ;;  %v673_v40 = vsel %vm672_vm10, %v606_v33, %v605_v30  ;;  %v694_v41 = vsel %vm628_vm0, %v605_v30, %v606_v33  ;;  %v7839_v24 = vld [vmem:[#allocation8 + $0x3b0] sm:$0xf0] }
  0xe0   :  { %v456_v42 = vunpack.c.l.b16 %v444_v34  ;;  %v563_v43 = vrot.slane %v561_v27, 1  ;;  %v570_v44 = vrot.slane %v568_v28, 1  ;;  %v646_v45 = vsel %vm645_vm11, %v640_v25, %v644_v39  ;;  %v6141_v25 = vld [vmem:[#allocation8 + $0x468] sm:$0xf] }
  0xe1   :  { %v675_v46 = vsel %vm674_vm12, %v671_v26, %v673_v40  ;;  %v648_v48 = vsel %vm647_vm13, %v636_v11, %v646_v45  ;;  %v696_v53 = vsel %vm695_vm15, %v694_v41, %v693_v29  ;;  %v457_v54 = vunpack.c.h.b16 %v444_v34  ;;  %v5865_v11 = vld [vmem:[#allocation8 + $0x240] sm:$0xf]  ;;  %v7863_v29 = vld [vmem:[#allocation8 + $0x470] sm:$0xf0]  ;;  %v6237_v34 = vld [vmem:[#allocation8 + $0x528] sm:$0xf] }
  0xe2   :  { %v677_v49 = vsel %vm676_vm14, %v669_v12, %v675_v46  ;;  %v559_v55 = vshrl.u32 %v482_v17, 16  ;;  %v566_v56 = vshrl.u32 %v483_v18, 16  ;;  %v698_v58 = vsel %vm9127_vm2, %v692_v19, %v696_v53  ;;  %1295 = vst [vmem:[#allocation1] ss:$9 sm:$0xff] %v648_v48  ;;  %v7794_v17 = vld [vmem:[#allocation8 + $0x248] sm:$0xf0]  ;;  %v402_v48 = vpop.f32.mrf.mxu2 }
  0xe3   :  { %v679_v57 = vrot.slane %v677_v49, 1  ;;  %v550_v60 = vor.u32 %v549_v21, %v545_v20  ;;  %v700_v61 = vrot.slane %v698_v58, 2  ;;  %v8623_v62 = vpack.c.b16 %v456_v42, %v456_v42 }
  0xe4   :  { %v365_v63 = vadd.f32 %v364_v47, %v8563_v31  ;;  %v564_v0 = vor.u32 %v563_v43, %v559_v55  ;;  %v571_v1 = vor.u32 %v570_v44, %v566_v56  ;;  %v434_v2 = vmax.f32 %v401_v37, 0.0  ;;  %v6333_v43 = vld [vmem:[#allocation8 + $0x5e8] sm:$0xf]  ;;  %v7911_v44 = vld [vmem:[#allocation8 + $0x5f0] sm:$0xf0] }
  0xe5   :  { %1298 = vst [vmem:[#allocation1 + $0x1] ss:$9 sm:$0xff] %v679_v57  ;;  %v435_v4 = vmax.f32 %v420_v38, 0.0  ;;  %vm9128_vm2 = vcmask 1041409   ;;  %v701_v31 = vsel %vm631_vm1, %v8585_v59, %v8592_v3  ;;  %v552_v13 = vshrl.u32 %v8582_v50, 16 }
  0xe6   :  { %v680_v12 = vsel %vm9128_vm2, %v8585_v59, %v8592_v3  ;;  %1301 = vst [vmem:[#allocation1 + $0x2] ss:$9 sm:$0xff] %v700_v61  ;;  %v8635_v18 = vsel %vm631_vm1, %v8601_v15, %v609_v16  ;;  %v8641_v20 = vsel %vm691_vm7, %v701_v31, %v702_v36  ;;  %v8643_v21 = vpack.c.b16 %v457_v54, %v457_v54  ;;  %v421_v61 = vpop.f32.mrf.mxu3  ;;  %v6129_v31 = vld [vmem:[#allocation8 + $0x450] sm:$0xf] }
  0xe7   :  { %v8638_v19 = vsel %vm668_vm6, %v680_v12, %v681_v35  ;;  %v557_v26 = vor.u32 %v556_v22, %v552_v13  ;;  %v8645_v50 = vrot.slane %v550_v60, 4  ;;  %v519_v27 = vshll.u32 %v8623_v62, 16  ;;  %v7887_v35 = vld [vmem:[#allocation8 + $0x530] sm:$0xf0]  ;;  %v7860_v13 = vld [vmem:[#allocation8 + $0x458] sm:$0xf0] }
  0xe8   :  { %v436_v28 = vmax.f32 %v365_v63, 0.0  ;;  %v8648_v15 = vrot.slane %v564_v0, 2  ;;  %v8650_v16 = vrot.slane %v571_v1, 1  ;;  %v445_v30 = vpack.c.bf16 %v435_v4, %v434_v2 }
  0xe9   :  { %v384_v33 = vadd.f32 %v383_v14, %v8565_v32  ;;  %v5578_v36 = vor.u32 %v7722_v6, %v5577_v5  ;;  %v5674_v37 = vor.u32 %v7746_v8, %v5673_v7  ;;  %v5770_v38 = vor.u32 %v7770_v10, %v5769_v9  ;;  %v6033_v8 = vld [vmem:[#allocation8 + $0x390] sm:$0xf]  ;;  %v7836_v9 = vld [vmem:[#allocation8 + $0x398] sm:$0xf0] }
  0xea   :  { %v5866_v39 = vor.u32 %v7794_v17, %v5865_v11  ;;  %v526_v22 = vshll.u32 %v8643_v21, 16  ;;  %v458_v40 = vunpack.c.l.b16 %v445_v30  ;;  %v459_v41 = vunpack.c.h.b16 %v445_v30 }
  0xeb   :  { %v437_v42 = vmax.f32 %v384_v33, 0.0  ;;  %v8654_v45 = vrot.slane %v557_v26, 3  ;;  %3407 = vmatpush.bf16.msrb.mxu0 %v5578_v36  ;;  %3421 = vmatpush.bf16.msrb.mxu1 %v5674_v37  ;;  %v6046_v46 = vor.u32 %v7839_v24, %v6045_v23  ;;  %v6142_v47 = vor.u32 %v7863_v29, %v6141_v25  ;;  %v6225_v24 = vld [vmem:[#allocation8 + $0x510] sm:$0xf]  ;;  %v7884_v25 = vld [vmem:[#allocation8 + $0x518] sm:$0xf0] }
  0xec   :  { %v6238_v32 = vor.u32 %v7887_v35, %v6237_v34  ;;  %v684_v49 = vsel %vm672_vm10, %v8650_v16, %v8648_v15  ;;  %v517_v53 = vshrl.u32 %v8623_v62, 16  ;;  %v521_v54 = vrot.slane %v519_v27, 1  ;;  %3435 = vmatpush.bf16.msrb.mxu2 %v5770_v38  ;;  %3449 = vmatpush.bf16.msrb.mxu3 %v5866_v39 }
  0xed   :  { %v466_v55 = vpack.c.b16 %v458_v40, %v458_v40  ;;  %v524_v56 = vshrl.u32 %v8643_v21, 16  ;;  %v8661_v57 = vpack.c.b16 %v459_v41, %v459_v41  ;;  %v446_v58 = vpack.c.bf16 %v437_v42, %v436_v28  ;;  %v6321_v42 = vld [vmem:[#allocation8 + $0x5d0] sm:$0xf] }
  0xee   :  { %v6334_v60 = vor.u32 %v7911_v44, %v6333_v43  ;;  %v528_v63 = vrot.slane %v526_v22, 1  ;;  %v614_v0 = vrot.slane %v8643_v21, 7  ;;  %v403_v2 = vadd.f32 %v402_v48, %v8569_v51  ;;  %v7908_v43 = vld [vmem:[#allocation8 + $0x5d8] sm:$0xf0]  ;;  %v6021_v48 = vld [vmem:[#allocation8 + $0x378] sm:$0xf] }
  0xef   :  { %3456 = vmatpush.bf16.msra.mxu0 %v6046_v46  ;;  %v533_v1 = vshll.u32 %v466_v55, 16  ;;  %3470 = vmatpush.bf16.msra.mxu1 %v6142_v47  ;;  %v683_v4 = vsel %vm670_vm8, %v8645_v50, %v8654_v45  ;;  %v8671_v5 = vsel %vm641_vm9, %v8645_v50, %v8654_v45  ;;  %v540_v6 = vshll.u32 %v8661_v57, 16 }
  0xf0   :  { %3484 = vmatpush.bf16.msra.mxu2 %v6238_v32  ;;  %v476_v7 = vunpack.c.l.b16 %v446_v58  ;;  %3498 = vmatpush.bf16.msra.mxu3 %v6334_v60  ;;  %v615_v10 = vrot.slane %v466_v55, 6  ;;  %v616_v11 = vrot.slane %v8661_v57, 5  ;;  %v477_v12 = vunpack.c.h.b16 %v446_v58 }
  0xf1   :  { %v422_v51 = vadd.f32 %v421_v61, %v8571_v52  ;;  %v8677_v14 = vsel %vm674_vm12, %v683_v4, %v684_v49  ;;  %v8682_v17 = vsel %vm628_vm0, %v8648_v15, %v8650_v16  ;;  %v8684_v21 = vor.u32 %v521_v54, %v517_v53  ;;  %v7833_v49 = vld [vmem:[#allocation8 + $0x380] sm:$0xf0]  ;;  %v6117_v53 = vld [vmem:[#allocation8 + $0x438] sm:$0xf] }
  0xf2   :  { %v535_v23 = vrot.slane %v533_v1, 1  ;;  %v529_v26 = vor.u32 %v528_v63, %v524_v56  ;;  %v711_v27 = vsel %vm628_vm0, %v8623_v62, %v614_v0  ;;  %v531_v52 = vshrl.u32 %v466_v55, 16  ;;  %v7857_v54 = vld [vmem:[#allocation8 + $0x440] sm:$0xf0]  ;;  %v6213_v55 = vld [vmem:[#allocation8 + $0x4f8] sm:$0xf] }
  0xf3   :  { %v438_v28 = vmax.f32 %v403_v2, 0.0  ;;  %v542_v29 = vrot.slane %v540_v6, 1  ;;  %v484_v30 = vpack.c.b16 %v476_v7, %v476_v7  ;;  %v8688_v33 = vpack.c.b16 %v477_v12, %v477_v12  ;;  %v7881_v56 = vld [vmem:[#allocation8 + $0x500] sm:$0xf0]  ;;  %v6009_v7 = vld [vmem:[#allocation8 + $0x360] sm:$0xf] }
  0xf4   :  { %v439_v34 = vmax.f32 %v422_v51, 0.0  ;;  %v714_v35 = vsel %vm631_vm1, %v615_v10, %v616_v11  ;;  %v6034_v36 = vor.u32 %v7836_v9, %v6033_v8  ;;  %v6130_v37 = vor.u32 %v7860_v13, %v6129_v31  ;;  %v7830_v8 = vld [vmem:[#allocation8 + $0x368] sm:$0xf0]  ;;  %v6105_v9 = vld [vmem:[#allocation8 + $0x420] sm:$0xf] }
  0xf5   :  { %v6226_v38 = vor.u32 %v7884_v25, %v6225_v24  ;;  %v536_v39 = vor.u32 %v535_v23, %v531_v52  ;;  %v740_v22 = vsel %vm666_vm4, %v615_v10, %v616_v11  ;;  %v758_v40 = vsel %vm637_vm3, %v615_v10, %v616_v11  ;;  %v7854_v51 = vld [vmem:[#allocation8 + $0x428] sm:$0xf0]  ;;  %v6201_v25 = vld [vmem:[#allocation8 + $0x4e0] sm:$0xf] }
  0xf6   :  { %v575_v41 = vshll.u32 %v484_v30, 16  ;;  %v739_v44 = vsel %vm9128_vm2, %v8623_v62, %v614_v0  ;;  %v757_v46 = vsel %vm631_vm1, %v8623_v62, %v614_v0  ;;  %v582_v47 = vshll.u32 %v8688_v33, 16  ;;  %3457 = vmatpush.bf16.msra.mxu0 %v6034_v36  ;;  %3471 = vmatpush.bf16.msra.mxu1 %v6130_v37  ;;  %v6309_v62 = vld [vmem:[#allocation8 + $0x5b8] sm:$0xf]  ;;  %v7905_v0 = vld [vmem:[#allocation8 + $0x5c0] sm:$0xf0] }
  0xf7   :  { %v447_v32 = vpack.c.bf16 %v439_v34, %v438_v28  ;;  %v8698_v58 = vrot.slane %v529_v26, 7  ;;  %v538_v60 = vshrl.u32 %v8661_v57, 16  ;;  %v8702_v61 = vsel %vm635_vm5, %v711_v27, %v714_v35  ;;  %3485 = vmatpush.bf16.msra.mxu2 %v6226_v38  ;;  %v7878_v26 = vld [vmem:[#allocation8 + $0x4e8] sm:$0xf0]  ;;  %v6297_v35 = vld [vmem:[#allocation8 + $0x5a0] sm:$0xf] }
  0xf8   :  { %v577_v63 = vrot.slane %v575_v41, 1  ;;  %v8705_v1 = vsel %vm668_vm6, %v739_v44, %v740_v22  ;;  %v8708_v2 = vsel %vm691_vm7, %v757_v46, %v758_v40  ;;  %v617_v4 = vrot.slane %v484_v30, 4  ;;  %v7902_v36 = vld [vmem:[#allocation8 + $0x5a8] sm:$0xf0]  ;;  %v8718_v37 = vld [vmem:[#allocation8 + $0x350] sm:$0xf0] }
  0xf9   :  { %v618_v6 = vrot.slane %v8688_v33, 3  ;;  %v543_v57 = vor.u32 %v542_v29, %v538_v60  ;;  %v8711_v10 = vrot.slane %v536_v39, 6  ;;  %v573_v11 = vshrl.u32 %v484_v30, 16  ;;  %v8716_v29 = vld [vmem:[#allocation8 + $0x348] sm:$0xf] }
  0xfa   :  { %v580_v12 = vshrl.u32 %v8688_v33, 16  ;;  %v584_v31 = vrot.slane %v582_v47, 1  ;;  %v478_v13 = vunpack.c.l.b16 %v447_v32  ;;  %v479_v23 = vunpack.c.h.b16 %v447_v32  ;;  %v8721_v22 = vld [vmem:[#allocation8 + $0x408] sm:$0xf]  ;;  %v7851_v40 = vld [vmem:[#allocation8 + $0x410] sm:$0xf0] }
  0xfb   :  { %v6322_v24 = vor.u32 %v7908_v43, %v6321_v42  ;;  %v8714_v27 = vor.u32 %v577_v63, %v573_v11  ;;  %v6022_v52 = vor.u32 %v7833_v49, %v6021_v48  ;;  %v6118_v28 = vor.u32 %v7857_v54, %v6117_v53  ;;  %v8723_v41 = vld [vmem:[#allocation8 + $0x4c8] sm:$0xf]  ;;  %v7875_v47 = vld [vmem:[#allocation8 + $0x4d0] sm:$0xf0] }
  0xfc   :  { %v6214_v34 = vor.u32 %v7881_v56, %v6213_v55  ;;  %v718_v30 = vsel %vm637_vm3, %v617_v4, %v618_v6  ;;  %v486_v33 = vpack.c.b16 %v478_v13, %v478_v13  ;;  %v487_v38 = vpack.c.b16 %v479_v23, %v479_v23  ;;  %v8728_v32 = vld [vmem:[#allocation8 + $0x588] sm:$0xf]  ;;  %v8731_v55 = vld [vmem:[#allocation8 + $0x590] sm:$0xf0]  ;;  %v8733_v56 = vld [vmem:[#allocation8 + $0x330] sm:$0xf] }
  0xfd   :  { %3499 = vmatpush.bf16.msra.mxu3 %v6322_v24  ;;  %v6310_v39 = vor.u32 %v7905_v0, %v6309_v62  ;;  %v8725_v42 = vrot.slane %v543_v57, 5  ;;  %v742_v43 = vsel %vm670_vm8, %v617_v4, %v618_v6  ;;  %3458 = vmatpush.bf16.msra.mxu0 %v6022_v52  ;;  %v6010_v44 = vor.u32 %v7830_v8, %v6009_v7  ;;  %v7824_v57 = vld [vmem:[#allocation8 + $0x338] sm:$0xf0]  ;;  %v6177_v52 = vld [vmem:[#allocation8 + $0x4b0] sm:$0xf] }
  0xfe   :  { %3472 = vmatpush.bf16.msra.mxu1 %v6118_v28  ;;  %v6106_v46 = vor.u32 %v7854_v51, %v6105_v9  ;;  %v585_v48 = vor.u32 %v584_v31, %v580_v12  ;;  %v760_v49 = vsel %vm641_vm9, %v617_v4, %v618_v6  ;;  %v587_v53 = vshrl.u32 %v486_v33, 16  ;;  %3486 = vmatpush.bf16.msra.mxu2 %v6214_v34  ;;  %v6081_v31 = vld [vmem:[#allocation8 + $0x3f0] sm:$0xf]  ;;  %v7848_v13 = vld [vmem:[#allocation8 + $0x3f8] sm:$0xf0] }
  0xff   :  { %v6202_v54 = vor.u32 %v7878_v26, %v6201_v25  ;;  %v589_v60 = vshll.u32 %v486_v33, 16  ;;  %v594_v63 = vshrl.u32 %v487_v38, 16  ;;  %v596_v62 = vshll.u32 %v487_v38, 16 }
 0x100   :  { %v619_v0 = vrot.slane %v486_v33, 2  ;;  %v620_v7 = vrot.slane %v487_v38, 1  ;;  %v6298_v8 = vor.u32 %v7902_v36, %v6297_v35  ;;  %v5998_v9 = vor.u32 %v8718_v37, %v8716_v29  ;;  %v7872_v29 = vld [vmem:[#allocation8 + $0x4b8] sm:$0xf0]  ;;  %v6273_v37 = vld [vmem:[#allocation8 + $0x570] sm:$0xf] }
 0x101   :  { %3500 = vmatpush.bf16.msra.mxu3 %v6310_v39  ;;  %v6094_v4 = vor.u32 %v7851_v40, %v8721_v22  ;;  %v591_v6 = vrot.slane %v589_v60, 1  ;;  %v598_v11 = vrot.slane %v596_v62, 1  ;;  %3459 = vmatpush.bf16.msra.mxu0 %v6010_v44  ;;  %v6190_v12 = vor.u32 %v7875_v47, %v8723_v41  ;;  %v7896_v33 = vld [vmem:[#allocation8 + $0x578] sm:$0xf0]  ;;  %v5973_v41 = vld [vmem:[#allocation8 + $0x318] sm:$0xf] }
 0x102   :  { %3473 = vmatpush.bf16.msra.mxu1 %v6106_v46  ;;  %v6286_v51 = vor.u32 %v8731_v55, %v8728_v32  ;;  %v721_v23 = vsel %vm641_vm9, %v619_v0, %v620_v7  ;;  %v743_v24 = vsel %vm672_vm10, %v620_v7, %v619_v0  ;;  %v761_v25 = vsel %vm628_vm0, %v619_v0, %v620_v7  ;;  %v7821_v44 = vld [vmem:[#allocation8 + $0x320] sm:$0xf0]  ;;  %v6069_v46 = vld [vmem:[#allocation8 + $0x3d8] sm:$0xf] }
 0x103   :  { %3487 = vmatpush.bf16.msra.mxu2 %v6202_v54  ;;  %v5986_v26 = vor.u32 %v7824_v57, %v8733_v56  ;;  %v592_v28 = vor.u32 %v591_v6, %v587_v53  ;;  %v599_v34 = vor.u32 %v598_v11, %v594_v63  ;;  %v722_v35 = vsel %vm645_vm11, %v718_v30, %v721_v23  ;;  %v7845_v54 = vld [vmem:[#allocation8 + $0x3e0] sm:$0xf0]  ;;  %v6261_v63 = vld [vmem:[#allocation8 + $0x558] sm:$0xf]  ;;  %v8789_v23 = vld [vmem:[#allocation8 + $0x540] sm:$0xf] }
 0x104   :  { %v744_v36 = vsel %vm674_vm12, %v742_v43, %v743_v24  ;;  %v723_v38 = vsel %vm647_vm13, %v8702_v61, %v722_v35  ;;  %v762_v22 = vsel %vm695_vm15, %v761_v25, %v760_v49  ;;  %v6082_v40 = vor.u32 %v7848_v13, %v6081_v31  ;;  %v7869_v60 = vld [vmem:[#allocation8 + $0x4a0] sm:$0xf0]  ;;  %v6153_v31 = vld [vmem:[#allocation8 + $0x480] sm:$0xf]  ;;  %v7866_v13 = vld [vmem:[#allocation8 + $0x488] sm:$0xf0] }
 0x105   :  { %v745_v39 = vsel %vm676_vm14, %v8705_v1, %v744_v36  ;;  %3501 = vmatpush.bf16.msra.mxu3 %v6298_v8  ;;  %v626_v47 = vrot.slane %v592_v28, 2  ;;  %v627_v30 = vrot.slane %v599_v34, 1  ;;  %vm9129_vm2 = vcmask 1045506   ;;  %1303 = vst [vmem:[#allocation1 + $0x3] ss:$9 sm:$0xff] %v723_v38  ;;  %3460 = vmatpush.bf16.msra.mxu0 %v5998_v9 }
 0x106   :  { %v747_v32 = vrot.slane %v745_v39, 1  ;;  %v763_v43 = vsel %vm9129_vm2, %v8708_v2, %v762_v22  ;;  %3474 = vmatpush.bf16.msra.mxu1 %v6094_v4  ;;  %v624_v61 = vrot.slane %v8714_v27, 4  ;;  %v625_v53 = vrot.slane %v585_v48, 3  ;;  %v6165_v48 = vld [vmem:[#allocation8 + $0x498] sm:$0xf] }
 0x107   :  { %v765_v1 = vrot.slane %v763_v43, 2  ;;  %3488 = vmatpush.bf16.msra.mxu2 %v6190_v12  ;;  %v6178_v49 = vor.u32 %v7872_v29, %v6177_v52  ;;  %v658_v55 = vsel %vm637_vm3, %v8645_v50, %v8654_v45  ;;  %v661_v56 = vsel %vm641_vm9, %v8648_v15, %v8650_v16  ;;  %v7818_v8 = vld [vmem:[#allocation8 + $0x308] sm:$0xf0]  ;;  %v6057_v9 = vld [vmem:[#allocation8 + $0x3c0] sm:$0xf] }
 0x108   :  { %v8764_v2 = vsel %vm676_vm14, %v8638_v19, %v8677_v14  ;;  %v706_v27 = vsel %vm695_vm15, %v8682_v17, %v8671_v5  ;;  %1306 = vst [vmem:[#allocation1 + $0x4] ss:$9 sm:$0xff] %v747_v32  ;;  %v749_v50 = vsel %vm666_vm4, %v8711_v10, %v8725_v42  ;;  %v752_v45 = vsel %vm672_vm10, %v627_v30, %v626_v47  ;;  %v7893_v5 = vld [vmem:[#allocation8 + $0x560] sm:$0xf0]  ;;  %v8774_v17 = vld [vmem:[#allocation8 + $0x300] sm:$0xf] }
 0x109   :  { %1309 = vst [vmem:[#allocation1 + $0x5] ss:$9 sm:$0xff] %v765_v1  ;;  %3502 = vmatpush.bf16.msra.mxu3 %v6286_v51  ;;  %v6274_v15 = vor.u32 %v7896_v33, %v6273_v37  ;;  %v770_v16 = vsel %vm628_vm0, %v626_v47, %v627_v30  ;;  %3461 = vmatpush.bf16.msra.mxu0 %v5986_v26  ;;  %vm9130_vm2 = vcmask 1041409   ;;  %v7842_v4 = vld [vmem:[#allocation8 + $0x3c8] sm:$0xf0] }
 0x10a   :  { %3475 = vmatpush.bf16.msra.mxu1 %v6082_v40  ;;  %v5974_v19 = vor.u32 %v7821_v44, %v5973_v41  ;;  %v6070_v14 = vor.u32 %v7845_v54, %v6069_v46  ;;  %v748_v62 = vsel %vm9130_vm2, %v8684_v21, %v8698_v58  ;;  %v766_v0 = vsel %vm631_vm1, %v8684_v21, %v8698_v58  ;;  %v8796_v28 = vld [vmem:[#allocation8 + $0x548] sm:$0xf0]  ;;  %v8798_v34 = vld [vmem:[#allocation8 + $0x6a8] sm:$0xf]  ;;  %v8800_v35 = vld [vmem:[#allocation8 + $0x6b0] sm:$0xf0] }
 0x10b   :  { %v751_v57 = vsel %vm670_vm8, %v624_v61, %v625_v53  ;;  %3489 = vmatpush.bf16.msra.mxu2 %v6178_v49  ;;  %v6166_v7 = vor.u32 %v7869_v60, %v6165_v48  ;;  %v767_v6 = vsel %vm637_vm3, %v8711_v10, %v8725_v42  ;;  %v769_v11 = vsel %vm641_vm9, %v624_v61, %v625_v53  ;;  %v6621_v33 = vld [vmem:[#allocation8 + $0x828] sm:$0xf]  ;;  %v7983_v41 = vld [vmem:[#allocation8 + $0x830] sm:$0xf0]  ;;  %v6417_v49 = vld [vmem:[#allocation8 + $0x690] sm:$0xf] }
 0x10c   :  { %v736_v12 = vsel %vm641_vm9, %v626_v47, %v627_v30  ;;  %v753_v51 = vsel %vm674_vm12, %v751_v57, %v752_v45  ;;  %v729_v24 = vsel %vm631_vm1, %v8711_v10, %v8725_v42  ;;  %v750_v25 = vsel %vm668_vm6, %v748_v62, %v749_v50  ;;  %v6525_v10 = vld [vmem:[#allocation8 + $0x768] sm:$0xf]  ;;  %v7959_v42 = vld [vmem:[#allocation8 + $0x770] sm:$0xf0]  ;;  %v7932_v54 = vld [vmem:[#allocation8 + $0x698] sm:$0xf0] }
 0x10d   :  { %v771_v26 = vsel %vm695_vm15, %v770_v16, %v769_v11  ;;  %3503 = vmatpush.bf16.msra.mxu3 %v6274_v15  ;;  %v6262_v52 = vor.u32 %v7893_v5, %v6261_v63  ;;  %v733_v36 = vsel %vm637_vm3, %v624_v61, %v625_v53  ;;  %3462 = vmatpush.bf16.msra.mxu0 %v5974_v19  ;;  %v6717_v44 = vld [vmem:[#allocation8 + $0x8e8] sm:$0xf]  ;;  %v8007_v46 = vld [vmem:[#allocation8 + $0x8f0] sm:$0xf0]  ;;  %vm9131_vm9 = vcmask 1045506  }
 0x10e   :  { %3476 = vmatpush.bf16.msra.mxu1 %v6070_v14  ;;  %v5962_v29 = vor.u32 %v7818_v8, %v8774_v17  ;;  %v6058_v37 = vor.u32 %v7842_v4, %v6057_v9  ;;  %v768_v38 = vsel %vm691_vm7, %v766_v0, %v767_v6  ;;  %v737_v39 = vsel %vm645_vm11, %v733_v36, %v736_v12  ;;  %vm9132_vm10 = vmmov %vm9131_vm9  ;;  %v6513_v60 = vld [vmem:[#allocation8 + $0x750] sm:$0xf]  ;;  %v7956_v50 = vld [vmem:[#allocation8 + $0x758] sm:$0xf0] }
 0x10f   :  { %v754_v22 = vsel %vm676_vm14, %v750_v25, %v753_v51  ;;  %3490 = vmatpush.bf16.msra.mxu2 %v6166_v7  ;;  %v6154_v40 = vor.u32 %v7866_v13, %v6153_v31  ;;  %v662_v47 = vsel %vm645_vm11, %v658_v55, %v661_v56  ;;  %v707_v30 = vsel %vm9131_vm9, %v8641_v20, %v706_v27  ;;  %v6609_v63 = vld [vmem:[#allocation8 + $0x810] sm:$0xf]  ;;  %v7980_v57 = vld [vmem:[#allocation8 + $0x818] sm:$0xf0]  ;;  %v6405_v4 = vld [vmem:[#allocation8 + $0x678] sm:$0xf] }
 0x110   :  { %v726_v32 = vsel %vm628_vm0, %v8684_v21, %v8698_v58  ;;  %v772_v43 = vsel %vm9132_vm10, %v768_v38, %v771_v26  ;;  %v8814_v61 = vld [vmem:[#allocation1] sm:$0xff]  ;;  %v8816_v53 = vld [vmem:[#allocation1 + $0x9] sm:$0xff]  ;;  %v8818_v1 = vld [vmem:[#allocation1 + $0x12] sm:$0xff]  ;;  %v688_v48 = vrot.slane %v8764_v2, 1  ;;  %v6250_v21 = vor.u32 %v8796_v28, %v8789_v23 }
 0x111   :  { %v730_v55 = vsel %vm635_vm5, %v726_v32, %v729_v24  ;;  %v8822_v56 = vld [vmem:[#allocation1 + $0x1b] sm:$0xff]  ;;  %v8824_v20 = vld [vmem:[#allocation1 + $0x24] sm:$0xff]  ;;  %v8826_v27 = vld [vmem:[#allocation1 + $0x2d] sm:$0xff]  ;;  %3504 = vmatpush.bf16.msra.mxu3 %v6262_v52  ;;  %3408 = vmatmul.bf16.vlgmr.msrb.gmra.mxu0 %v8814_v61  ;;  %v6430_v58 = vor.u32 %v8800_v35, %v8798_v34  ;;  %v756_v45 = vrot.slane %v754_v22, 1  ;;  %v6526_v19 = vor.u32 %v7959_v42, %v6525_v10 }
 0x112   :  { %v738_v2 = vsel %vm647_vm13, %v730_v55, %v737_v39  ;;  %v8834_v15 = vld [vmem:[#allocation1 + $0x36] sm:$0xff]  ;;  %v8836_v16 = vld [vmem:[#allocation1 + $0x3f] sm:$0xff]  ;;  %3463 = vmatpush.bf16.msra.mxu0 %v5962_v29  ;;  %3477 = vmatpush.bf16.msra.mxu1 %v6058_v37  ;;  %v6622_v14 = vor.u32 %v7983_v41, %v6621_v33  ;;  %v651_v5 = vsel %vm628_vm0, %v8585_v59, %v8592_v3  ;;  %v709_v17 = vrot.slane %v707_v30, 2  ;;  %v6705_v8 = vld [vmem:[#allocation8 + $0x8d0] sm:$0xf] }
 0x113   :  { %v774_v62 = vrot.slane %v772_v43, 2  ;;  %1323 = vst [vmem:[#allocation1 + $0x3] ss:$9 sm:$0xff] %v738_v2  ;;  %3491 = vmatpush.bf16.msra.mxu2 %v6154_v40  ;;  %3422 = vmatmul.bf16.vlgmr.msrb.gmra.mxu1 %v8816_v53  ;;  %v6718_v0 = vor.u32 %v8007_v46, %v6717_v44  ;;  %v655_v7 = vsel %vm635_vm5, %v651_v5, %v8635_v18  ;;  %v8004_v9 = vld [vmem:[#allocation8 + $0x8d8] sm:$0xf0]  ;;  %vm4111_vm12 = vcmask 1044483   ;;  %vm9133_vm14 = vmmov %vm9130_vm2 }
 0x114   :  { %1325 = vst [vmem:[#allocation1 + $0x4] ss:$9 sm:$0xff] %v756_v45  ;;  %3436 = vmatmul.bf16.vlgmr.msrb.gmra.mxu2 %v8818_v1  ;;  %3450 = vmatmul.bf16.vlgmr.msrb.gmra.mxu3 %v8822_v56  ;;  %v663_v59 = vsel %vm647_vm13, %v655_v7, %v662_v47  ;;  %v6418_v3 = vor.u32 %v7932_v54, %v6417_v49  ;;  %v7929_v6 = vld [vmem:[#allocation8 + $0x680] sm:$0xf0]  ;;  %v6501_v12 = vld [vmem:[#allocation8 + $0x738] sm:$0xf] }
 0x115   :  { %1327 = vst [vmem:[#allocation1 + $0x5] ss:$9 sm:$0xff] %v774_v62  ;;  %3505 = vmatpush.bf16.msra.mxu3 %v6250_v21  ;;  %v6514_v11 = vor.u32 %v7956_v50, %v6513_v60  ;;  %v6610_v18 = vor.u32 %v7980_v57, %v6609_v63  ;;  %v7953_v51 = vld [vmem:[#allocation8 + $0x740] sm:$0xf0]  ;;  %v6706_v31 = vor.u32 %v8004_v9, %v6705_v8  ;;  %v6597_v13 = vld [vmem:[#allocation8 + $0x7f8] sm:$0xf] }
 0x116   :  { %3512 = vmatpush.bf16.msrb.mxu0 %v6430_v58  ;;  %1318 = vst [vmem:[#allocation1] ss:$9 sm:$0xff] %v663_v59  ;;  %3526 = vmatpush.bf16.msrb.mxu1 %v6526_v19  ;;  %v7977_v23 = vld [vmem:[#allocation8 + $0x800] sm:$0xf0]  ;;  %v6693_v24 = vld [vmem:[#allocation8 + $0x8b8] sm:$0xf]  ;;  %v6406_v26 = vor.u32 %v7929_v6, %v6405_v4  ;;  %v6502_v52 = vor.u32 %v7953_v51, %v6501_v12 }
 0x117   :  { %3540 = vmatpush.bf16.msrb.mxu2 %v6622_v14  ;;  %1320 = vst [vmem:[#allocation1 + $0x1] ss:$9 sm:$0xff] %v688_v48  ;;  %v8001_v25 = vld [vmem:[#allocation8 + $0x8c0] sm:$0xf0]  ;;  %v6598_v28 = vor.u32 %v7977_v23, %v6597_v13  ;;  %v6393_v34 = vld [vmem:[#allocation8 + $0x660] sm:$0xf] }
 0x118   :  { %1322 = vst [vmem:[#allocation1 + $0x2] ss:$9 sm:$0xff] %v709_v17  ;;  %v7926_v35 = vld [vmem:[#allocation8 + $0x668] sm:$0xf0]  ;;  %v6489_v36 = vld [vmem:[#allocation8 + $0x720] sm:$0xf]  ;;  %v6694_v29 = vor.u32 %v8001_v25, %v6693_v24 }
 0x119   :  { %3554 = vmatpush.bf16.msrb.mxu3 %v6718_v0  ;;  %v7950_v37 = vld [vmem:[#allocation8 + $0x728] sm:$0xf0]  ;;  %v6585_v10 = vld [vmem:[#allocation8 + $0x7e0] sm:$0xf]  ;;  %v6394_v39 = vor.u32 %v7926_v35, %v6393_v34  ;;  %v6381_v41 = vld [vmem:[#allocation8 + $0x648] sm:$0xf] }
 0x11a   :  { %3513 = vmatpush.bf16.msrb.mxu0 %v6418_v3  ;;  %3527 = vmatpush.bf16.msrb.mxu1 %v6514_v11  ;;  %v7974_v42 = vld [vmem:[#allocation8 + $0x7e8] sm:$0xf0]  ;;  %v6681_v33 = vld [vmem:[#allocation8 + $0x8a0] sm:$0xf]  ;;  %v6490_v22 = vor.u32 %v7950_v37, %v6489_v36  ;;  %v7923_v44 = vld [vmem:[#allocation8 + $0x650] sm:$0xf0] }
 0x11b   :  { %3541 = vmatpush.bf16.msrb.mxu2 %v6610_v18  ;;  %v7998_v38 = vld [vmem:[#allocation8 + $0x8a8] sm:$0xf0]  ;;  %v6586_v40 = vor.u32 %v7974_v42, %v6585_v10  ;;  %v6477_v46 = vld [vmem:[#allocation8 + $0x708] sm:$0xf]  ;;  %v7947_v30 = vld [vmem:[#allocation8 + $0x710] sm:$0xf0]  ;;  %v6382_v48 = vor.u32 %v7923_v44, %v6381_v41 }
 0x11c   :  { %v6682_v47 = vor.u32 %v7998_v38, %v6681_v33  ;;  %v6573_v32 = vld [vmem:[#allocation8 + $0x7c8] sm:$0xf]  ;;  %v7971_v43 = vld [vmem:[#allocation8 + $0x7d0] sm:$0xf0]  ;;  %v6478_v55 = vor.u32 %v7947_v30, %v6477_v46  ;;  %v6369_v58 = vld [vmem:[#allocation8 + $0x630] sm:$0xf] }
 0x11d   :  { %3555 = vmatpush.bf16.msrb.mxu3 %v6706_v31  ;;  %v6669_v49 = vld [vmem:[#allocation8 + $0x888] sm:$0xf]  ;;  %v7995_v54 = vld [vmem:[#allocation8 + $0x890] sm:$0xf0]  ;;  %v6574_v21 = vor.u32 %v7971_v43, %v6573_v32  ;;  %v7920_v60 = vld [vmem:[#allocation8 + $0x638] sm:$0xf0] }
 0x11e   :  { %3514 = vmatpush.bf16.msrb.mxu0 %v6406_v26  ;;  %3528 = vmatpush.bf16.msrb.mxu1 %v6502_v52  ;;  %v6465_v50 = vld [vmem:[#allocation8 + $0x6f0] sm:$0xf]  ;;  %v6670_v2 = vor.u32 %v7995_v54, %v6669_v49  ;;  %v7944_v45 = vld [vmem:[#allocation8 + $0x6f8] sm:$0xf0]  ;;  %v6370_v17 = vor.u32 %v7920_v60, %v6369_v58  ;;  %v6357_v57 = vld [vmem:[#allocation8 + $0x618] sm:$0xf] }
 0x11f   :  { %3542 = vmatpush.bf16.msrb.mxu2 %v6598_v28  ;;  %v6561_v19 = vld [vmem:[#allocation8 + $0x7b0] sm:$0xf]  ;;  %v7968_v14 = vld [vmem:[#allocation8 + $0x7b8] sm:$0xf0]  ;;  %v6466_v62 = vor.u32 %v7944_v45, %v6465_v50  ;;  %v7917_v7 = vld [vmem:[#allocation8 + $0x620] sm:$0xf0] }
 0x120   :  { %v6657_v63 = vld [vmem:[#allocation8 + $0x870] sm:$0xf]  ;;  %v7992_v5 = vld [vmem:[#allocation8 + $0x878] sm:$0xf0]  ;;  %v6562_v0 = vor.u32 %v7968_v14, %v6561_v19  ;;  %v6453_v8 = vld [vmem:[#allocation8 + $0x6d8] sm:$0xf]  ;;  %v6358_v18 = vor.u32 %v7917_v7, %v6357_v57 }
 0x121   :  { %3556 = vmatpush.bf16.msrb.mxu3 %v6694_v29  ;;  %3464 = vmatmul.bf16.vlgmr.msra.gmra.mxu0 %v8824_v20  ;;  %v6658_v9 = vor.u32 %v7992_v5, %v6657_v63  ;;  %v7941_v59 = vld [vmem:[#allocation8 + $0x6e0] sm:$0xf0]  ;;  %v6549_v3 = vld [vmem:[#allocation8 + $0x798] sm:$0xf]  ;;  %v6345_v12 = vld [vmem:[#allocation8 + $0x600] sm:$0xf] }
 0x122   :  { %3515 = vmatpush.bf16.msrb.mxu0 %v6394_v39  ;;  %3529 = vmatpush.bf16.msrb.mxu1 %v6490_v22  ;;  %v7965_v4 = vld [vmem:[#allocation8 + $0x7a0] sm:$0xf0]  ;;  %v6645_v6 = vld [vmem:[#allocation8 + $0x858] sm:$0xf]  ;;  %v7914_v51 = vld [vmem:[#allocation8 + $0x608] sm:$0xf0]  ;;  %v6454_v31 = vor.u32 %v7941_v59, %v6453_v8 }
 0x123   :  { %3543 = vmatpush.bf16.msrb.mxu2 %v6586_v40  ;;  %3478 = vmatmul.bf16.vlgmr.msra.gmra.mxu1 %v8826_v27  ;;  %v7989_v11 = vld [vmem:[#allocation8 + $0x860] sm:$0xf0]  ;;  %v6550_v13 = vor.u32 %v7965_v4, %v6549_v3  ;;  %v6441_v23 = vld [vmem:[#allocation8 + $0x6c0] sm:$0xf]  ;;  %v7938_v24 = vld [vmem:[#allocation8 + $0x6c8] sm:$0xf0]  ;;  %v6346_v37 = vor.u32 %v7914_v51, %v6345_v12 }
 0x124   :  { %3492 = vmatmul.bf16.vlgmr.msra.gmra.mxu2 %v8834_v15  ;;  %3506 = vmatmul.bf16.vlgmr.msra.gmra.mxu3 %v8836_v16  ;;  %v6537_v25 = vld [vmem:[#allocation8 + $0x780] sm:$0xf]  ;;  %v6646_v26 = vor.u32 %v7989_v11, %v6645_v6  ;;  %v7962_v52 = vld [vmem:[#allocation8 + $0x788] sm:$0xf0]  ;;  %v6813_v35 = vld [vmem:[#allocation8 + $0x9a8] sm:$0xf]  ;;  %v6442_v38 = vor.u32 %v7938_v24, %v6441_v23 }
 0x125   :  { %3557 = vmatpush.bf16.msrb.mxu3 %v6682_v47  ;;  %v6633_v28 = vld [vmem:[#allocation8 + $0x840] sm:$0xf]  ;;  %v7986_v34 = vld [vmem:[#allocation8 + $0x848] sm:$0xf0]  ;;  %v8031_v36 = vld [vmem:[#allocation8 + $0x9b0] sm:$0xf0]  ;;  %v6538_v39 = vor.u32 %v7962_v52, %v6537_v25 }
 0x126   :  { %3516 = vmatpush.bf16.msrb.mxu0 %v6382_v48  ;;  %3530 = vmatpush.bf16.msrb.mxu1 %v6478_v55  ;;  %v6909_v29 = vld [vmem:[#allocation8 + $0xa68] sm:$0xf]  ;;  %v8055_v10 = vld [vmem:[#allocation8 + $0xa70] sm:$0xf0]  ;;  %v6634_v41 = vor.u32 %v7986_v34, %v6633_v28  ;;  %v6814_v44 = vor.u32 %v8031_v36, %v6813_v35  ;;  %v6801_v30 = vld [vmem:[#allocation8 + $0x990] sm:$0xf] }
 0x127   :  { %3544 = vmatpush.bf16.msrb.mxu2 %v6574_v21  ;;  %v7005_v42 = vld [vmem:[#allocation8 + $0xb28] sm:$0xf]  ;;  %v8079_v33 = vld [vmem:[#allocation8 + $0xb30] sm:$0xf0]  ;;  %v6910_v46 = vor.u32 %v8055_v10, %v6909_v29  ;;  %v8028_v32 = vld [vmem:[#allocation8 + $0x998] sm:$0xf0] }
 0x128   :  { %v7101_v22 = vld [vmem:[#allocation8 + $0xbe8] sm:$0xf]  ;;  %v8103_v40 = vld [vmem:[#allocation8 + $0xbf0] sm:$0xf0]  ;;  %v7006_v47 = vor.u32 %v8079_v33, %v7005_v42  ;;  %v6897_v43 = vld [vmem:[#allocation8 + $0xa50] sm:$0xf]  ;;  %v6802_v60 = vor.u32 %v8028_v32, %v6801_v30 }
 0x129   :  { %3558 = vmatpush.bf16.msrb.mxu3 %v6670_v2  ;;  %v7102_v49 = vor.u32 %v8103_v40, %v7101_v22  ;;  %v8052_v54 = vld [vmem:[#allocation8 + $0xa58] sm:$0xf0]  ;;  %v6993_v48 = vld [vmem:[#allocation8 + $0xb10] sm:$0xf]  ;;  %v6789_v50 = vld [vmem:[#allocation8 + $0x978] sm:$0xf] }
 0x12a   :  { %3517 = vmatpush.bf16.msrb.mxu0 %v6370_v17  ;;  %3531 = vmatpush.bf16.msrb.mxu1 %v6466_v62  ;;  %v8076_v55 = vld [vmem:[#allocation8 + $0xb18] sm:$0xf0]  ;;  %v7089_v21 = vld [vmem:[#allocation8 + $0xbd0] sm:$0xf]  ;;  %v8025_v2 = vld [vmem:[#allocation8 + $0x980] sm:$0xf0]  ;;  %v6898_v63 = vor.u32 %v8052_v54, %v6897_v43 }
 0x12b   :  { %3545 = vmatpush.bf16.msrb.mxu2 %v6562_v0  ;;  %v8100_v58 = vld [vmem:[#allocation8 + $0xbd8] sm:$0xf0]  ;;  %v6885_v45 = vld [vmem:[#allocation8 + $0xa38] sm:$0xf]  ;;  %v1328_v19 = vld [vmem:[#allocation1] sm:$0xff]  ;;  %v6994_v5 = vor.u32 %v8076_v55, %v6993_v48  ;;  %v6790_v3 = vor.u32 %v8025_v2, %v6789_v50 }
 0x12c   :  { %v1329_v14 = vld [vmem:[#allocation1 + $0x9] sm:$0xff]  ;;  %v8049_v17 = vld [vmem:[#allocation8 + $0xa40] sm:$0xf0]  ;;  %v1330_v62 = vld [vmem:[#allocation1 + $0x12] sm:$0xff]  ;;  %v7090_v0 = vor.u32 %v8100_v58, %v7089_v21 }
 0x12d   :  { %3559 = vmatpush.bf16.msrb.mxu3 %v6658_v9  ;;  %v6981_v57 = vld [vmem:[#allocation8 + $0xaf8] sm:$0xf]  ;;  %v8073_v7 = vld [vmem:[#allocation8 + $0xb00] sm:$0xf0]  ;;  %v6886_v4 = vor.u32 %v8049_v17, %v6885_v45  ;;  %v6777_v11 = vld [vmem:[#allocation8 + $0x960] sm:$0xf] }
 0x12e   :  { %3518 = vmatpush.bf16.msrb.mxu0 %v6358_v18  ;;  %3532 = vmatpush.bf16.msrb.mxu1 %v6454_v31  ;;  %v1331_v8 = vld [vmem:[#allocation1 + $0x1b] sm:$0xff]  ;;  %v7077_v9 = vld [vmem:[#allocation8 + $0xbb8] sm:$0xf]  ;;  %v6982_v6 = vor.u32 %v8073_v7, %v6981_v57  ;;  %v8022_v18 = vld [vmem:[#allocation8 + $0x968] sm:$0xf0] }
 0x12f   :  { %3546 = vmatpush.bf16.msrb.mxu2 %v6550_v13  ;;  %v8097_v59 = vld [vmem:[#allocation8 + $0xbc0] sm:$0xf0]  ;;  %v6873_v12 = vld [vmem:[#allocation8 + $0xa20] sm:$0xf]  ;;  %v8046_v31 = vld [vmem:[#allocation8 + $0xa28] sm:$0xf0] }
 0x130   :  { %v7078_v51 = vor.u32 %v8097_v59, %v7077_v9  ;;  %v6969_v13 = vld [vmem:[#allocation8 + $0xae0] sm:$0xf]  ;;  %v8070_v23 = vld [vmem:[#allocation8 + $0xae8] sm:$0xf0]  ;;  %v6874_v52 = vor.u32 %v8046_v31, %v6873_v12  ;;  %v6765_v34 = vld [vmem:[#allocation8 + $0x948] sm:$0xf] }
 0x131   :  { %3560 = vmatpush.bf16.msrb.mxu3 %v6646_v26  ;;  %v7065_v24 = vld [vmem:[#allocation8 + $0xba0] sm:$0xf]  ;;  %v8094_v25 = vld [vmem:[#allocation8 + $0xba8] sm:$0xf0]  ;;  %v6778_v26 = vor.u32 %v8022_v18, %v6777_v11  ;;  %v6970_v28 = vor.u32 %v8070_v23, %v6969_v13  ;;  %v8019_v35 = vld [vmem:[#allocation8 + $0x950] sm:$0xf0] }
 0x132   :  { %3519 = vmatpush.bf16.msrb.mxu0 %v6346_v37  ;;  %3533 = vmatpush.bf16.msrb.mxu1 %v6442_v38  ;;  %v6861_v36 = vld [vmem:[#allocation8 + $0xa08] sm:$0xf]  ;;  %v7066_v29 = vor.u32 %v8094_v25, %v7065_v24  ;;  %v8043_v37 = vld [vmem:[#allocation8 + $0xa10] sm:$0xf0]  ;;  %v8040_v30 = vld [vmem:[#allocation8 + $0x9f8] sm:$0xf0] }
 0x133   :  { %3547 = vmatpush.bf16.msrb.mxu2 %v6538_v39  ;;  %v6957_v10 = vld [vmem:[#allocation8 + $0xac8] sm:$0xf]  ;;  %v8067_v42 = vld [vmem:[#allocation8 + $0xad0] sm:$0xf0]  ;;  %v6766_v39 = vor.u32 %v8019_v35, %v6765_v34  ;;  %v6862_v22 = vor.u32 %v8043_v37, %v6861_v36  ;;  %v6945_v32 = vld [vmem:[#allocation8 + $0xab0] sm:$0xf] }
 0x134   :  { %v7053_v33 = vld [vmem:[#allocation8 + $0xb88] sm:$0xf]  ;;  %v8091_v38 = vld [vmem:[#allocation8 + $0xb90] sm:$0xf0]  ;;  %v6958_v40 = vor.u32 %v8067_v42, %v6957_v10  ;;  %v8064_v43 = vld [vmem:[#allocation8 + $0xab8] sm:$0xf0] }
 0x135   :  { %3561 = vmatpush.bf16.msrb.mxu3 %v6634_v41  ;;  %3520 = vmatmul.bf16.vlgmr.msrb.gmra.mxu0 %v1328_v19  ;;  %v6753_v41 = vld [vmem:[#allocation8 + $0x930] sm:$0xf]  ;;  %v8088_v54 = vld [vmem:[#allocation8 + $0xb78] sm:$0xf0]  ;;  %v6946_v21 = vor.u32 %v8064_v43, %v6945_v32  ;;  %v6741_v58 = vld [vmem:[#allocation8 + $0x918] sm:$0xf] }
 0x136   :  { %3568 = vmatpush.bf16.msra.mxu0 %v6814_v44  ;;  %3582 = vmatpush.bf16.msra.mxu1 %v6910_v46  ;;  %v8016_v44 = vld [vmem:[#allocation8 + $0x938] sm:$0xf0]  ;;  %v6849_v46 = vld [vmem:[#allocation8 + $0x9f0] sm:$0xf]  ;;  %v6837_v50 = vld [vmem:[#allocation8 + $0x9d8] sm:$0xf] }
 0x137   :  { %3596 = vmatpush.bf16.msra.mxu2 %v7006_v47  ;;  %3534 = vmatmul.bf16.vlgmr.msrb.gmra.mxu1 %v1329_v14  ;;  %v7054_v47 = vor.u32 %v8091_v38, %v7053_v33  ;;  %v6754_v48 = vor.u32 %v8016_v44, %v6753_v41  ;;  %v6850_v55 = vor.u32 %v8040_v30, %v6849_v46  ;;  %v8037_v45 = vld [vmem:[#allocation8 + $0x9e0] sm:$0xf0]  ;;  %v6933_v19 = vld [vmem:[#allocation8 + $0xa98] sm:$0xf]  ;;  %v8034_v9 = vld [vmem:[#allocation8 + $0x9c8] sm:$0xf0] }
 0x138   :  { %3548 = vmatmul.bf16.vlgmr.msrb.gmra.mxu2 %v1330_v62  ;;  %3562 = vmatmul.bf16.vlgmr.msrb.gmra.mxu3 %v1331_v8  ;;  %v8061_v14 = vld [vmem:[#allocation8 + $0xaa0] sm:$0xf0]  ;;  %v6729_v62 = vld [vmem:[#allocation8 + $0x900] sm:$0xf]  ;;  %v6838_v57 = vor.u32 %v8037_v45, %v6837_v50  ;;  %v8082_v11 = vld [vmem:[#allocation8 + $0xb48] sm:$0xf0] }
 0x139   :  { %3610 = vmatpush.bf16.msra.mxu3 %v7102_v49  ;;  %v7041_v49 = vld [vmem:[#allocation8 + $0xb70] sm:$0xf]  ;;  %v6934_v7 = vor.u32 %v8061_v14, %v6933_v19  ;;  %v6825_v8 = vld [vmem:[#allocation8 + $0x9c0] sm:$0xf]  ;;  %v7742_v18 = vld [vmem:[#allocation8 + $0xac] sm:$0xf] }
 0x13a   :  { %3569 = vmatpush.bf16.msra.mxu0 %v6802_v60  ;;  %3583 = vmatpush.bf16.msra.mxu1 %v6898_v63  ;;  %v8013_v60 = vld [vmem:[#allocation8 + $0x920] sm:$0xf0]  ;;  %v7042_v2 = vor.u32 %v8088_v54, %v7041_v49  ;;  %v7029_v63 = vld [vmem:[#allocation8 + $0xb58] sm:$0xf]  ;;  %v6921_v59 = vld [vmem:[#allocation8 + $0xa80] sm:$0xf]  ;;  %v6826_v25 = vor.u32 %v8034_v9, %v6825_v8 }
 0x13b   :  { %3597 = vmatpush.bf16.msra.mxu2 %v6994_v5  ;;  %v8085_v5 = vld [vmem:[#allocation8 + $0xb60] sm:$0xf0]  ;;  %v6742_v17 = vor.u32 %v8013_v60, %v6741_v58  ;;  %v5663_v12 = vld [vmem:[#allocation8 + $0xb4] sm:$0xf0]  ;;  %v7790_v23 = vld [vmem:[#allocation8 + $0x22c] sm:$0xf] }
 0x13c   :  { %v5759_v13 = vld [vmem:[#allocation8 + $0x174] sm:$0xf0]  ;;  %v5666_v35 = vor.u32 %v7742_v18, %v5663_v12  ;;  %v7739_v37 = vld [vmem:[#allocation8 + $0x94] sm:$0xf]  ;;  %v5651_v10 = vld [vmem:[#allocation8 + $0x9c] sm:$0xf0] }
 0x13d   :  { %3611 = vmatpush.bf16.msra.mxu3 %v7090_v0  ;;  %v8010_v0 = vld [vmem:[#allocation8 + $0x908] sm:$0xf0]  ;;  %v5855_v24 = vld [vmem:[#allocation8 + $0x234] sm:$0xf0]  ;;  %v7763_v42 = vld [vmem:[#allocation8 + $0x154] sm:$0xf]  ;;  %v5654_v30 = vor.u32 %v7739_v37, %v5651_v10 }
 0x13e   :  { %3570 = vmatpush.bf16.msra.mxu0 %v6790_v3  ;;  %3584 = vmatpush.bf16.msra.mxu1 %v6886_v4  ;;  %v7030_v3 = vor.u32 %v8085_v5, %v7029_v63  ;;  %v8058_v4 = vld [vmem:[#allocation8 + $0xa88] sm:$0xf0]  ;;  %v6730_v31 = vor.u32 %v8010_v0, %v6729_v62  ;;  %v5747_v38 = vld [vmem:[#allocation8 + $0x15c] sm:$0xf0]  ;;  %v1333_v46 = vld [vmem:[#allocation1 + $0x2d] sm:$0xff] }
 0x13f   :  { %3598 = vmatpush.bf16.msra.mxu2 %v6982_v6  ;;  %v7017_v6 = vld [vmem:[#allocation8 + $0xb40] sm:$0xf]  ;;  %v1332_v44 = vld [vmem:[#allocation1 + $0x24] sm:$0xff]  ;;  %v5750_v32 = vor.u32 %v7763_v42, %v5747_v38  ;;  %v7736_v49 = vld [vmem:[#allocation8 + $0x7c] sm:$0xf] }
 0x140   :  { %v7018_v34 = vor.u32 %v8082_v11, %v7017_v6  ;;  %v5939_v41 = vld [vmem:[#allocation8 + $0x2dc] sm:$0xf0]  ;;  %v5639_v54 = vld [vmem:[#allocation8 + $0x84] sm:$0xf0]  ;;  %v7784_v58 = vld [vmem:[#allocation8 + $0x1fc] sm:$0xf] }
 0x141   :  { %3612 = vmatpush.bf16.msra.mxu3 %v7078_v51  ;;  %v7766_v51 = vld [vmem:[#allocation8 + $0x16c] sm:$0xf]  ;;  %v5831_v60 = vld [vmem:[#allocation8 + $0x204] sm:$0xf0]  ;;  %v5642_v19 = vor.u32 %v7736_v49, %v5639_v54  ;;  %v7733_v5 = vld [vmem:[#allocation8 + $0x64] sm:$0xf] }
 0x142   :  { %3571 = vmatpush.bf16.msra.mxu0 %v6778_v26  ;;  %3585 = vmatpush.bf16.msra.mxu1 %v6874_v52  ;;  %v6922_v26 = vor.u32 %v8058_v4, %v6921_v59  ;;  %v7814_v52 = vld [vmem:[#allocation8 + $0x2ec] sm:$0xf]  ;;  %v5762_v36 = vor.u32 %v7766_v51, %v5759_v13  ;;  %v1335_v50 = vld [vmem:[#allocation1 + $0x3f] sm:$0xff]  ;;  %v5834_v63 = vor.u32 %v7784_v58, %v5831_v60  ;;  %v5819_v8 = vld [vmem:[#allocation8 + $0x1ec] sm:$0xf0] }
 0x143   :  { %3599 = vmatpush.bf16.msra.mxu2 %v6970_v28  ;;  %v5951_v28 = vld [vmem:[#allocation8 + $0x2f4] sm:$0xf0]  ;;  %v5927_v45 = vld [vmem:[#allocation8 + $0x2c4] sm:$0xf0]  ;;  %v7757_v62 = vld [vmem:[#allocation8 + $0x124] sm:$0xf] }
 0x144   :  { %v5954_v33 = vor.u32 %v7814_v52, %v5951_v28  ;;  %v7805_v9 = vld [vmem:[#allocation8 + $0x2a4] sm:$0xf]  ;;  %v5915_v59 = vld [vmem:[#allocation8 + $0x2ac] sm:$0xf0]  ;;  %v7730_v11 = vld [vmem:[#allocation8 + $0x4c] sm:$0xf] }
 0x145   :  { %3613 = vmatpush.bf16.msra.mxu3 %v7066_v29  ;;  %v5858_v29 = vor.u32 %v7790_v23, %v5855_v24  ;;  %v5615_v18 = vld [vmem:[#allocation8 + $0x54] sm:$0xf0]  ;;  %v7754_v12 = vld [vmem:[#allocation8 + $0x10c] sm:$0xf]  ;;  %v5918_v51 = vor.u32 %v7805_v9, %v5915_v59  ;;  %v5699_v37 = vld [vmem:[#allocation8 + $0xfc] sm:$0xf0] }
 0x146   :  { %3572 = vmatpush.bf16.msra.mxu0 %v6766_v39  ;;  %3586 = vmatpush.bf16.msra.mxu1 %v6862_v22  ;;  %v7787_v39 = vld [vmem:[#allocation8 + $0x214] sm:$0xf]  ;;  %v5843_v22 = vld [vmem:[#allocation8 + $0x21c] sm:$0xf0]  ;;  %v7778_v13 = vld [vmem:[#allocation8 + $0x1cc] sm:$0xf] }
 0x147   :  { %3600 = vmatpush.bf16.msra.mxu2 %v6958_v40  ;;  %v7811_v40 = vld [vmem:[#allocation8 + $0x2d4] sm:$0xf]  ;;  %v5846_v43 = vor.u32 %v7787_v39, %v5843_v22  ;;  %v5807_v23 = vld [vmem:[#allocation8 + $0x1d4] sm:$0xf0]  ;;  %v7802_v24 = vld [vmem:[#allocation8 + $0x28c] sm:$0xf] }
 0x148   :  { %v5810_v28 = vor.u32 %v7778_v13, %v5807_v23  ;;  %v7775_v10 = vld [vmem:[#allocation8 + $0x1b4] sm:$0xf]  ;;  %v5795_v42 = vld [vmem:[#allocation8 + $0x1bc] sm:$0xf0]  ;;  %v7796_v49 = vld [vmem:[#allocation8 + $0x25c] sm:$0xf] }
 0x149   :  { %3614 = vmatpush.bf16.msra.mxu3 %v7054_v47  ;;  %v1334_v47 = vld [vmem:[#allocation1 + $0x36] sm:$0xff]  ;;  %v5879_v54 = vld [vmem:[#allocation8 + $0x264] sm:$0xf0]  ;;  %v7859_v23 = vld [vmem:[#allocation8 + $0x454] sm:$0xf] }
 0x14a   :  { %3573 = vmatpush.bf16.msra.mxu0 %v6754_v48  ;;  %3587 = vmatpush.bf16.msra.mxu1 %v6850_v55  ;;  %v7760_v48 = vld [vmem:[#allocation8 + $0x13c] sm:$0xf]  ;;  %v5942_v55 = vor.u32 %v7811_v40, %v5939_v41  ;;  %v5891_v38 = vld [vmem:[#allocation8 + $0x27c] sm:$0xf0]  ;;  %v5798_v40 = vor.u32 %v7775_v10, %v5795_v42  ;;  %v6239_v9 = vld [vmem:[#allocation8 + $0x534] sm:$0xf0] }
 0x14b   :  { %3601 = vmatpush.bf16.msra.mxu2 %v6946_v21  ;;  %v5735_v21 = vld [vmem:[#allocation8 + $0x144] sm:$0xf0]  ;;  %v7724_v41 = vld [vmem:[#allocation8 + $0x1c] sm:$0xf]  ;;  %v6035_v13 = vld [vmem:[#allocation8 + $0x39c] sm:$0xf0] }
 0x14c   :  { %v5738_v14 = vor.u32 %v7760_v48, %v5735_v21  ;;  %v5579_v21 = vld [vmem:[#allocation8 + $0xc] sm:$0xf0]  ;;  %v6023_v10 = vld [vmem:[#allocation8 + $0x384] sm:$0xf0]  ;;  %v7856_v42 = vld [vmem:[#allocation8 + $0x43c] sm:$0xf] }
 0x14d   :  { %3615 = vmatpush.bf16.msra.mxu3 %v7042_v2  ;;  %v7808_v2 = vld [vmem:[#allocation8 + $0x2bc] sm:$0xf] }
 0x14e   :  { %3574 = vmatpush.bf16.msra.mxu0 %v6742_v17  ;;  %3588 = vmatpush.bf16.msra.mxu1 %v6838_v57  ;;  %v5627_v17 = vld [vmem:[#allocation8 + $0x6c] sm:$0xf0]  ;;  %v5930_v0 = vor.u32 %v7808_v2, %v5927_v45  ;;  %v7769_v45 = vld [vmem:[#allocation8 + $0x184] sm:$0xf] }
 0x14f   :  { %3602 = vmatpush.bf16.msra.mxu2 %v6934_v7  ;;  %v5723_v57 = vld [vmem:[#allocation8 + $0x12c] sm:$0xf0]  ;;  %v7781_v7 = vld [vmem:[#allocation8 + $0x1e4] sm:$0xf] }
 0x150   :  { %v5726_v4 = vor.u32 %v7757_v62, %v5723_v57  ;;  %v5822_v6 = vor.u32 %v7781_v7, %v5819_v8  ;;  %v5675_v2 = vld [vmem:[#allocation8 + $0xcc] sm:$0xf0]  ;;  %v6047_v62 = vld [vmem:[#allocation8 + $0x3b4] sm:$0xf0]  ;;  %v7886_v8 = vld [vmem:[#allocation8 + $0x52c] sm:$0xf] }
 0x151   :  { %3616 = vmatpush.bf16.msra.mxu3 %v7030_v3  ;;  %v5630_v3 = vor.u32 %v7733_v5, %v5627_v17  ;;  %v5867_v5 = vld [vmem:[#allocation8 + $0x24c] sm:$0xf0]  ;;  %v7838_v17 = vld [vmem:[#allocation8 + $0x3ac] sm:$0xf]  ;;  %v6143_v7 = vld [vmem:[#allocation8 + $0x474] sm:$0xf0] }
 0x152   :  { %3575 = vmatpush.bf16.msra.mxu0 %v6730_v31  ;;  %3589 = vmatpush.bf16.msra.mxu1 %v6826_v25  ;;  %v5711_v31 = vld [vmem:[#allocation8 + $0x114] sm:$0xf0] }
 0x153   :  { %3603 = vmatpush.bf16.msra.mxu2 %v6922_v26  ;;  %v5903_v25 = vld [vmem:[#allocation8 + $0x294] sm:$0xf0]  ;;  %v5618_v26 = vor.u32 %v7730_v11, %v5615_v18  ;;  %v5714_v52 = vor.u32 %v7754_v12, %v5711_v31  ;;  %v6050_v18 = vor.u32 %v7838_v17, %v6047_v62  ;;  %v7835_v31 = vld [vmem:[#allocation8 + $0x394] sm:$0xf]  ;;  %v7874_v17 = vld [vmem:[#allocation8 + $0x4cc] sm:$0xf] }
 0x154   :  { %v6191_v62 = vld [vmem:[#allocation8 + $0x4d4] sm:$0xf0] }
 0x155   :  { %3617 = vmatpush.bf16.msra.mxu3 %v7018_v34  ;;  %3576 = vmatmul.bf16.vlgmr.msra.gmra.mxu0 %v1332_v44  ;;  %v7727_v34 = vld [vmem:[#allocation8 + $0x34] sm:$0xf]  ;;  %v5591_v44 = vld [vmem:[#allocation8 + $0x24] sm:$0xf0] }
 0x156   :  { %3624 = vmatpush.bf16.msrb.mxu0 %v5666_v35  ;;  %3638 = vmatpush.bf16.msrb.mxu1 %v5762_v36  ;;  %v5603_v35 = vld [vmem:[#allocation8 + $0x3c] sm:$0xf0]  ;;  %v7751_v36 = vld [vmem:[#allocation8 + $0xf4] sm:$0xf]  ;;  %v5594_v48 = vor.u32 %v7724_v41, %v5591_v44  ;;  %v6311_v41 = vld [vmem:[#allocation8 + $0x5c4] sm:$0xf0] }
 0x157   :  { %3652 = vmatpush.bf16.msrb.mxu2 %v5858_v29  ;;  %3590 = vmatmul.bf16.vlgmr.msra.gmra.mxu1 %v1333_v46  ;;  %v5906_v29 = vor.u32 %v7802_v24, %v5903_v25  ;;  %v5606_v39 = vor.u32 %v7727_v34, %v5603_v35  ;;  %v5702_v22 = vor.u32 %v7751_v36, %v5699_v37  ;;  %v7748_v46 = vld [vmem:[#allocation8 + $0xdc] sm:$0xf]  ;;  %v6131_v25 = vld [vmem:[#allocation8 + $0x45c] sm:$0xf0] }
 0x158   :  { %3604 = vmatmul.bf16.vlgmr.msra.gmra.mxu2 %v1334_v47  ;;  %3618 = vmatmul.bf16.vlgmr.msra.gmra.mxu3 %v1335_v50  ;;  %v7745_v50 = vld [vmem:[#allocation8 + $0xc4] sm:$0xf]  ;;  %v6323_v34 = vld [vmem:[#allocation8 + $0x5dc] sm:$0xf0]  ;;  %v6038_v35 = vor.u32 %v7835_v31, %v6035_v13  ;;  %v6134_v36 = vor.u32 %v7859_v23, %v6131_v25  ;;  %v7832_v37 = vld [vmem:[#allocation8 + $0x37c] sm:$0xf] }
 0x159   :  { %3666 = vmatpush.bf16.msrb.mxu3 %v5954_v33  ;;  %v7799_v33 = vld [vmem:[#allocation8 + $0x274] sm:$0xf]  ;;  %v5678_v59 = vor.u32 %v7745_v50, %v5675_v2  ;;  %v6026_v44 = vor.u32 %v7832_v37, %v6023_v10  ;;  %v6275_v31 = vld [vmem:[#allocation8 + $0x57c] sm:$0xf0]  ;;  %v7820_v25 = vld [vmem:[#allocation8 + $0x31c] sm:$0xf] }
 0x15a   :  { %3625 = vmatpush.bf16.msrb.mxu0 %v5654_v30  ;;  %3639 = vmatpush.bf16.msrb.mxu1 %v5750_v32  ;;  %v5894_v47 = vor.u32 %v7799_v33, %v5891_v38  ;;  %v5687_v30 = vld [vmem:[#allocation8 + $0xe4] sm:$0xf0]  ;;  %v7772_v32 = vld [vmem:[#allocation8 + $0x19c] sm:$0xf] }
 0x15b   :  { %3653 = vmatpush.bf16.msrb.mxu2 %v5846_v43  ;;  %v5783_v43 = vld [vmem:[#allocation8 + $0x1a4] sm:$0xf0]  ;;  %v5690_v58 = vor.u32 %v7748_v46, %v5687_v30  ;;  %v7829_v30 = vld [vmem:[#allocation8 + $0x364] sm:$0xf] }
 0x15c   :  { %v5786_v60 = vor.u32 %v7772_v32, %v5783_v43  ;;  %v6119_v38 = vld [vmem:[#allocation8 + $0x444] sm:$0xf0]  ;;  %v6011_v32 = vld [vmem:[#allocation8 + $0x36c] sm:$0xf0]  ;;  %v7853_v43 = vld [vmem:[#allocation8 + $0x424] sm:$0xf] }
 0x15d   :  { %3667 = vmatpush.bf16.msrb.mxu3 %v5942_v55  ;;  %v7721_v55 = vld [vmem:[#allocation8 + $0x4] sm:$0xf]  ;;  %v6122_v46 = vor.u32 %v7856_v42, %v6119_v38  ;;  %v6263_v37 = vld [vmem:[#allocation8 + $0x564] sm:$0xf0] }
 0x15e   :  { %3626 = vmatpush.bf16.msrb.mxu0 %v5642_v19  ;;  %3640 = vmatpush.bf16.msrb.mxu1 %v5738_v14  ;;  %v5882_v19 = vor.u32 %v7796_v49, %v5879_v54  ;;  %v5771_v14 = vld [vmem:[#allocation8 + $0x18c] sm:$0xf0]  ;;  %v5582_v57 = vor.u32 %v7721_v55, %v5579_v21  ;;  %v7901_v21 = vld [vmem:[#allocation8 + $0x5a4] sm:$0xf] }
 0x15f   :  { %3654 = vmatpush.bf16.msrb.mxu2 %v5834_v63  ;;  %v7793_v63 = vld [vmem:[#allocation8 + $0x244] sm:$0xf]  ;;  %v6107_v54 = vld [vmem:[#allocation8 + $0x42c] sm:$0xf0] }
 0x160   :  { %v5870_v11 = vor.u32 %v7793_v63, %v5867_v5  ;;  %v6203_v55 = vld [vmem:[#allocation8 + $0x4ec] sm:$0xf0]  ;;  %v6110_v50 = vor.u32 %v7853_v43, %v6107_v54  ;;  %v6095_v5 = vld [vmem:[#allocation8 + $0x414] sm:$0xf0]  ;;  %v7817_v42 = vld [vmem:[#allocation8 + $0x304] sm:$0xf] }
 0x161   :  { %3668 = vmatpush.bf16.msrb.mxu3 %v5930_v0  ;;  %v7862_v0 = vld [vmem:[#allocation8 + $0x46c] sm:$0xf]  ;;  %v6431_v43 = vld [vmem:[#allocation8 + $0x6b4] sm:$0xf0] }
 0x162   :  { %3627 = vmatpush.bf16.msrb.mxu0 %v5630_v3  ;;  %3641 = vmatpush.bf16.msrb.mxu1 %v5726_v4  ;;  %v5774_v3 = vor.u32 %v7769_v45, %v5771_v14  ;;  %v7910_v4 = vld [vmem:[#allocation8 + $0x5ec] sm:$0xf]  ;;  %v6146_v12 = vor.u32 %v7862_v0, %v6143_v7 }
 0x163   :  { %3655 = vmatpush.bf16.msrb.mxu2 %v5822_v6  ;;  %v6335_v6 = vld [vmem:[#allocation8 + $0x5f4] sm:$0xf0]  ;;  %v7826_v45 = vld [vmem:[#allocation8 + $0x34c] sm:$0xf] }
 0x164   :  { %v6338_v24 = vor.u32 %v7910_v4, %v6335_v6  ;;  %v7850_v14 = vld [vmem:[#allocation8 + $0x40c] sm:$0xf]  ;;  %v7847_v4 = vld [vmem:[#allocation8 + $0x3f4] sm:$0xf] }
 0x165   :  { %3669 = vmatpush.bf16.msrb.mxu3 %v5918_v51  ;;  %v6242_v51 = vor.u32 %v7886_v8, %v6239_v9  ;;  %v7898_v0 = vld [vmem:[#allocation8 + $0x58c] sm:$0xf]  ;;  %v6098_v8 = vor.u32 %v7850_v14, %v6095_v5  ;;  %v6194_v9 = vor.u32 %v7874_v17, %v6191_v62  ;;  %v6419_v62 = vld [vmem:[#allocation8 + $0x69c] sm:$0xf0] }
 0x166   :  { %3628 = vmatpush.bf16.msrb.mxu0 %v5618_v26  ;;  %3642 = vmatpush.bf16.msrb.mxu1 %v5714_v52  ;;  %v7883_v26 = vld [vmem:[#allocation8 + $0x514] sm:$0xf]  ;;  %v6227_v52 = vld [vmem:[#allocation8 + $0x51c] sm:$0xf0] }
 0x167   :  { %3656 = vmatpush.bf16.msrb.mxu2 %v5810_v28  ;;  %v7907_v28 = vld [vmem:[#allocation8 + $0x5d4] sm:$0xf] }
 0x168   :  { %v6326_v33 = vor.u32 %v7907_v28, %v6323_v34  ;;  %v6071_v34 = vld [vmem:[#allocation8 + $0x3e4] sm:$0xf0] }
 0x169   :  { %3670 = vmatpush.bf16.msrb.mxu3 %v5906_v29  ;;  %v6230_v29 = vor.u32 %v7883_v26, %v6227_v52  ;;  %v5975_v26 = vld [vmem:[#allocation8 + $0x324] sm:$0xf0]  ;;  %v7844_v52 = vld [vmem:[#allocation8 + $0x3dc] sm:$0xf] }
 0x16a   :  { %3629 = vmatpush.bf16.msrb.mxu0 %v5606_v39  ;;  %3643 = vmatpush.bf16.msrb.mxu1 %v5702_v22  ;;  %v7880_v39 = vld [vmem:[#allocation8 + $0x4fc] sm:$0xf]  ;;  %v6215_v22 = vld [vmem:[#allocation8 + $0x504] sm:$0xf0]  ;;  %v5978_v10 = vor.u32 %v7820_v25, %v5975_v26  ;;  %v6074_v38 = vor.u32 %v7844_v52, %v6071_v34 }
 0x16b   :  { %3657 = vmatpush.bf16.msrb.mxu2 %v5798_v40  ;;  %v7904_v40 = vld [vmem:[#allocation8 + $0x5bc] sm:$0xf]  ;;  %v6599_v26 = vld [vmem:[#allocation8 + $0x804] sm:$0xf0] }
 0x16c   :  { %v6314_v49 = vor.u32 %v7904_v40, %v6311_v41  ;;  %v6059_v40 = vld [vmem:[#allocation8 + $0x3cc] sm:$0xf0]  ;;  %v7865_v41 = vld [vmem:[#allocation8 + $0x484] sm:$0xf]  ;;  %v7976_v25 = vld [vmem:[#allocation8 + $0x7fc] sm:$0xf] }
 0x16d   :  { %3671 = vmatpush.bf16.msrb.mxu3 %v5894_v47  ;;  %v6218_v47 = vor.u32 %v7880_v39, %v6215_v22  ;;  %v7841_v22 = vld [vmem:[#allocation8 + $0x3c4] sm:$0xf]  ;;  %v6695_v34 = vld [vmem:[#allocation8 + $0x8c4] sm:$0xf0] }
 0x16e   :  { %3630 = vmatpush.bf16.msrb.mxu0 %v5594_v48  ;;  %3644 = vmatpush.bf16.msrb.mxu1 %v5690_v58  ;;  %v7877_v48 = vld [vmem:[#allocation8 + $0x4e4] sm:$0xf]  ;;  %v6299_v58 = vld [vmem:[#allocation8 + $0x5ac] sm:$0xf0] }
 0x16f   :  { %3658 = vmatpush.bf16.msrb.mxu2 %v5786_v60  ;;  %v6014_v60 = vor.u32 %v7829_v30, %v6011_v32  ;;  %v6206_v2 = vor.u32 %v7877_v48, %v6203_v55  ;;  %v6302_v63 = vor.u32 %v7901_v21, %v6299_v58  ;;  %v6251_v30 = vld [vmem:[#allocation8 + $0x54c] sm:$0xf0]  ;;  %v7934_v32 = vld [vmem:[#allocation8 + $0x6ac] sm:$0xf]  ;;  %v6527_v48 = vld [vmem:[#allocation8 + $0x774] sm:$0xf0]  ;;  %v6062_v58 = vor.u32 %v7841_v22, %v6059_v40 }
 0x170   :  { %v7982_v55 = vld [vmem:[#allocation8 + $0x82c] sm:$0xf]  ;;  %v6623_v21 = vld [vmem:[#allocation8 + $0x834] sm:$0xf0]  ;;  %v6434_v14 = vor.u32 %v7934_v32, %v6431_v43  ;;  %v6491_v22 = vld [vmem:[#allocation8 + $0x72c] sm:$0xf0] }
 0x171   :  { %3672 = vmatpush.bf16.msrb.mxu3 %v5882_v19  ;;  %v5999_v19 = vld [vmem:[#allocation8 + $0x354] sm:$0xf0]  ;;  %v6626_v17 = vor.u32 %v7982_v55, %v6623_v21  ;;  %v7973_v40 = vld [vmem:[#allocation8 + $0x7e4] sm:$0xf]  ;;  %v7922_v43 = vld [vmem:[#allocation8 + $0x64c] sm:$0xf] }
 0x172   :  { %3631 = vmatpush.bf16.msrb.mxu0 %v5582_v57  ;;  %3645 = vmatpush.bf16.msrb.mxu1 %v5678_v59  ;;  %v6287_v57 = vld [vmem:[#allocation8 + $0x594] sm:$0xf0]  ;;  %v6002_v7 = vor.u32 %v7826_v45, %v5999_v19  ;;  %v7823_v59 = vld [vmem:[#allocation8 + $0x334] sm:$0xf]  ;;  %v8855_v45 = vld [vmem:[#allocation10] sm:$0x7] }
 0x173   :  { %3659 = vmatpush.bf16.msrb.mxu2 %v5774_v3  ;;  %v5987_v3 = vld [vmem:[#allocation8 + $0x33c] sm:$0xf0]  ;;  %v6290_v6 = vor.u32 %v7898_v0, %v6287_v57  ;;  %v7955_v0 = vld [vmem:[#allocation8 + $0x754] sm:$0xf] }
 0x174   :  { %v5990_v13 = vor.u32 %v7823_v59, %v5987_v3  ;;  %v6515_v57 = vld [vmem:[#allocation8 + $0x75c] sm:$0xf0]  ;;  %v1289_v59 = vperm.slane %v8855_v45, 0  ;;  %v8003_v3 = vld [vmem:[#allocation8 + $0x8d4] sm:$0xf] }
 0x175   :  { %3673 = vmatpush.bf16.msrb.mxu3 %v5870_v11  ;;  %3632 = vmatmul.bf16.vlgmr.msrb.gmra.mxu0 %v8814_v61  ;;  %v6083_v11 = vld [vmem:[#allocation8 + $0x3fc] sm:$0xf0] }
 0x176   :  { %3680 = vmatpush.bf16.msra.mxu0 %v6050_v18  ;;  %3694 = vmatpush.bf16.msra.mxu1 %v6146_v12  ;;  %v7871_v18 = vld [vmem:[#allocation8 + $0x4b4] sm:$0xf]  ;;  %v6179_v12 = vld [vmem:[#allocation8 + $0x4bc] sm:$0xf0]  ;;  %v6086_v23 = vor.u32 %v7847_v4, %v6083_v11  ;;  %v6518_v11 = vor.u32 %v7955_v0, %v6515_v57 }
 0x177   :  { %3708 = vmatpush.bf16.msra.mxu2 %v6242_v51  ;;  %3646 = vmatmul.bf16.vlgmr.msrb.gmra.mxu1 %v8816_v53  ;;  %v7895_v51 = vld [vmem:[#allocation8 + $0x574] sm:$0xf]  ;;  %v6707_v4 = vld [vmem:[#allocation8 + $0x8dc] sm:$0xf0] }
 0x178   :  { %3660 = vmatmul.bf16.vlgmr.msrb.gmra.mxu2 %v8818_v1  ;;  %3674 = vmatmul.bf16.vlgmr.msrb.gmra.mxu3 %v8822_v56  ;;  %v6278_v28 = vor.u32 %v7895_v51, %v6275_v31  ;;  %v6407_v51 = vld [vmem:[#allocation8 + $0x684] sm:$0xf0]  ;;  %v7952_v31 = vld [vmem:[#allocation8 + $0x73c] sm:$0xf] }
 0x179   :  { %3722 = vmatpush.bf16.msra.mxu3 %v6338_v24  ;;  %v6182_v24 = vor.u32 %v7871_v18, %v6179_v12  ;;  %v7928_v12 = vld [vmem:[#allocation8 + $0x67c] sm:$0xf] }
 0x17a   :  { %3681 = vmatpush.bf16.msra.mxu0 %v6038_v35  ;;  %3695 = vmatpush.bf16.msra.mxu1 %v6134_v36  ;;  %v7868_v35 = vld [vmem:[#allocation8 + $0x49c] sm:$0xf]  ;;  %v6167_v36 = vld [vmem:[#allocation8 + $0x4a4] sm:$0xf0] }
 0x17b   :  { %3709 = vmatpush.bf16.msra.mxu2 %v6230_v29  ;;  %v7892_v29 = vld [vmem:[#allocation8 + $0x55c] sm:$0xf]  ;;  %v6170_v39 = vor.u32 %v7868_v35, %v6167_v36  ;;  %v6410_v36 = vor.u32 %v7928_v12, %v6407_v51  ;;  %v6659_v12 = vld [vmem:[#allocation8 + $0x87c] sm:$0xf0] }
 0x17d   :  { %3723 = vmatpush.bf16.msra.mxu3 %v6326_v33  ;;  %v5963_v33 = vld [vmem:[#allocation8 + $0x30c] sm:$0xf0] }
 0x17e   :  { %3682 = vmatpush.bf16.msra.mxu0 %v6026_v44  ;;  %3696 = vmatpush.bf16.msra.mxu1 %v6122_v46  ;;  %v6266_v44 = vor.u32 %v7892_v29, %v6263_v37  ;;  %v6155_v46 = vld [vmem:[#allocation8 + $0x48c] sm:$0xf0]  ;;  %v5966_v54 = vor.u32 %v7817_v42, %v5963_v33  ;;  %v7925_v42 = vld [vmem:[#allocation8 + $0x664] sm:$0xf] }
 0x17f   :  { %3710 = vmatpush.bf16.msra.mxu2 %v6218_v47  ;;  %v7889_v47 = vld [vmem:[#allocation8 + $0x544] sm:$0xf]  ;;  %v6395_v33 = vld [vmem:[#allocation8 + $0x66c] sm:$0xf0] }
 0x180   :  { %v6254_v19 = vor.u32 %v7889_v47, %v6251_v30  ;;  %v6398_v47 = vor.u32 %v7925_v42, %v6395_v33 }
 0x181   :  { %3724 = vmatpush.bf16.msra.mxu3 %v6314_v49  ;;  %v7958_v49 = vld [vmem:[#allocation8 + $0x76c] sm:$0xf] }
 0x182   :  { %3683 = vmatpush.bf16.msra.mxu0 %v6014_v60  ;;  %3697 = vmatpush.bf16.msra.mxu1 %v6110_v50  ;;  %v6158_v60 = vor.u32 %v7865_v41, %v6155_v46  ;;  %v8006_v50 = vld [vmem:[#allocation8 + $0x8ec] sm:$0xf]  ;;  %v6530_v5 = vor.u32 %v7958_v49, %v6527_v48  ;;  %v6587_v41 = vld [vmem:[#allocation8 + $0x7ec] sm:$0xf0]  ;;  %v6383_v49 = vld [vmem:[#allocation8 + $0x654] sm:$0xf0] }
 0x183   :  { %3711 = vmatpush.bf16.msra.mxu2 %v6206_v2  ;;  %v6719_v2 = vld [vmem:[#allocation8 + $0x8f4] sm:$0xf0]  ;;  %v6683_v46 = vld [vmem:[#allocation8 + $0x8ac] sm:$0xf0]  ;;  %v6590_v32 = vor.u32 %v7973_v40, %v6587_v41 }
 0x185   :  { %3725 = vmatpush.bf16.msra.mxu3 %v6302_v63  ;;  %v7931_v63 = vld [vmem:[#allocation8 + $0x694] sm:$0xf] }
 0x186   :  { %3684 = vmatpush.bf16.msra.mxu0 %v6002_v7  ;;  %3698 = vmatpush.bf16.msra.mxu1 %v6098_v8  ;;  %v6722_v7 = vor.u32 %v8006_v50, %v6719_v2  ;;  %v7979_v8 = vld [vmem:[#allocation8 + $0x814] sm:$0xf]  ;;  %v7970_v50 = vld [vmem:[#allocation8 + $0x7cc] sm:$0xf]  ;;  %v6575_v2 = vld [vmem:[#allocation8 + $0x7d4] sm:$0xf0] }
 0x187   :  { %3712 = vmatpush.bf16.msra.mxu2 %v6194_v9  ;;  %v6611_v9 = vld [vmem:[#allocation8 + $0x81c] sm:$0xf0]  ;;  %v6578_v57 = vor.u32 %v7970_v50, %v6575_v2  ;;  %v6911_v50 = vld [vmem:[#allocation8 + $0xa74] sm:$0xf0]  ;;  %v8078_v2 = vld [vmem:[#allocation8 + $0xb2c] sm:$0xf] }
 0x188   :  { %v6614_v18 = vor.u32 %v7979_v8, %v6611_v9  ;;  %v6371_v8 = vld [vmem:[#allocation8 + $0x63c] sm:$0xf0]  ;;  %v7943_v9 = vld [vmem:[#allocation8 + $0x6f4] sm:$0xf] }
 0x189   :  { %3726 = vmatpush.bf16.msra.mxu3 %v6290_v6  ;;  %v6422_v6 = vor.u32 %v7931_v63, %v6419_v62  ;;  %v6671_v63 = vld [vmem:[#allocation8 + $0x894] sm:$0xf0] }
 0x18a   :  { %3685 = vmatpush.bf16.msra.mxu0 %v5990_v13  ;;  %3699 = vmatpush.bf16.msra.mxu1 %v6086_v23  ;;  %v6710_v23 = vor.u32 %v8003_v3, %v6707_v4  ;;  %v6467_v4 = vld [vmem:[#allocation8 + $0x6fc] sm:$0xf0] }
 0x18b   :  { %3713 = vmatpush.bf16.msra.mxu2 %v6182_v24  ;;  %v6503_v24 = vld [vmem:[#allocation8 + $0x744] sm:$0xf0] }
 0x18c   :  { %v6506_v37 = vor.u32 %v7952_v31, %v6503_v24  ;;  %v6470_v31 = vor.u32 %v7943_v9, %v6467_v4  ;;  %v6359_v24 = vld [vmem:[#allocation8 + $0x624] sm:$0xf0] }
 0x18d   :  { %3727 = vmatpush.bf16.msra.mxu3 %v6278_v28  ;;  %v8000_v28 = vld [vmem:[#allocation8 + $0x8bc] sm:$0xf] }
 0x18e   :  { %3686 = vmatpush.bf16.msra.mxu0 %v5978_v10  ;;  %3700 = vmatpush.bf16.msra.mxu1 %v6074_v38  ;;  %v3409_v13 = vpop.f32.mrf.mxu0  ;;  %v6602_v10 = vor.u32 %v7976_v25, %v6599_v26  ;;  %v7949_v38 = vld [vmem:[#allocation8 + $0x724] sm:$0xf]  ;;  %v7940_v25 = vld [vmem:[#allocation8 + $0x6dc] sm:$0xf] }
 0x18f   :  { %3714 = vmatpush.bf16.msra.mxu2 %v6170_v39  ;;  %v3410_v52 = vadd.f32 %v3409_v13, %v1289_v59  ;;  %v6698_v39 = vor.u32 %v8000_v28, %v6695_v34  ;;  %v6494_v30 = vor.u32 %v7949_v38, %v6491_v22  ;;  %v6455_v34 = vld [vmem:[#allocation8 + $0x6e4] sm:$0xf0]  ;;  %v6347_v22 = vld [vmem:[#allocation8 + $0x60c] sm:$0xf0] }
 0x190   :  { %v3423_v35 = vpop.f32.mrf.mxu1  ;;  %v6458_v40 = vor.u32 %v7940_v25, %v6455_v34  ;;  %v7091_v34 = vld [vmem:[#allocation8 + $0xbdc] sm:$0xf0] }
 0x191   :  { %3728 = vmatpush.bf16.msra.mxu3 %v6266_v44  ;;  %v3424_v29 = vadd.f32 %v3423_v35, %v3410_v52  ;;  %v7997_v44 = vld [vmem:[#allocation8 + $0x8a4] sm:$0xf]  ;;  %v7964_v35 = vld [vmem:[#allocation8 + $0x79c] sm:$0xf] }
 0x192   :  { %3687 = vmatpush.bf16.msra.mxu0 %v5966_v54  ;;  %3701 = vmatpush.bf16.msra.mxu1 %v6062_v58  ;;  %v7946_v54 = vld [vmem:[#allocation8 + $0x70c] sm:$0xf]  ;;  %v6686_v55 = vor.u32 %v7997_v44, %v6683_v46  ;;  %v7937_v44 = vld [vmem:[#allocation8 + $0x6c4] sm:$0xf]  ;;  %v6443_v46 = vld [vmem:[#allocation8 + $0x6cc] sm:$0xf0] }
 0x193   :  { %3715 = vmatpush.bf16.msra.mxu2 %v6158_v60  ;;  %v6479_v60 = vld [vmem:[#allocation8 + $0x714] sm:$0xf0] }
 0x194   :  { %v6482_v0 = vor.u32 %v7946_v54, %v6479_v60  ;;  %v6635_v54 = vld [vmem:[#allocation8 + $0x84c] sm:$0xf0] }
 0x195   :  { %3729 = vmatpush.bf16.msra.mxu3 %v6254_v19  ;;  %3688 = vmatmul.bf16.vlgmr.msra.gmra.mxu0 %v8824_v20 }
 0x196   :  { %3736 = vmatpush.bf16.msrb.mxu0 %v6434_v14  ;;  %3750 = vmatpush.bf16.msrb.mxu1 %v6530_v5  ;;  %v8864_v48 = vpop.f32.mrf.mxu0  ;;  %v7994_v14 = vld [vmem:[#allocation8 + $0x88c] sm:$0xf] }
 0x197   :  { %3764 = vmatpush.bf16.msrb.mxu2 %v6626_v17  ;;  %3702 = vmatmul.bf16.vlgmr.msra.gmra.mxu1 %v8826_v27  ;;  %v3437_v21 = vpop.f32.mrf.mxu2  ;;  %v3451_v58 = vpop.f32.mrf.mxu3  ;;  %v6386_v17 = vor.u32 %v7922_v43, %v6383_v49  ;;  %v6674_v3 = vor.u32 %v7994_v14, %v6671_v63  ;;  %v6539_v43 = vld [vmem:[#allocation8 + $0x78c] sm:$0xf0]  ;;  %v7985_v49 = vld [vmem:[#allocation8 + $0x844] sm:$0xf]  ;;  %v6446_v14 = vor.u32 %v7937_v44, %v6443_v46  ;;  %v8267_v44 = vld [vmem:[#allocation1 + $0x12] sm:$0xff] }
 0x198   :  { %3716 = vmatmul.bf16.vlgmr.msra.gmra.mxu2 %v8834_v15  ;;  %3730 = vmatmul.bf16.vlgmr.msra.gmra.mxu3 %v8836_v16  ;;  %v3438_v19 = vadd.f32 %v3437_v21, %v3424_v29  ;;  %v8866_v5 = vpop.f32.mrf.mxu1  ;;  %v7988_v29 = vld [vmem:[#allocation8 + $0x85c] sm:$0xf]  ;;  %v6815_v21 = vld [vmem:[#allocation8 + $0x9b4] sm:$0xf0] }
 0x199   :  { %3778 = vmatpush.bf16.msrb.mxu3 %v6722_v7  ;;  %v7919_v7 = vld [vmem:[#allocation8 + $0x634] sm:$0xf]  ;;  %v8096_v46 = vld [vmem:[#allocation8 + $0xbbc] sm:$0xf] }
 0x19a   :  { %3737 = vmatpush.bf16.msrb.mxu0 %v6422_v6  ;;  %3751 = vmatpush.bf16.msrb.mxu1 %v6518_v11  ;;  %v3452_v62 = vadd.f32 %v3451_v58, %v3438_v19  ;;  %v7967_v6 = vld [vmem:[#allocation8 + $0x7b4] sm:$0xf]  ;;  %v6563_v11 = vld [vmem:[#allocation8 + $0x7bc] sm:$0xf0]  ;;  %v6374_v51 = vor.u32 %v7919_v7, %v6371_v8  ;;  %v8054_v58 = vld [vmem:[#allocation8 + $0xa6c] sm:$0xf] }
 0x19b   :  { %3765 = vmatpush.bf16.msrb.mxu2 %v6614_v18  ;;  %v7991_v18 = vld [vmem:[#allocation8 + $0x874] sm:$0xf]  ;;  %v6566_v13 = vor.u32 %v7967_v6, %v6563_v11  ;;  %v7007_v19 = vld [vmem:[#allocation8 + $0xb34] sm:$0xf0]  ;;  %v6914_v8 = vor.u32 %v8054_v58, %v6911_v50  ;;  %v8045_v58 = vld [vmem:[#allocation8 + $0xa24] sm:$0xf] }
 0x19c   :  { %v6662_v26 = vor.u32 %v7991_v18, %v6659_v12  ;;  %v7010_v9 = vor.u32 %v8078_v2, %v7007_v19  ;;  %v8027_v11 = vld [vmem:[#allocation8 + $0x994] sm:$0xf]  ;;  %v6803_v18 = vld [vmem:[#allocation8 + $0x99c] sm:$0xf0]  ;;  %v6875_v2 = vld [vmem:[#allocation8 + $0xa2c] sm:$0xf0] }
 0x19d   :  { %3779 = vmatpush.bf16.msrb.mxu3 %v6710_v23  ;;  %v7916_v23 = vld [vmem:[#allocation8 + $0x61c] sm:$0xf]  ;;  %v8051_v12 = vld [vmem:[#allocation8 + $0xa54] sm:$0xf]  ;;  %v8069_v19 = vld [vmem:[#allocation8 + $0xae4] sm:$0xf] }
 0x19e   :  { %3738 = vmatpush.bf16.msrb.mxu0 %v6410_v36  ;;  %3752 = vmatpush.bf16.msrb.mxu1 %v6506_v37  ;;  %v6551_v36 = vld [vmem:[#allocation8 + $0x7a4] sm:$0xf0]  ;;  %v6362_v42 = vor.u32 %v7916_v23, %v6359_v24  ;;  %v6995_v23 = vld [vmem:[#allocation8 + $0xb1c] sm:$0xf0] }
 0x19f   :  { %3766 = vmatpush.bf16.msrb.mxu2 %v6602_v10  ;;  %v8868_v52 = vpop.f32.mrf.mxu2  ;;  %v8870_v28 = vpop.f32.mrf.mxu3  ;;  %v6647_v37 = vld [vmem:[#allocation8 + $0x864] sm:$0xf0]  ;;  %v6554_v41 = vor.u32 %v7964_v35, %v6551_v36  ;;  %v6806_v35 = vor.u32 %v8027_v11, %v6803_v18  ;;  %v8042_v11 = vld [vmem:[#allocation8 + $0xa0c] sm:$0xf] }
 0x1a0   :  { %v3465_v10 = vpop.f32.mrf.mxu0  ;;  %v3479_v38 = vpop.f32.mrf.mxu1 }
 0x1a1   :  { %3780 = vmatpush.bf16.msrb.mxu3 %v6698_v39  ;;  %v3466_v33 = vadd.f32 %v3465_v10, %v3452_v62  ;;  %v7913_v39 = vld [vmem:[#allocation8 + $0x604] sm:$0xf]  ;;  %v7103_v62 = vld [vmem:[#allocation8 + $0xbf4] sm:$0xf0]  ;;  %v6791_v10 = vld [vmem:[#allocation8 + $0x984] sm:$0xf0] }
 0x1a2   :  { %3739 = vmatpush.bf16.msrb.mxu0 %v6398_v47  ;;  %3753 = vmatpush.bf16.msrb.mxu1 %v6494_v30  ;;  %v7961_v47 = vld [vmem:[#allocation8 + $0x784] sm:$0xf]  ;;  %v6650_v30 = vor.u32 %v7988_v29, %v6647_v37  ;;  %v6350_v60 = vor.u32 %v7913_v39, %v6347_v22  ;;  %v8024_v37 = vld [vmem:[#allocation8 + $0x97c] sm:$0xf]  ;;  %v6887_v39 = vld [vmem:[#allocation8 + $0xa44] sm:$0xf0] }
 0x1a3   :  { %3767 = vmatpush.bf16.msrb.mxu2 %v6590_v32  ;;  %v3480_v32 = vadd.f32 %v3479_v38, %v3466_v33  ;;  %v6542_v63 = vor.u32 %v7961_v47, %v6539_v43  ;;  %v8265_v33 = vld [vmem:[#allocation1] sm:$0xff]  ;;  %v8072_v22 = vld [vmem:[#allocation8 + $0xafc] sm:$0xf] }
 0x1a4   :  { %v7079_v47 = vld [vmem:[#allocation8 + $0xbc4] sm:$0xf0] }
 0x1a5   :  { %3781 = vmatpush.bf16.msrb.mxu3 %v6686_v55  ;;  %v8030_v55 = vld [vmem:[#allocation8 + $0x9ac] sm:$0xf] }
 0x1a6   :  { %3740 = vmatpush.bf16.msrb.mxu0 %v6386_v17  ;;  %3754 = vmatpush.bf16.msrb.mxu1 %v6482_v0  ;;  %v8102_v17 = vld [vmem:[#allocation8 + $0xbec] sm:$0xf]  ;;  %v6638_v0 = vor.u32 %v7985_v49, %v6635_v54 }
 0x1a7   :  { %3768 = vmatpush.bf16.msrb.mxu2 %v6578_v57  ;;  %v6818_v57 = vor.u32 %v8030_v55, %v6815_v21  ;;  %v3493_v7 = vpop.f32.mrf.mxu2  ;;  %v3507_v4 = vpop.f32.mrf.mxu3  ;;  %v8021_v55 = vld [vmem:[#allocation8 + $0x964] sm:$0xf]  ;;  %v6779_v21 = vld [vmem:[#allocation8 + $0x96c] sm:$0xf0] }
 0x1a8   :  { %v8872_v6 = vpop.f32.mrf.mxu0  ;;  %v8874_v25 = vpop.f32.mrf.mxu1 }
 0x1a9   :  { %3782 = vmatpush.bf16.msrb.mxu3 %v6674_v3  ;;  %v3494_v3 = vadd.f32 %v3493_v7, %v3480_v32  ;;  %v6794_v32 = vor.u32 %v8024_v37, %v6791_v10  ;;  %v8039_v37 = vld [vmem:[#allocation8 + $0x9f4] sm:$0xf] }
 0x1aa   :  { %3741 = vmatpush.bf16.msrb.mxu0 %v6374_v51  ;;  %3755 = vmatpush.bf16.msrb.mxu1 %v6470_v31  ;;  %v7106_v51 = vor.u32 %v8102_v17, %v7103_v62  ;;  %v6899_v31 = vld [vmem:[#allocation8 + $0xa5c] sm:$0xf0]  ;;  %v8093_v17 = vld [vmem:[#allocation8 + $0xba4] sm:$0xf]  ;;  %v7067_v62 = vld [vmem:[#allocation8 + $0xbac] sm:$0xf0] }
 0x1ab   :  { %3769 = vmatpush.bf16.msrb.mxu2 %v6566_v13  ;;  %v8075_v13 = vld [vmem:[#allocation8 + $0xb14] sm:$0xf]  ;;  %v3508_v24 = vadd.f32 %v3507_v4, %v3494_v3  ;;  %v6902_v36 = vor.u32 %v8051_v12, %v6899_v31  ;;  %v8018_v3 = vld [vmem:[#allocation8 + $0x94c] sm:$0xf]  ;;  %v6767_v4 = vld [vmem:[#allocation8 + $0x954] sm:$0xf0]  ;;  %v7070_v12 = vor.u32 %v8093_v17, %v7067_v62 }
 0x1ac   :  { %v6998_v29 = vor.u32 %v8075_v13, %v6995_v23  ;;  %v8066_v31 = vld [vmem:[#allocation8 + $0xacc] sm:$0xf]  ;;  %v6959_v13 = vld [vmem:[#allocation8 + $0xad4] sm:$0xf0]  ;;  %v8009_v17 = vld [vmem:[#allocation8 + $0x904] sm:$0xf] }
 0x1ad   :  { %3783 = vmatpush.bf16.msrb.mxu3 %v6662_v26  ;;  %v8099_v26 = vld [vmem:[#allocation8 + $0xbd4] sm:$0xf]  ;;  %v8090_v23 = vld [vmem:[#allocation8 + $0xb8c] sm:$0xf]  ;;  %v6731_v62 = vld [vmem:[#allocation8 + $0x90c] sm:$0xf0] }
 0x1ae   :  { %3742 = vmatpush.bf16.msrb.mxu0 %v6362_v42  ;;  %3756 = vmatpush.bf16.msrb.mxu1 %v6458_v40  ;;  %v8048_v42 = vld [vmem:[#allocation8 + $0xa3c] sm:$0xf]  ;;  %v7094_v38 = vor.u32 %v8099_v26, %v7091_v34  ;;  %v6983_v40 = vld [vmem:[#allocation8 + $0xb04] sm:$0xf0]  ;;  %v7055_v26 = vld [vmem:[#allocation8 + $0xb94] sm:$0xf0]  ;;  %v6770_v34 = vor.u32 %v8018_v3, %v6767_v4 }
 0x1af   :  { %3770 = vmatpush.bf16.msrb.mxu2 %v6554_v41  ;;  %v8266_v41 = vld [vmem:[#allocation1 + $0x9] sm:$0xff]  ;;  %v8876_v43 = vpop.f32.mrf.mxu2  ;;  %v6890_v49 = vor.u32 %v8048_v42, %v6887_v39  ;;  %v6986_v54 = vor.u32 %v8072_v22, %v6983_v40  ;;  %v8878_v50 = vpop.f32.mrf.mxu3  ;;  %v7058_v10 = vor.u32 %v8090_v23, %v7055_v26  ;;  %v6947_v39 = vld [vmem:[#allocation8 + $0xabc] sm:$0xf0]  ;;  %v7768_v23 = vld [vmem:[#allocation8 + $0x178] sm:$0xf0] }
 0x1b0   :  { %v8087_v40 = vld [vmem:[#allocation8 + $0xb74] sm:$0xf]  ;;  %v6923_v4 = vld [vmem:[#allocation8 + $0xa8c] sm:$0xf0] }
 0x1b1   :  { %3784 = vmatpush.bf16.msrb.mxu3 %v6650_v30  ;;  %v8268_v30 = vld [vmem:[#allocation1 + $0x1b] sm:$0xff]  ;;  %v5861_v26 = vld [vmem:[#allocation8 + $0x230] sm:$0xf] }
 0x1b2   :  { %3743 = vmatpush.bf16.msrb.mxu0 %v6350_v60  ;;  %3757 = vmatpush.bf16.msrb.mxu1 %v6446_v14  ;;  %v7082_v60 = vor.u32 %v8096_v46, %v7079_v47  ;;  %v6971_v14 = vld [vmem:[#allocation8 + $0xaec] sm:$0xf0] }
 0x1b3   :  { %3771 = vmatpush.bf16.msrb.mxu2 %v6542_v63  ;;  %v3521_v63 = vpop.f32.mrf.mxu0 }
 0x1b4   :  { %v3535_v7 = vpop.f32.mrf.mxu1 }
 0x1b5   :  { %3785 = vmatpush.bf16.msrb.mxu3 %v6638_v0  ;;  %3744 = vmatmul.bf16.vlgmr.msrb.gmra.mxu0 %v8265_v33  ;;  %v3522_v0 = vadd.f32 %v3521_v63, %v3508_v24  ;;  %v6851_v33 = vld [vmem:[#allocation8 + $0x9fc] sm:$0xf0] }
 0x1b6   :  { %3792 = vmatpush.bf16.msra.mxu0 %v6818_v57  ;;  %3806 = vmatpush.bf16.msra.mxu1 %v6914_v8  ;;  %v6782_v57 = vor.u32 %v8021_v55, %v6779_v21  ;;  %v6878_v8 = vor.u32 %v8045_v58, %v6875_v2  ;;  %v8036_v55 = vld [vmem:[#allocation8 + $0x9dc] sm:$0xf]  ;;  %v6839_v58 = vld [vmem:[#allocation8 + $0x9e4] sm:$0xf0] }
 0x1b7   :  { %3820 = vmatpush.bf16.msra.mxu2 %v7010_v9  ;;  %3758 = vmatmul.bf16.vlgmr.msrb.gmra.mxu1 %v8266_v41  ;;  %v6974_v9 = vor.u32 %v8069_v19, %v6971_v14  ;;  %v3536_v18 = vadd.f32 %v3535_v7, %v3522_v0  ;;  %v7043_v41 = vld [vmem:[#allocation8 + $0xb7c] sm:$0xf0]  ;;  %v6935_v2 = vld [vmem:[#allocation8 + $0xaa4] sm:$0xf0]  ;;  %v8084_v19 = vld [vmem:[#allocation8 + $0xb5c] sm:$0xf]  ;;  %v6842_v0 = vor.u32 %v8036_v55, %v6839_v58 }
 0x1b8   :  { %3772 = vmatmul.bf16.vlgmr.msrb.gmra.mxu2 %v8267_v44  ;;  %3786 = vmatmul.bf16.vlgmr.msrb.gmra.mxu3 %v8268_v30  ;;  %v6854_v30 = vor.u32 %v8039_v37, %v6851_v33  ;;  %v7046_v21 = vor.u32 %v8087_v40, %v7043_v41  ;;  %v7031_v14 = vld [vmem:[#allocation8 + $0xb64] sm:$0xf0]  ;;  %v8033_v7 = vld [vmem:[#allocation8 + $0x9c4] sm:$0xf] }
 0x1b9   :  { %3834 = vmatpush.bf16.msra.mxu3 %v7106_v51  ;;  %v6863_v51 = vld [vmem:[#allocation8 + $0xa14] sm:$0xf0]  ;;  %v7034_v3 = vor.u32 %v8084_v19, %v7031_v14  ;;  %v7765_v41 = vld [vmem:[#allocation8 + $0x160] sm:$0xf0]  ;;  %v5741_v19 = vld [vmem:[#allocation8 + $0x140] sm:$0xf] }
 0x1ba   :  { %3793 = vmatpush.bf16.msra.mxu0 %v6806_v35  ;;  %3807 = vmatpush.bf16.msra.mxu1 %v6902_v36  ;;  %v6866_v24 = vor.u32 %v8042_v11, %v6863_v51  ;;  %v6962_v35 = vor.u32 %v8066_v31, %v6959_v13  ;;  %v8015_v36 = vld [vmem:[#allocation8 + $0x934] sm:$0xf]  ;;  %v8081_v11 = vld [vmem:[#allocation8 + $0xb44] sm:$0xf]  ;;  %v7744_v51 = vld [vmem:[#allocation8 + $0xb8] sm:$0xf0]  ;;  %v6734_v13 = vor.u32 %v8009_v17, %v6731_v62 }
 0x1bb   :  { %3821 = vmatpush.bf16.msra.mxu2 %v6998_v29  ;;  %v6755_v29 = vld [vmem:[#allocation8 + $0x93c] sm:$0xf0]  ;;  %v3549_v42 = vpop.f32.mrf.mxu2  ;;  %v3563_v44 = vpop.f32.mrf.mxu3  ;;  %v5765_v31 = vld [vmem:[#allocation8 + $0x170] sm:$0xf]  ;;  %v8269_v14 = vld [vmem:[#allocation1 + $0x24] sm:$0xff] }
 0x1bc   :  { %v3550_v22 = vadd.f32 %v3549_v42, %v3536_v18  ;;  %v6758_v46 = vor.u32 %v8015_v36, %v6755_v29  ;;  %v7019_v18 = vld [vmem:[#allocation8 + $0xb4c] sm:$0xf0]  ;;  %v7816_v29 = vld [vmem:[#allocation8 + $0x2f8] sm:$0xf0]  ;;  %v5766_v42 = vor.u32 %v7768_v23, %v5765_v31  ;;  %v8884_v55 = vpop.f32.mrf.mxu1  ;;  %v7762_v17 = vld [vmem:[#allocation8 + $0x148] sm:$0xf0] }
 0x1bd   :  { %3835 = vmatpush.bf16.msra.mxu3 %v7094_v38  ;;  %v8063_v38 = vld [vmem:[#allocation8 + $0xab4] sm:$0xf]  ;;  %v5957_v36 = vld [vmem:[#allocation8 + $0x2f0] sm:$0xf]  ;;  %v7022_v37 = vor.u32 %v8081_v11, %v7019_v18  ;;  %v5837_v62 = vld [vmem:[#allocation8 + $0x200] sm:$0xf]  ;;  %v5742_v11 = vor.u32 %v7762_v17, %v5741_v19 }
 0x1be   :  { %3794 = vmatpush.bf16.msra.mxu0 %v6794_v32  ;;  %3808 = vmatpush.bf16.msra.mxu1 %v6890_v49  ;;  %v8880_v47 = vadd.f32 %v3563_v44, %v3550_v22  ;;  %v6950_v32 = vor.u32 %v8063_v38, %v6947_v39  ;;  %v8012_v49 = vld [vmem:[#allocation8 + $0x91c] sm:$0xf]  ;;  %v5657_v38 = vld [vmem:[#allocation8 + $0x98] sm:$0xf]  ;;  %v7741_v39 = vld [vmem:[#allocation8 + $0xa0] sm:$0xf0]  ;;  %v5958_v40 = vor.u32 %v7816_v29, %v5957_v36 }
 0x1bf   :  { %3822 = vmatpush.bf16.msra.mxu2 %v6986_v54  ;;  %v6743_v54 = vld [vmem:[#allocation8 + $0x924] sm:$0xf0]  ;;  %v5753_v22 = vld [vmem:[#allocation8 + $0x158] sm:$0xf]  ;;  %v7807_v29 = vld [vmem:[#allocation8 + $0x2b0] sm:$0xf0] }
 0x1c0   :  { %v6746_v63 = vor.u32 %v8012_v49, %v6743_v54  ;;  %v5849_v44 = vld [vmem:[#allocation8 + $0x218] sm:$0xf]  ;;  %v7813_v49 = vld [vmem:[#allocation8 + $0x2e0] sm:$0xf0]  ;;  %v5658_v54 = vor.u32 %v7741_v39, %v5657_v38  ;;  %v5729_v31 = vld [vmem:[#allocation8 + $0x128] sm:$0xf] }
 0x1c1   :  { %3836 = vmatpush.bf16.msra.mxu3 %v7082_v60  ;;  %v8060_v60 = vld [vmem:[#allocation8 + $0xa9c] sm:$0xf]  ;;  %v5921_v36 = vld [vmem:[#allocation8 + $0x2a8] sm:$0xf]  ;;  %v5609_v19 = vld [vmem:[#allocation8 + $0x38] sm:$0xf] }
 0x1c2   :  { %3795 = vmatpush.bf16.msra.mxu0 %v6782_v57  ;;  %3809 = vmatpush.bf16.msra.mxu1 %v6878_v8  ;;  %v6938_v57 = vor.u32 %v8060_v60, %v6935_v2  ;;  %v6827_v8 = vld [vmem:[#allocation8 + $0x9cc] sm:$0xf0]  ;;  %v5645_v60 = vld [vmem:[#allocation8 + $0x80] sm:$0xf]  ;;  %v7738_v2 = vld [vmem:[#allocation8 + $0x88] sm:$0xf0] }
 0x1c3   :  { %3823 = vmatpush.bf16.msra.mxu2 %v6974_v9  ;;  %v8057_v9 = vld [vmem:[#allocation8 + $0xa84] sm:$0xf] }
 0x1c5   :  { %3837 = vmatpush.bf16.msra.mxu3 %v7070_v12  ;;  %v5669_v12 = vld [vmem:[#allocation8 + $0xb0] sm:$0xf] }
 0x1c6   :  { %3796 = vmatpush.bf16.msra.mxu0 %v6770_v34  ;;  %3810 = vmatpush.bf16.msra.mxu1 %v6866_v24  ;;  %v7792_v34 = vld [vmem:[#allocation8 + $0x238] sm:$0xf0]  ;;  %v6830_v24 = vor.u32 %v8033_v7, %v6827_v8  ;;  %v5933_v8 = vld [vmem:[#allocation8 + $0x2c0] sm:$0xf] }
 0x1c7   :  { %3824 = vmatpush.bf16.msra.mxu2 %v6962_v35  ;;  %v6926_v35 = vor.u32 %v8057_v9, %v6923_v4  ;;  %v5862_v33 = vor.u32 %v7792_v34, %v5861_v26  ;;  %v8271_v7 = vld [vmem:[#allocation1 + $0x36] sm:$0xff]  ;;  %v7810_v9 = vld [vmem:[#allocation8 + $0x2c8] sm:$0xf0]  ;;  %v5646_v4 = vor.u32 %v7738_v2, %v5645_v60  ;;  %v7759_v26 = vld [vmem:[#allocation8 + $0x130] sm:$0xf0] }
 0x1c8   :  { %v5934_v23 = vor.u32 %v7810_v9, %v5933_v8  ;;  %v5825_v34 = vld [vmem:[#allocation8 + $0x1e8] sm:$0xf]  ;;  %v5730_v38 = vor.u32 %v7759_v26, %v5729_v31  ;;  %v5897_v9 = vld [vmem:[#allocation8 + $0x278] sm:$0xf]  ;;  %v5597_v31 = vld [vmem:[#allocation8 + $0x20] sm:$0xf] }
 0x1c9   :  { %3838 = vmatpush.bf16.msra.mxu3 %v7058_v10  ;;  %v5670_v10 = vor.u32 %v7744_v51, %v5669_v12  ;;  %v5633_v12 = vld [vmem:[#allocation8 + $0x68] sm:$0xf]  ;;  %v7735_v51 = vld [vmem:[#allocation8 + $0x70] sm:$0xf0]  ;;  %v5693_v26 = vld [vmem:[#allocation8 + $0xe0] sm:$0xf] }
 0x1ca   :  { %3797 = vmatpush.bf16.msra.mxu0 %v6758_v46  ;;  %3811 = vmatpush.bf16.msra.mxu1 %v6854_v30  ;;  %v7789_v46 = vld [vmem:[#allocation8 + $0x220] sm:$0xf0]  ;;  %v8882_v30 = vpop.f32.mrf.mxu0 }
 0x1cb   :  { %3825 = vmatpush.bf16.msra.mxu2 %v6950_v32  ;;  %v5945_v32 = vld [vmem:[#allocation8 + $0x2d8] sm:$0xf]  ;;  %v5850_v58 = vor.u32 %v7789_v46, %v5849_v44  ;;  %v5922_v46 = vor.u32 %v7807_v29, %v5921_v36  ;;  %v7774_v36 = vld [vmem:[#allocation8 + $0x1a8] sm:$0xf0]  ;;  %v5885_v29 = vld [vmem:[#allocation8 + $0x260] sm:$0xf] }
 0x1cd   :  { %3839 = vmatpush.bf16.msra.mxu3 %v7046_v21  ;;  %v5754_v21 = vor.u32 %v7765_v41, %v5753_v22  ;;  %v5621_v22 = vld [vmem:[#allocation8 + $0x50] sm:$0xf] }
 0x1ce   :  { %3798 = vmatpush.bf16.msra.mxu0 %v6746_v63  ;;  %3812 = vmatpush.bf16.msra.mxu1 %v6842_v0  ;;  %v5946_v63 = vor.u32 %v7813_v49, %v5945_v32  ;;  %v7786_v0 = vld [vmem:[#allocation8 + $0x208] sm:$0xf0]  ;;  %v5717_v41 = vld [vmem:[#allocation8 + $0x110] sm:$0xf]  ;;  %v7756_v32 = vld [vmem:[#allocation8 + $0x118] sm:$0xf0] }
 0x1cf   :  { %3826 = vmatpush.bf16.msra.mxu2 %v6938_v57  ;;  %v8270_v57 = vld [vmem:[#allocation1 + $0x2d] sm:$0xff]  ;;  %v5838_v18 = vor.u32 %v7786_v0, %v5837_v62  ;;  %v7753_v0 = vld [vmem:[#allocation8 + $0x100] sm:$0xf0] }
 0x1d0   :  { %v5813_v49 = vld [vmem:[#allocation8 + $0x1d0] sm:$0xf] }
 0x1d1   :  { %3840 = vmatpush.bf16.msra.mxu3 %v7034_v3  ;;  %v8272_v3 = vld [vmem:[#allocation1 + $0x3f] sm:$0xff] }
 0x1d2   :  { %3799 = vmatpush.bf16.msra.mxu0 %v6734_v13  ;;  %3813 = vmatpush.bf16.msra.mxu1 %v6830_v24  ;;  %v8886_v13 = vpop.f32.mrf.mxu2  ;;  %v7783_v24 = vld [vmem:[#allocation8 + $0x1f0] sm:$0xf0] }
 0x1d3   :  { %3827 = vmatpush.bf16.msra.mxu2 %v6926_v35  ;;  %v3577_v35 = vpop.f32.mrf.mxu0  ;;  %v5826_v39 = vor.u32 %v7783_v24, %v5825_v34  ;;  %v7750_v24 = vld [vmem:[#allocation8 + $0xe8] sm:$0xf0] }
 0x1d5   :  { %3841 = vmatpush.bf16.msra.mxu3 %v7022_v37  ;;  %3800 = vmatmul.bf16.vlgmr.msra.gmra.mxu0 %v8269_v14  ;;  %v8888_v37 = vpop.f32.mrf.mxu3  ;;  %v7729_v14 = vld [vmem:[#allocation8 + $0x40] sm:$0xf0] }
 0x1d6   :  { %3848 = vmatpush.bf16.msrb.mxu0 %v5670_v10  ;;  %3862 = vmatpush.bf16.msrb.mxu1 %v5766_v42  ;;  %v3578_v10 = vadd.f32 %v3577_v35, %v8880_v47  ;;  %v5634_v42 = vor.u32 %v7735_v51, %v5633_v12  ;;  %v5718_v47 = vor.u32 %v7756_v32, %v5717_v41  ;;  %v5789_v35 = vld [vmem:[#allocation8 + $0x1a0] sm:$0xf]  ;;  %v7747_v41 = vld [vmem:[#allocation8 + $0xd0] sm:$0xf0] }
 0x1d7   :  { %3876 = vmatpush.bf16.msrb.mxu2 %v5862_v33  ;;  %3814 = vmatmul.bf16.vlgmr.msra.gmra.mxu1 %v8270_v57  ;;  %v3591_v33 = vpop.f32.mrf.mxu1  ;;  %v5801_v57 = vld [vmem:[#allocation8 + $0x1b8] sm:$0xf]  ;;  %v7771_v32 = vld [vmem:[#allocation8 + $0x190] sm:$0xf0] }
 0x1d8   :  { %3828 = vmatmul.bf16.vlgmr.msra.gmra.mxu2 %v8271_v7  ;;  %3842 = vmatmul.bf16.vlgmr.msra.gmra.mxu3 %v8272_v3  ;;  %v3592_v44 = vadd.f32 %v3591_v33, %v3578_v10  ;;  %v7777_v7 = vld [vmem:[#allocation8 + $0x1c0] sm:$0xf0]  ;;  %v7798_v10 = vld [vmem:[#allocation8 + $0x268] sm:$0xf0]  ;;  %v5585_v33 = vld [vmem:[#allocation8 + $0x8] sm:$0xf] }
 0x1d9   :  { %3890 = vmatpush.bf16.msrb.mxu3 %v5958_v40  ;;  %v7732_v40 = vld [vmem:[#allocation8 + $0x58] sm:$0xf0]  ;;  %v7801_v3 = vld [vmem:[#allocation8 + $0x280] sm:$0xf0]  ;;  %v5802_v51 = vor.u32 %v7777_v7, %v5801_v57 }
 0x1da   :  { %3849 = vmatpush.bf16.msrb.mxu0 %v5658_v54  ;;  %3863 = vmatpush.bf16.msrb.mxu1 %v5754_v21  ;;  %v7780_v54 = vld [vmem:[#allocation8 + $0x1d8] sm:$0xf0]  ;;  %v5909_v21 = vld [vmem:[#allocation8 + $0x290] sm:$0xf]  ;;  %v5622_v60 = vor.u32 %v7732_v40, %v5621_v22  ;;  %v5898_v34 = vor.u32 %v7801_v3, %v5897_v9  ;;  %v5790_v22 = vor.u32 %v7774_v36, %v5789_v35  ;;  %v5681_v40 = vld [vmem:[#allocation8 + $0xc8] sm:$0xf] }
 0x1db   :  { %3877 = vmatpush.bf16.msrb.mxu2 %v5850_v58  ;;  %v7804_v58 = vld [vmem:[#allocation8 + $0x298] sm:$0xf0]  ;;  %v5814_v2 = vor.u32 %v7780_v54, %v5813_v49  ;;  %v3605_v62 = vpop.f32.mrf.mxu2  ;;  %v5873_v49 = vld [vmem:[#allocation8 + $0x248] sm:$0xf]  ;;  %v7795_v54 = vld [vmem:[#allocation8 + $0x250] sm:$0xf0] }
 0x1dc   :  { %v5910_v17 = vor.u32 %v7804_v58, %v5909_v21  ;;  %v3606_v8 = vadd.f32 %v3605_v62, %v3592_v44  ;;  %v5777_v44 = vld [vmem:[#allocation8 + $0x188] sm:$0xf]  ;;  %v6053_v21 = vld [vmem:[#allocation8 + $0x3b0] sm:$0xf]  ;;  %v7840_v58 = vld [vmem:[#allocation8 + $0x3b8] sm:$0xf0]  ;;  %v5874_v57 = vor.u32 %v7795_v54, %v5873_v49 }
 0x1dd   :  { %3891 = vmatpush.bf16.msrb.mxu3 %v5946_v63  ;;  %v5705_v63 = vld [vmem:[#allocation8 + $0xf8] sm:$0xf]  ;;  %v6341_v62 = vld [vmem:[#allocation8 + $0x5f0] sm:$0xf]  ;;  %v6054_v7 = vor.u32 %v7840_v58, %v6053_v21  ;;  %v1290_v49 = vperm.slane %v8855_v45, 1 }
 0x1de   :  { %3850 = vmatpush.bf16.msrb.mxu0 %v5646_v4  ;;  %3864 = vmatpush.bf16.msrb.mxu1 %v5742_v11  ;;  %v3619_v4 = vpop.f32.mrf.mxu3  ;;  %v5610_v11 = vor.u32 %v7729_v14, %v5609_v19  ;;  %v5706_v12 = vor.u32 %v7753_v0, %v5705_v63  ;;  %v6245_v19 = vld [vmem:[#allocation8 + $0x530] sm:$0xf]  ;;  %v7888_v14 = vld [vmem:[#allocation8 + $0x538] sm:$0xf0]  ;;  %v5682_v63 = vor.u32 %v7747_v41, %v5681_v40  ;;  %v6041_v3 = vld [vmem:[#allocation8 + $0x398] sm:$0xf] }
 0x1df   :  { %3878 = vmatpush.bf16.msrb.mxu2 %v5838_v18  ;;  %v8891_v18 = vadd.f32 %v3619_v4, %v3606_v8  ;;  %v7912_v0 = vld [vmem:[#allocation8 + $0x5f8] sm:$0xf0]  ;;  %v6246_v9 = vor.u32 %v7888_v14, %v6245_v19  ;;  %v7837_v4 = vld [vmem:[#allocation8 + $0x3a0] sm:$0xf0]  ;;  %v8895_v36 = vpop.f32.mrf.mxu1  ;;  %v6221_v40 = vld [vmem:[#allocation8 + $0x500] sm:$0xf] }
 0x1e0   :  { %v6042_v35 = vor.u32 %v7837_v4, %v6041_v3  ;;  %v7882_v41 = vld [vmem:[#allocation8 + $0x508] sm:$0xf0]  ;;  %v6017_v21 = vld [vmem:[#allocation8 + $0x368] sm:$0xf]  ;;  %v7831_v58 = vld [vmem:[#allocation8 + $0x370] sm:$0xf0] }
 0x1e1   :  { %3892 = vmatpush.bf16.msrb.mxu3 %v5934_v23  ;;  %v7726_v23 = vld [vmem:[#allocation8 + $0x28] sm:$0xf0]  ;;  %v7879_v19 = vld [vmem:[#allocation8 + $0x4f0] sm:$0xf0]  ;;  %v7828_v3 = vld [vmem:[#allocation8 + $0x358] sm:$0xf0] }
 0x1e2   :  { %3851 = vmatpush.bf16.msrb.mxu0 %v5634_v42  ;;  %3865 = vmatpush.bf16.msrb.mxu1 %v5730_v38  ;;  %v5598_v42 = vor.u32 %v7726_v23, %v5597_v31  ;;  %v7723_v38 = vld [vmem:[#allocation8 + $0x10] sm:$0xf0]  ;;  %v6233_v31 = vld [vmem:[#allocation8 + $0x518] sm:$0xf]  ;;  %v7885_v23 = vld [vmem:[#allocation8 + $0x520] sm:$0xf0] }
 0x1e3   :  { %3879 = vmatpush.bf16.msrb.mxu2 %v5826_v39  ;;  %v5694_v39 = vor.u32 %v7750_v24, %v5693_v26  ;;  %v8893_v26 = vpop.f32.mrf.mxu0  ;;  %v7909_v24 = vld [vmem:[#allocation8 + $0x5e0] sm:$0xf0]  ;;  %v6101_v4 = vld [vmem:[#allocation8 + $0x410] sm:$0xf] }
 0x1e5   :  { %3893 = vmatpush.bf16.msrb.mxu3 %v5922_v46  ;;  %v5886_v46 = vor.u32 %v7798_v10, %v5885_v29  ;;  %v6234_v10 = vor.u32 %v7885_v23, %v6233_v31  ;;  %v6197_v31 = vld [vmem:[#allocation8 + $0x4d0] sm:$0xf]  ;;  %v7876_v23 = vld [vmem:[#allocation8 + $0x4d8] sm:$0xf0] }
 0x1e6   :  { %3852 = vmatpush.bf16.msrb.mxu0 %v5622_v60  ;;  %3866 = vmatpush.bf16.msrb.mxu1 %v5718_v47  ;;  %v6149_v60 = vld [vmem:[#allocation8 + $0x470] sm:$0xf]  ;;  %v5586_v47 = vor.u32 %v7723_v38, %v5585_v33  ;;  %v7834_v33 = vld [vmem:[#allocation8 + $0x388] sm:$0xf0]  ;;  %v6125_v38 = vld [vmem:[#allocation8 + $0x440] sm:$0xf]  ;;  %v8904_v14 = vpop.f32.mrf.mxu3 }
 0x1e7   :  { %3880 = vmatpush.bf16.msrb.mxu2 %v5814_v2  ;;  %v7864_v2 = vld [vmem:[#allocation8 + $0x478] sm:$0xf0] }
 0x1e8   :  { %v6150_v8 = vor.u32 %v7864_v2, %v6149_v60  ;;  %v6113_v60 = vld [vmem:[#allocation8 + $0x428] sm:$0xf] }
 0x1e9   :  { %3894 = vmatpush.bf16.msrb.mxu3 %v5910_v17  ;;  %v5778_v17 = vor.u32 %v7771_v32, %v5777_v44  ;;  %v6317_v44 = vld [vmem:[#allocation8 + $0x5c0] sm:$0xf]  ;;  %v6209_v2 = vld [vmem:[#allocation8 + $0x4e8] sm:$0xf] }
 0x1ea   :  { %3853 = vmatpush.bf16.msrb.mxu0 %v5610_v11  ;;  %3867 = vmatpush.bf16.msrb.mxu1 %v5706_v12  ;;  %v6137_v11 = vld [vmem:[#allocation8 + $0x458] sm:$0xf]  ;;  %v6342_v12 = vor.u32 %v7912_v0, %v6341_v62  ;;  %v6018_v0 = vor.u32 %v7831_v58, %v6017_v21  ;;  %v7897_v21 = vld [vmem:[#allocation8 + $0x580] sm:$0xf0] }
 0x1eb   :  { %3881 = vmatpush.bf16.msrb.mxu2 %v5802_v51  ;;  %v7861_v51 = vld [vmem:[#allocation8 + $0x460] sm:$0xf0] }
 0x1ec   :  { %v6138_v29 = vor.u32 %v7861_v51, %v6137_v11  ;;  %v7852_v51 = vld [vmem:[#allocation8 + $0x418] sm:$0xf0] }
 0x1ed   :  { %3895 = vmatpush.bf16.msrb.mxu3 %v5898_v34  ;;  %v6329_v34 = vld [vmem:[#allocation8 + $0x5d8] sm:$0xf] }
 0x1ee   :  { %3854 = vmatpush.bf16.msrb.mxu0 %v5598_v42  ;;  %3868 = vmatpush.bf16.msrb.mxu1 %v5694_v39  ;;  %v6029_v42 = vld [vmem:[#allocation8 + $0x380] sm:$0xf]  ;;  %v6330_v39 = vor.u32 %v7909_v24, %v6329_v34  ;;  %v6293_v34 = vld [vmem:[#allocation8 + $0x590] sm:$0xf]  ;;  %v7900_v24 = vld [vmem:[#allocation8 + $0x598] sm:$0xf0] }
 0x1ef   :  { %3882 = vmatpush.bf16.msrb.mxu2 %v5790_v22  ;;  %v7858_v22 = vld [vmem:[#allocation8 + $0x448] sm:$0xf0]  ;;  %v6030_v32 = vor.u32 %v7834_v33, %v6029_v42  ;;  %v6198_v42 = vor.u32 %v7876_v23, %v6197_v31  ;;  %v7825_v33 = vld [vmem:[#allocation8 + $0x340] sm:$0xf0]  ;;  %v6065_v31 = vld [vmem:[#allocation8 + $0x3c8] sm:$0xf] }
 0x1f0   :  { %v6126_v54 = vor.u32 %v7858_v22, %v6125_v38  ;;  %v6089_v38 = vld [vmem:[#allocation8 + $0x3f8] sm:$0xf]  ;;  %v6294_v22 = vor.u32 %v7900_v24, %v6293_v34  ;;  %v7843_v23 = vld [vmem:[#allocation8 + $0x3d0] sm:$0xf0]  ;;  %v6161_v34 = vld [vmem:[#allocation8 + $0x488] sm:$0xf] }
 0x1f1   :  { %3896 = vmatpush.bf16.msrb.mxu3 %v5886_v46  ;;  %v7906_v46 = vld [vmem:[#allocation8 + $0x5c8] sm:$0xf0] }
 0x1f2   :  { %3855 = vmatpush.bf16.msrb.mxu0 %v5586_v47  ;;  %3869 = vmatpush.bf16.msrb.mxu1 %v5682_v63  ;;  %v8902_v47 = vpop.f32.mrf.mxu2  ;;  %v6305_v63 = vld [vmem:[#allocation8 + $0x5a8] sm:$0xf] }
 0x1f3   :  { %3883 = vmatpush.bf16.msrb.mxu2 %v5778_v17  ;;  %v7903_v17 = vld [vmem:[#allocation8 + $0x5b0] sm:$0xf0] }
 0x1f5   :  { %3897 = vmatpush.bf16.msrb.mxu3 %v5874_v57  ;;  %3856 = vmatmul.bf16.vlgmr.msrb.gmra.mxu0 %v8814_v61  ;;  %v6222_v61 = vor.u32 %v7882_v41, %v6221_v40  ;;  %v3647_v57 = vpop.f32.mrf.mxu1  ;;  %v6185_v41 = vld [vmem:[#allocation8 + $0x4b8] sm:$0xf] }
 0x1f6   :  { %3904 = vmatpush.bf16.msra.mxu0 %v6054_v7  ;;  %3918 = vmatpush.bf16.msra.mxu1 %v6150_v8  ;;  %v6210_v8 = vor.u32 %v7879_v19, %v6209_v2  ;;  %v5981_v19 = vld [vmem:[#allocation8 + $0x320] sm:$0xf] }
 0x1f7   :  { %3932 = vmatpush.bf16.msra.mxu2 %v6246_v9  ;;  %3870 = vmatmul.bf16.vlgmr.msrb.gmra.mxu1 %v8816_v53  ;;  %v6318_v53 = vor.u32 %v7906_v46, %v6317_v44  ;;  %v6005_v9 = vld [vmem:[#allocation8 + $0x350] sm:$0xf]  ;;  %v7873_v44 = vld [vmem:[#allocation8 + $0x4c0] sm:$0xf0] }
 0x1f8   :  { %3884 = vmatmul.bf16.vlgmr.msrb.gmra.mxu2 %v8818_v1  ;;  %3898 = vmatmul.bf16.vlgmr.msrb.gmra.mxu3 %v8822_v56  ;;  %v7855_v1 = vld [vmem:[#allocation8 + $0x430] sm:$0xf0]  ;;  %v3633_v56 = vpop.f32.mrf.mxu0  ;;  %v6186_v2 = vor.u32 %v7873_v44, %v6185_v41  ;;  %v7960_v44 = vld [vmem:[#allocation8 + $0x778] sm:$0xf0] }
 0x1f9   :  { %3946 = vmatpush.bf16.msra.mxu3 %v6342_v12  ;;  %v3634_v62 = vadd.f32 %v3633_v56, %v1290_v49  ;;  %v6114_v7 = vor.u32 %v7855_v1, %v6113_v60  ;;  %v6306_v12 = vor.u32 %v7903_v17, %v6305_v63  ;;  %v7822_v56 = vld [vmem:[#allocation8 + $0x328] sm:$0xf0]  ;;  %v6077_v63 = vld [vmem:[#allocation8 + $0x3e0] sm:$0xf] }
 0x1fa   :  { %3905 = vmatpush.bf16.msra.mxu0 %v6042_v35  ;;  %3919 = vmatpush.bf16.msra.mxu1 %v6138_v29  ;;  %v6006_v35 = vor.u32 %v7828_v3, %v6005_v9  ;;  %v5993_v29 = vld [vmem:[#allocation8 + $0x338] sm:$0xf]  ;;  %v5982_v3 = vor.u32 %v7822_v56, %v5981_v19 }
 0x1fb   :  { %3933 = vmatpush.bf16.msra.mxu2 %v6234_v10  ;;  %v3648_v11 = vadd.f32 %v3647_v57, %v3634_v62  ;;  %v6102_v10 = vor.u32 %v7852_v51, %v6101_v4  ;;  %v3661_v40 = vpop.f32.mrf.mxu2  ;;  %v5994_v58 = vor.u32 %v7825_v33, %v5993_v29  ;;  %v7846_v62 = vld [vmem:[#allocation8 + $0x3e8] sm:$0xf0]  ;;  %v5969_v4 = vld [vmem:[#allocation8 + $0x308] sm:$0xf]  ;;  %v7867_v29 = vld [vmem:[#allocation8 + $0x490] sm:$0xf0] }
 0x1fc   :  { %v7870_v57 = vld [vmem:[#allocation8 + $0x4a8] sm:$0xf0] }
 0x1fd   :  { %3947 = vmatpush.bf16.msra.mxu3 %v6330_v39  ;;  %v7849_v39 = vld [vmem:[#allocation8 + $0x400] sm:$0xf0]  ;;  %v3662_v46 = vadd.f32 %v3661_v40, %v3648_v11  ;;  %v3649_v9 = vpop.f32.mrf.mxu1  ;;  %v7819_v11 = vld [vmem:[#allocation8 + $0x310] sm:$0xf0] }
 0x1fe   :  { %3906 = vmatpush.bf16.msra.mxu0 %v6030_v32  ;;  %3920 = vmatpush.bf16.msra.mxu1 %v6126_v54  ;;  %v3675_v32 = vpop.f32.mrf.mxu3  ;;  %v6090_v60 = vor.u32 %v7849_v39, %v6089_v38  ;;  %v6437_v38 = vld [vmem:[#allocation8 + $0x6b0] sm:$0xf]  ;;  %v7936_v39 = vld [vmem:[#allocation8 + $0x6b8] sm:$0xf0]  ;;  %v5970_v41 = vor.u32 %v7819_v11, %v5969_v4 }
 0x1ff   :  { %3934 = vmatpush.bf16.msra.mxu2 %v6222_v61  ;;  %v6281_v61 = vld [vmem:[#allocation8 + $0x578] sm:$0xf] }
 0x200   :  { %v3635_v54 = vpop.f32.mrf.mxu0  ;;  %v6282_v17 = vor.u32 %v7897_v21, %v6281_v61  ;;  %v6066_v61 = vor.u32 %v7843_v23, %v6065_v31  ;;  %v6162_v21 = vor.u32 %v7867_v29, %v6161_v34  ;;  %v6509_v31 = vld [vmem:[#allocation8 + $0x740] sm:$0xf]  ;;  %v7954_v34 = vld [vmem:[#allocation8 + $0x748] sm:$0xf0] }
 0x201   :  { %3948 = vmatpush.bf16.msra.mxu3 %v6318_v53  ;;  %v8908_v53 = vadd.f32 %v3675_v32, %v3662_v46  ;;  %v3636_v1 = vadd.f32 %v3635_v54, %v1290_v49  ;;  %v6078_v49 = vor.u32 %v7846_v62, %v6077_v63  ;;  %v6629_v46 = vld [vmem:[#allocation8 + $0x830] sm:$0xf]  ;;  %v7984_v32 = vld [vmem:[#allocation8 + $0x838] sm:$0xf0]  ;;  %v6425_v63 = vld [vmem:[#allocation8 + $0x698] sm:$0xf] }
 0x202   :  { %3907 = vmatpush.bf16.msra.mxu0 %v6018_v0  ;;  %3921 = vmatpush.bf16.msra.mxu1 %v6114_v7  ;;  %v6173_v0 = vld [vmem:[#allocation8 + $0x4a0] sm:$0xf]  ;;  %v6630_v56 = vor.u32 %v7984_v32, %v6629_v46  ;;  %v6521_v62 = vld [vmem:[#allocation8 + $0x758] sm:$0xf]  ;;  %v7999_v32 = vld [vmem:[#allocation8 + $0x8b0] sm:$0xf0] }
 0x203   :  { %3935 = vmatpush.bf16.msra.mxu2 %v6210_v8  ;;  %v6269_v7 = vld [vmem:[#allocation8 + $0x560] sm:$0xf]  ;;  %v7894_v8 = vld [vmem:[#allocation8 + $0x568] sm:$0xf0]  ;;  %v6174_v51 = vor.u32 %v7870_v57, %v6173_v0  ;;  %v7957_v57 = vld [vmem:[#allocation8 + $0x760] sm:$0xf0] }
 0x204   :  { %v6270_v24 = vor.u32 %v7894_v8, %v6269_v7  ;;  %v6617_v7 = vld [vmem:[#allocation8 + $0x818] sm:$0xf]  ;;  %v7981_v8 = vld [vmem:[#allocation8 + $0x820] sm:$0xf0]  ;;  %v6522_v11 = vor.u32 %v7957_v57, %v6521_v62  ;;  %v6701_v29 = vld [vmem:[#allocation8 + $0x8c0] sm:$0xf] }
 0x205   :  { %3949 = vmatpush.bf16.msra.mxu3 %v6306_v12  ;;  %v3650_v12 = vadd.f32 %v3649_v9, %v3636_v1  ;;  %v6713_v9 = vld [vmem:[#allocation8 + $0x8d8] sm:$0xf]  ;;  %v6581_v62 = vld [vmem:[#allocation8 + $0x7d0] sm:$0xf] }
 0x206   :  { %3908 = vmatpush.bf16.msra.mxu0 %v6006_v35  ;;  %3922 = vmatpush.bf16.msra.mxu1 %v6102_v10  ;;  %v3663_v35 = vpop.f32.mrf.mxu2  ;;  %v6257_v10 = vld [vmem:[#allocation8 + $0x548] sm:$0xf]  ;;  %v3677_v40 = vpop.f32.mrf.mxu3  ;;  %v6677_v57 = vld [vmem:[#allocation8 + $0x890] sm:$0xf] }
 0x207   :  { %3936 = vmatpush.bf16.msra.mxu2 %v6198_v42  ;;  %v7891_v42 = vld [vmem:[#allocation8 + $0x550] sm:$0xf0]  ;;  %v3664_v33 = vadd.f32 %v3663_v35, %v3650_v12  ;;  %v6618_v12 = vor.u32 %v7981_v8, %v6617_v7  ;;  %v7978_v35 = vld [vmem:[#allocation8 + $0x808] sm:$0xf0]  ;;  %v7996_v7 = vld [vmem:[#allocation8 + $0x898] sm:$0xf0] }
 0x208   :  { %v6258_v1 = vor.u32 %v7891_v42, %v6257_v10  ;;  %v8002_v10 = vld [vmem:[#allocation8 + $0x8c8] sm:$0xf0] }
 0x209   :  { %3950 = vmatpush.bf16.msra.mxu3 %v6294_v22  ;;  %v6533_v22 = vld [vmem:[#allocation8 + $0x770] sm:$0xf]  ;;  %v8912_v54 = vadd.f32 %v3677_v40, %v3664_v33  ;;  %v6510_v33 = vor.u32 %v7954_v34, %v6509_v31  ;;  %v6702_v40 = vor.u32 %v8002_v10, %v6701_v29  ;;  %v6569_v31 = vld [vmem:[#allocation8 + $0x7b8] sm:$0xf]  ;;  %v7993_v10 = vld [vmem:[#allocation8 + $0x880] sm:$0xf0] }
 0x20a   :  { %3909 = vmatpush.bf16.msra.mxu0 %v5994_v58  ;;  %3923 = vmatpush.bf16.msra.mxu1 %v6090_v60  ;;  %v6725_v58 = vld [vmem:[#allocation8 + $0x8f0] sm:$0xf]  ;;  %v8008_v60 = vld [vmem:[#allocation8 + $0x8f8] sm:$0xf0]  ;;  %v6534_v19 = vor.u32 %v7960_v44, %v6533_v22  ;;  %v6497_v22 = vld [vmem:[#allocation8 + $0x728] sm:$0xf] }
 0x20b   :  { %3937 = vmatpush.bf16.msra.mxu2 %v6186_v2  ;;  %v6438_v2 = vor.u32 %v7936_v39, %v6437_v38  ;;  %v6726_v0 = vor.u32 %v8008_v60, %v6725_v58  ;;  %v6401_v39 = vld [vmem:[#allocation8 + $0x668] sm:$0xf]  ;;  %v6665_v29 = vld [vmem:[#allocation8 + $0x878] sm:$0xf] }
 0x20c   :  { %v6593_v44 = vld [vmem:[#allocation8 + $0x7e8] sm:$0xf] }
 0x20d   :  { %3951 = vmatpush.bf16.msra.mxu3 %v6282_v17  ;;  %v7933_v17 = vld [vmem:[#allocation8 + $0x6a0] sm:$0xf0] }
 0x20e   :  { %3910 = vmatpush.bf16.msra.mxu0 %v5982_v3  ;;  %3924 = vmatpush.bf16.msra.mxu1 %v6078_v49  ;;  %v8005_v3 = vld [vmem:[#allocation8 + $0x8e0] sm:$0xf0]  ;;  %v6426_v4 = vor.u32 %v7933_v17, %v6425_v63  ;;  %v6413_v49 = vld [vmem:[#allocation8 + $0x680] sm:$0xf]  ;;  %v7948_v17 = vld [vmem:[#allocation8 + $0x718] sm:$0xf0] }
 0x20f   :  { %3938 = vmatpush.bf16.msra.mxu2 %v6174_v51  ;;  %v7930_v51 = vld [vmem:[#allocation8 + $0x688] sm:$0xf0]  ;;  %v6714_v23 = vor.u32 %v8005_v3, %v6713_v9  ;;  %v6377_v3 = vld [vmem:[#allocation8 + $0x638] sm:$0xf] }
 0x210   :  { %v6414_v42 = vor.u32 %v7930_v51, %v6413_v49  ;;  %v7945_v51 = vld [vmem:[#allocation8 + $0x700] sm:$0xf0] }
 0x211   :  { %3952 = vmatpush.bf16.msra.mxu3 %v6270_v24  ;;  %v6605_v24 = vld [vmem:[#allocation8 + $0x800] sm:$0xf] }
 0x212   :  { %3911 = vmatpush.bf16.msra.mxu0 %v5970_v41  ;;  %3925 = vmatpush.bf16.msra.mxu1 %v6066_v61  ;;  %v6606_v38 = vor.u32 %v7978_v35, %v6605_v24  ;;  %v7951_v41 = vld [vmem:[#allocation8 + $0x730] sm:$0xf0]  ;;  %v3689_v46 = vpop.f32.mrf.mxu0 }
 0x213   :  { %3939 = vmatpush.bf16.msra.mxu2 %v6162_v21  ;;  %v6498_v58 = vor.u32 %v7951_v41, %v6497_v22  ;;  %v7918_v41 = vld [vmem:[#allocation8 + $0x628] sm:$0xf0] }
 0x214   :  { %v3703_v61 = vpop.f32.mrf.mxu1 }
 0x215   :  { %3953 = vmatpush.bf16.msra.mxu3 %v6258_v1  ;;  %3912 = vmatmul.bf16.vlgmr.msra.gmra.mxu0 %v8824_v20  ;;  %v7927_v20 = vld [vmem:[#allocation8 + $0x670] sm:$0xf0]  ;;  %v6389_v1 = vld [vmem:[#allocation8 + $0x650] sm:$0xf] }
 0x216   :  { %3960 = vmatpush.bf16.msrb.mxu0 %v6438_v2  ;;  %3974 = vmatpush.bf16.msrb.mxu1 %v6534_v19  ;;  %v6402_v21 = vor.u32 %v7927_v20, %v6401_v39  ;;  %v7924_v2 = vld [vmem:[#allocation8 + $0x658] sm:$0xf0]  ;;  %v6485_v19 = vld [vmem:[#allocation8 + $0x710] sm:$0xf] }
 0x217   :  { %3988 = vmatpush.bf16.msrb.mxu2 %v6630_v56  ;;  %3926 = vmatmul.bf16.vlgmr.msra.gmra.mxu1 %v8826_v27  ;;  %v7975_v27 = vld [vmem:[#allocation8 + $0x7f0] sm:$0xf0]  ;;  %v6390_v8 = vor.u32 %v7924_v2, %v6389_v1 }
 0x218   :  { %3940 = vmatmul.bf16.vlgmr.msra.gmra.mxu2 %v8834_v15  ;;  %3954 = vmatmul.bf16.vlgmr.msra.gmra.mxu3 %v8836_v16  ;;  %v6689_v15 = vld [vmem:[#allocation8 + $0x8a8] sm:$0xf]  ;;  %v3690_v16 = vadd.f32 %v3689_v46, %v8908_v53  ;;  %v6594_v60 = vor.u32 %v7975_v27, %v6593_v44  ;;  %v6486_v53 = vor.u32 %v7948_v17, %v6485_v19  ;;  %v6461_v44 = vld [vmem:[#allocation8 + $0x6e0] sm:$0xf] }
 0x219   :  { %4002 = vmatpush.bf16.msrb.mxu3 %v6726_v0  ;;  %v6690_v63 = vor.u32 %v7999_v32, %v6689_v15  ;;  %v7972_v0 = vld [vmem:[#allocation8 + $0x7d8] sm:$0xf0]  ;;  %v6666_v46 = vor.u32 %v7993_v10, %v6665_v29  ;;  %v7942_v15 = vld [vmem:[#allocation8 + $0x6e8] sm:$0xf0]  ;;  %v6557_v32 = vld [vmem:[#allocation8 + $0x7a0] sm:$0xf] }
 0x21a   :  { %3961 = vmatpush.bf16.msrb.mxu0 %v6426_v4  ;;  %3975 = vmatpush.bf16.msrb.mxu1 %v6522_v11  ;;  %v3704_v56 = vadd.f32 %v3703_v61, %v3690_v16  ;;  %v6582_v9 = vor.u32 %v7972_v0, %v6581_v62  ;;  %v7921_v4 = vld [vmem:[#allocation8 + $0x640] sm:$0xf0]  ;;  %v6473_v11 = vld [vmem:[#allocation8 + $0x6f8] sm:$0xf]  ;;  %v3691_v35 = vpop.f32.mrf.mxu0  ;;  %v7966_v16 = vld [vmem:[#allocation8 + $0x7a8] sm:$0xf0]  ;;  %v6462_v1 = vor.u32 %v7942_v15, %v6461_v44 }
 0x21b   :  { %3989 = vmatpush.bf16.msrb.mxu2 %v6618_v12  ;;  %v6678_v12 = vor.u32 %v7996_v7, %v6677_v57  ;;  %v3717_v49 = vpop.f32.mrf.mxu2  ;;  %v3731_v24 = vpop.f32.mrf.mxu3  ;;  %v6474_v20 = vor.u32 %v7945_v51, %v6473_v11  ;;  %v6653_v61 = vld [vmem:[#allocation8 + $0x860] sm:$0xf]  ;;  %v6558_v2 = vor.u32 %v7966_v16, %v6557_v32  ;;  %v6449_v19 = vld [vmem:[#allocation8 + $0x6c8] sm:$0xf]  ;;  %v7963_v0 = vld [vmem:[#allocation8 + $0x790] sm:$0xf0] }
 0x21c   :  { %v3718_v34 = vadd.f32 %v3717_v49, %v3704_v56  ;;  %v3705_v39 = vpop.f32.mrf.mxu1  ;;  %v7939_v56 = vld [vmem:[#allocation8 + $0x6d0] sm:$0xf0]  ;;  %v6641_v57 = vld [vmem:[#allocation8 + $0x848] sm:$0xf]  ;;  %v7013_v49 = vld [vmem:[#allocation8 + $0xb30] sm:$0xf] }
 0x21d   :  { %4003 = vmatpush.bf16.msrb.mxu3 %v6714_v23  ;;  %v7969_v23 = vld [vmem:[#allocation8 + $0x7c0] sm:$0xf0]  ;;  %v7987_v7 = vld [vmem:[#allocation8 + $0x850] sm:$0xf0]  ;;  %v8080_v51 = vld [vmem:[#allocation8 + $0xb38] sm:$0xf0] }
 0x21e   :  { %3962 = vmatpush.bf16.msrb.mxu0 %v6414_v42  ;;  %3976 = vmatpush.bf16.msrb.mxu1 %v6510_v33  ;;  %v3692_v42 = vadd.f32 %v3691_v35, %v8912_v54  ;;  %v6378_v33 = vor.u32 %v7921_v4, %v6377_v3  ;;  %v6570_v22 = vor.u32 %v7969_v23, %v6569_v31  ;;  %v6917_v3 = vld [vmem:[#allocation8 + $0xa70] sm:$0xf]  ;;  %v8104_v35 = vld [vmem:[#allocation8 + $0xbf8] sm:$0xf0]  ;;  %v7001_v44 = vld [vmem:[#allocation8 + $0xb18] sm:$0xf] }
 0x21f   :  { %3990 = vmatpush.bf16.msrb.mxu2 %v6606_v38  ;;  %v8920_v38 = vadd.f32 %v3731_v24, %v3718_v34  ;;  %v6450_v23 = vor.u32 %v7939_v56, %v6449_v19  ;;  %v7109_v24 = vld [vmem:[#allocation8 + $0xbf0] sm:$0xf]  ;;  %v6642_v29 = vor.u32 %v7987_v7, %v6641_v57  ;;  %v8101_v15 = vld [vmem:[#allocation8 + $0xbe0] sm:$0xf0]  ;;  %v6989_v19 = vld [vmem:[#allocation8 + $0xb00] sm:$0xf] }
 0x220   :  { %v3706_v27 = vadd.f32 %v3705_v39, %v3692_v42  ;;  %v6809_v39 = vld [vmem:[#allocation8 + $0x998] sm:$0xf]  ;;  %v8074_v56 = vld [vmem:[#allocation8 + $0xb08] sm:$0xf0]  ;;  %v8276_v57 = vld [vmem:[#allocation1 + $0x1b] sm:$0xff] }
 0x221   :  { %4004 = vmatpush.bf16.msrb.mxu3 %v6702_v40  ;;  %v6365_v40 = vld [vmem:[#allocation8 + $0x620] sm:$0xf] }
 0x222   :  { %3963 = vmatpush.bf16.msrb.mxu0 %v6402_v21  ;;  %3977 = vmatpush.bf16.msrb.mxu1 %v6498_v58  ;;  %v7990_v21 = vld [vmem:[#allocation8 + $0x868] sm:$0xf0]  ;;  %v6366_v54 = vor.u32 %v7918_v41, %v6365_v40  ;;  %v6353_v58 = vld [vmem:[#allocation8 + $0x608] sm:$0xf]  ;;  %v7110_v40 = vor.u32 %v8104_v35, %v7109_v24  ;;  %v8053_v41 = vld [vmem:[#allocation8 + $0xa60] sm:$0xf0] }
 0x223   :  { %3991 = vmatpush.bf16.msrb.mxu2 %v6594_v60  ;;  %v7915_v60 = vld [vmem:[#allocation8 + $0x610] sm:$0xf0]  ;;  %v6654_v17 = vor.u32 %v7990_v21, %v6653_v61  ;;  %v3719_v62 = vpop.f32.mrf.mxu2  ;;  %v3733_v4 = vpop.f32.mrf.mxu3  ;;  %v6797_v21 = vld [vmem:[#allocation8 + $0x980] sm:$0xf] }
 0x224   :  { %v6354_v11 = vor.u32 %v7915_v60, %v6353_v58  ;;  %v6893_v58 = vld [vmem:[#allocation8 + $0xa40] sm:$0xf]  ;;  %v8273_v60 = vld [vmem:[#allocation1] sm:$0xff]  ;;  %v8095_v24 = vld [vmem:[#allocation8 + $0xbb0] sm:$0xf0] }
 0x225   :  { %4005 = vmatpush.bf16.msrb.mxu3 %v6690_v63  ;;  %v6545_v63 = vld [vmem:[#allocation8 + $0x788] sm:$0xf] }
 0x226   :  { %3964 = vmatpush.bf16.msrb.mxu0 %v6390_v8  ;;  %3978 = vmatpush.bf16.msrb.mxu1 %v6486_v53  ;;  %v3720_v8 = vadd.f32 %v3719_v62, %v3706_v27  ;;  %v6821_v53 = vld [vmem:[#allocation8 + $0x9b0] sm:$0xf]  ;;  %v6546_v34 = vor.u32 %v7963_v0, %v6545_v63  ;;  %v8077_v27 = vld [vmem:[#allocation8 + $0xb20] sm:$0xf0]  ;;  %v7085_v62 = vld [vmem:[#allocation8 + $0xbc0] sm:$0xf] }
 0x227   :  { %3992 = vmatpush.bf16.msrb.mxu2 %v6582_v9  ;;  %v8032_v9 = vld [vmem:[#allocation8 + $0x9b8] sm:$0xf0]  ;;  %v7002_v61 = vor.u32 %v8077_v27, %v7001_v44  ;;  %v8274_v63 = vld [vmem:[#allocation1 + $0x9] sm:$0xff] }
 0x228   :  { %v8922_v31 = vadd.f32 %v3733_v4, %v3720_v8  ;;  %v6822_v10 = vor.u32 %v8032_v9, %v6821_v53  ;;  %v8098_v0 = vld [vmem:[#allocation8 + $0xbc8] sm:$0xf0]  ;;  %v6990_v53 = vor.u32 %v8074_v56, %v6989_v19  ;;  %v6785_v9 = vld [vmem:[#allocation8 + $0x968] sm:$0xf]  ;;  %v8044_v44 = vld [vmem:[#allocation8 + $0xa18] sm:$0xf0] }
 0x229   :  { %4006 = vmatpush.bf16.msrb.mxu3 %v6678_v12  ;;  %v8056_v12 = vld [vmem:[#allocation8 + $0xa78] sm:$0xf0]  ;;  %v6881_v4 = vld [vmem:[#allocation8 + $0xa28] sm:$0xf]  ;;  %v6965_v27 = vld [vmem:[#allocation8 + $0xad0] sm:$0xf] }
 0x22a   :  { %3965 = vmatpush.bf16.msrb.mxu0 %v6378_v33  ;;  %3979 = vmatpush.bf16.msrb.mxu1 %v6474_v20  ;;  %v6918_v42 = vor.u32 %v8056_v12, %v6917_v3  ;;  %v7014_v33 = vor.u32 %v8080_v51, %v7013_v49  ;;  %v8029_v20 = vld [vmem:[#allocation8 + $0x9a0] sm:$0xf0]  ;;  %v8023_v3 = vld [vmem:[#allocation8 + $0x970] sm:$0xf0]  ;;  %v6977_v49 = vld [vmem:[#allocation8 + $0xae8] sm:$0xf] }
 0x22b   :  { %3993 = vmatpush.bf16.msrb.mxu2 %v6570_v22  ;;  %v6905_v22 = vld [vmem:[#allocation8 + $0xa58] sm:$0xf]  ;;  %v6810_v32 = vor.u32 %v8029_v20, %v6809_v39  ;;  %v8047_v12 = vld [vmem:[#allocation8 + $0xa30] sm:$0xf0]  ;;  %v6773_v39 = vld [vmem:[#allocation8 + $0x950] sm:$0xf] }
 0x22c   :  { %v6906_v16 = vor.u32 %v8053_v41, %v6905_v22  ;;  %v8071_v51 = vld [vmem:[#allocation8 + $0xaf0] sm:$0xf0]  ;;  %v8020_v20 = vld [vmem:[#allocation8 + $0x958] sm:$0xf0]  ;;  %v6869_v22 = vld [vmem:[#allocation8 + $0xa10] sm:$0xf] }
 0x22d   :  { %4007 = vmatpush.bf16.msrb.mxu3 %v6666_v46  ;;  %v7097_v46 = vld [vmem:[#allocation8 + $0xbd8] sm:$0xf]  ;;  %v8065_v56 = vld [vmem:[#allocation8 + $0xac0] sm:$0xf0] }
 0x22e   :  { %3966 = vmatpush.bf16.msrb.mxu0 %v6366_v54  ;;  %3980 = vmatpush.bf16.msrb.mxu1 %v6462_v1  ;;  %v8026_v54 = vld [vmem:[#allocation8 + $0x988] sm:$0xf0]  ;;  %v7098_v1 = vor.u32 %v8101_v15, %v7097_v46  ;;  %v8068_v46 = vld [vmem:[#allocation8 + $0xad8] sm:$0xf0]  ;;  %v7061_v15 = vld [vmem:[#allocation8 + $0xb90] sm:$0xf] }
 0x22f   :  { %3994 = vmatpush.bf16.msrb.mxu2 %v6558_v2  ;;  %v8050_v2 = vld [vmem:[#allocation8 + $0xa48] sm:$0xf0]  ;;  %v6798_v7 = vor.u32 %v8026_v54, %v6797_v21  ;;  %v6761_v21 = vld [vmem:[#allocation8 + $0x938] sm:$0xf]  ;;  %v8017_v54 = vld [vmem:[#allocation8 + $0x940] sm:$0xf0] }
 0x230   :  { %v6894_v8 = vor.u32 %v8050_v2, %v6893_v58  ;;  %v6857_v58 = vld [vmem:[#allocation8 + $0x9f8] sm:$0xf]  ;;  %v8041_v2 = vld [vmem:[#allocation8 + $0xa00] sm:$0xf0] }
 0x231   :  { %4008 = vmatpush.bf16.msrb.mxu3 %v6654_v17  ;;  %v8275_v17 = vld [vmem:[#allocation1 + $0x12] sm:$0xff] }
 0x232   :  { %3967 = vmatpush.bf16.msrb.mxu0 %v6354_v11  ;;  %3981 = vmatpush.bf16.msrb.mxu1 %v6450_v23  ;;  %v7086_v11 = vor.u32 %v8098_v0, %v7085_v62  ;;  %v3745_v23 = vpop.f32.mrf.mxu0  ;;  %v6953_v19 = vld [vmem:[#allocation8 + $0xab8] sm:$0xf] }
 0x233   :  { %3995 = vmatpush.bf16.msrb.mxu2 %v6546_v34  ;;  %v7073_v34 = vld [vmem:[#allocation8 + $0xba8] sm:$0xf]  ;;  %v3746_v35 = vadd.f32 %v3745_v23, %v8920_v38  ;;  %v6870_v38 = vor.u32 %v8044_v44, %v6869_v22  ;;  %v7049_v0 = vld [vmem:[#allocation8 + $0xb78] sm:$0xf]  ;;  %v8035_v44 = vld [vmem:[#allocation8 + $0x9d0] sm:$0xf0] }
 0x234   :  { %v7074_v41 = vor.u32 %v8095_v24, %v7073_v34  ;;  %v8038_v34 = vld [vmem:[#allocation8 + $0x9e8] sm:$0xf0]  ;;  %v6941_v24 = vld [vmem:[#allocation8 + $0xaa0] sm:$0xf]  ;;  %v6833_v22 = vld [vmem:[#allocation8 + $0x9c8] sm:$0xf] }
 0x235   :  { %4009 = vmatpush.bf16.msrb.mxu3 %v6642_v29  ;;  %3968 = vmatmul.bf16.vlgmr.msrb.gmra.mxu0 %v8273_v60  ;;  %v3759_v29 = vpop.f32.mrf.mxu1 }
 0x236   :  { %4016 = vmatpush.bf16.msra.mxu0 %v6822_v10  ;;  %4030 = vmatpush.bf16.msra.mxu1 %v6918_v42  ;;  %v6786_v10 = vor.u32 %v8023_v3, %v6785_v9  ;;  %v6882_v42 = vor.u32 %v8047_v12, %v6881_v4  ;;  %v6858_v3 = vor.u32 %v8041_v2, %v6857_v58  ;;  %v8014_v12 = vld [vmem:[#allocation8 + $0x928] sm:$0xf0]  ;;  %v8278_v2 = vld [vmem:[#allocation1 + $0x2d] sm:$0xff] }
 0x237   :  { %4044 = vmatpush.bf16.msra.mxu2 %v7014_v33  ;;  %3982 = vmatmul.bf16.vlgmr.msrb.gmra.mxu1 %v8274_v63  ;;  %v6978_v33 = vor.u32 %v8071_v51, %v6977_v49  ;;  %v6954_v4 = vor.u32 %v8065_v56, %v6953_v19  ;;  %v6845_v49 = vld [vmem:[#allocation8 + $0x9e0] sm:$0xf] }
 0x238   :  { %3996 = vmatmul.bf16.vlgmr.msrb.gmra.mxu2 %v8275_v17  ;;  %4010 = vmatmul.bf16.vlgmr.msrb.gmra.mxu3 %v8276_v57  ;;  %v8089_v57 = vld [vmem:[#allocation8 + $0xb80] sm:$0xf0]  ;;  %v8279_v19 = vld [vmem:[#allocation1 + $0x36] sm:$0xff] }
 0x239   :  { %4058 = vmatpush.bf16.msra.mxu3 %v7110_v40  ;;  %v3760_v40 = vadd.f32 %v3759_v29, %v3746_v35  ;;  %v7050_v23 = vor.u32 %v8089_v57, %v7049_v0  ;;  %v8062_v35 = vld [vmem:[#allocation8 + $0xaa8] sm:$0xf0]  ;;  %v7037_v29 = vld [vmem:[#allocation8 + $0xb60] sm:$0xf] }
 0x23a   :  { %4017 = vmatpush.bf16.msra.mxu0 %v6810_v32  ;;  %4031 = vmatpush.bf16.msra.mxu1 %v6906_v16  ;;  %v8092_v32 = vld [vmem:[#allocation8 + $0xb98] sm:$0xf0]  ;;  %v6774_v16 = vor.u32 %v8020_v20, %v6773_v39  ;;  %v3747_v62 = vpop.f32.mrf.mxu0  ;;  %v6737_v39 = vld [vmem:[#allocation8 + $0x908] sm:$0xf]  ;;  %v8011_v20 = vld [vmem:[#allocation8 + $0x910] sm:$0xf0] }
 0x23b   :  { %4045 = vmatpush.bf16.msra.mxu2 %v7002_v61  ;;  %v6966_v61 = vor.u32 %v8068_v46, %v6965_v27  ;;  %v7062_v60 = vor.u32 %v8092_v32, %v7061_v15  ;;  %v3787_v17 = vpop.f32.mrf.mxu3  ;;  %v6929_v27 = vld [vmem:[#allocation8 + $0xa88] sm:$0xf]  ;;  %v8059_v46 = vld [vmem:[#allocation8 + $0xa90] sm:$0xf0] }
 0x23c   :  { %v7025_v32 = vld [vmem:[#allocation8 + $0xb48] sm:$0xf]  ;;  %v6930_v58 = vor.u32 %v8059_v46, %v6929_v27 }
 0x23d   :  { %4059 = vmatpush.bf16.msra.mxu3 %v7098_v1  ;;  %v3773_v1 = vpop.f32.mrf.mxu2  ;;  %v3761_v9 = vpop.f32.mrf.mxu1  ;;  %v8280_v56 = vld [vmem:[#allocation1 + $0x3f] sm:$0xff] }
 0x23e   :  { %4018 = vmatpush.bf16.msra.mxu0 %v6798_v7  ;;  %4032 = vmatpush.bf16.msra.mxu1 %v6894_v8  ;;  %v3774_v63 = vadd.f32 %v3773_v1, %v3760_v40  ;;  %v3748_v7 = vadd.f32 %v3747_v62, %v8922_v31  ;;  %v6762_v8 = vor.u32 %v8017_v54, %v6761_v21  ;;  %v8277_v1 = vld [vmem:[#allocation1 + $0x24] sm:$0xff] }
 0x23f   :  { %4046 = vmatpush.bf16.msra.mxu2 %v6990_v53  ;;  %v6834_v54 = vor.u32 %v8035_v44, %v6833_v22  ;;  %v8281_v22 = vld [vmem:[#allocation10] sm:$0x7] }
 0x240   :  { %v3788_v53 = vadd.f32 %v3787_v17, %v3774_v63  ;;  %v3762_v51 = vadd.f32 %v3761_v9, %v3748_v7 }
 0x241   :  { %4060 = vmatpush.bf16.msra.mxu3 %v7086_v11  ;;  %v6749_v11 = vld [vmem:[#allocation8 + $0x920] sm:$0xf] }
 0x242   :  { %4019 = vmatpush.bf16.msra.mxu0 %v6786_v10  ;;  %4033 = vmatpush.bf16.msra.mxu1 %v6882_v42  ;;  %v8086_v10 = vld [vmem:[#allocation8 + $0xb68] sm:$0xf0]  ;;  %v6750_v31 = vor.u32 %v8014_v12, %v6749_v11  ;;  %v6846_v42 = vor.u32 %v8038_v34, %v6845_v49  ;;  %v4072_v49 = vmax.f32 %v8891_v18, 0.0  ;;  %v1291_v18 = vperm.slane %v8281_v22, 2 }
 0x243   :  { %4047 = vmatpush.bf16.msra.mxu2 %v6978_v33  ;;  %v6942_v33 = vor.u32 %v8062_v35, %v6941_v24  ;;  %v7038_v40 = vor.u32 %v8086_v10, %v7037_v29 }
 0x245   :  { %4061 = vmatpush.bf16.msra.mxu3 %v7074_v41  ;;  %v3775_v41 = vpop.f32.mrf.mxu2 }
 0x246   :  { %4020 = vmatpush.bf16.msra.mxu0 %v6774_v16  ;;  %4034 = vmatpush.bf16.msra.mxu1 %v6870_v38  ;;  %v3776_v15 = vadd.f32 %v3775_v41, %v3762_v51  ;;  %v8083_v16 = vld [vmem:[#allocation8 + $0xb50] sm:$0xf0]  ;;  %v3789_v38 = vpop.f32.mrf.mxu3 }
 0x247   :  { %4048 = vmatpush.bf16.msra.mxu2 %v6966_v61  ;;  %v6738_v61 = vor.u32 %v8011_v20, %v6737_v39  ;;  %v3412_v20 = vadd.f32 %v8864_v48, %v1289_v59 }
 0x248   :  { %v3790_v21 = vadd.f32 %v3789_v38, %v3776_v15 }
 0x249   :  { %4062 = vmatpush.bf16.msra.mxu3 %v7062_v60  ;;  %v7026_v60 = vor.u32 %v8083_v16, %v7025_v32  ;;  %v3426_v27 = vadd.f32 %v8866_v5, %v3412_v20  ;;  %v7361_v20 = vld [vmem:[#allocation11 + $0x1f0] sm:$0xf] }
 0x24a   :  { %4021 = vmatpush.bf16.msra.mxu0 %v6762_v8  ;;  %4035 = vmatpush.bf16.msra.mxu1 %v6858_v3 }
 0x24b   :  { %4049 = vmatpush.bf16.msra.mxu2 %v6954_v4  ;;  %v3440_v32 = vadd.f32 %v8868_v52, %v3426_v27  ;;  %v7225_v27 = vld [vmem:[#allocation11 + $0xe0] sm:$0xf] }
 0x24d   :  { %4063 = vmatpush.bf16.msra.mxu3 %v7050_v23 }
 0x24e   :  { %4022 = vmatpush.bf16.msra.mxu0 %v6750_v31  ;;  %4036 = vmatpush.bf16.msra.mxu1 %v6846_v42 }
 0x24f   :  { %4050 = vmatpush.bf16.msra.mxu2 %v6942_v33 }
 0x251   :  { %4064 = vmatpush.bf16.msra.mxu3 %v7038_v40 }
 0x252   :  { %4023 = vmatpush.bf16.msra.mxu0 %v6738_v61  ;;  %4037 = vmatpush.bf16.msra.mxu1 %v6834_v54  ;;  %v3801_v63 = vpop.f32.mrf.mxu0  ;;  %v3454_v61 = vadd.f32 %v8870_v28, %v3440_v32 }
 0x253   :  { %4051 = vmatpush.bf16.msra.mxu2 %v6930_v58  ;;  %v3802_v17 = vadd.f32 %v3801_v63, %v3788_v53 }
 0x254   :  { %v3815_v62 = vpop.f32.mrf.mxu1  ;;  %v3468_v45 = vadd.f32 %v8872_v6, %v3454_v61  ;;  %v8150_v61 = vld [vmem:[#allocation11 + $0x164] sm:$0xf0] }
 0x255   :  { %4065 = vmatpush.bf16.msra.mxu3 %v7026_v60  ;;  %4024 = vmatmul.bf16.vlgmr.msra.gmra.mxu0 %v8277_v1  ;;  %v3816_v0 = vadd.f32 %v3815_v62, %v3802_v17 }
 0x256   :  { %4038 = vmatmul.bf16.vlgmr.msra.gmra.mxu1 %v8278_v2  ;;  %4052 = vmatmul.bf16.vlgmr.msra.gmra.mxu2 %v8279_v19  ;;  %v3482_v1 = vadd.f32 %v8874_v25, %v3468_v45  ;;  %v7353_v45 = vld [vmem:[#allocation11 + $0x1e0] sm:$0xf] }
 0x258   :  { %4066 = vmatmul.bf16.vlgmr.msra.gmra.mxu3 %v8280_v56  ;;  %v3496_v19 = vadd.f32 %v8876_v43, %v3482_v1 }
 0x25a   :  { %v3803_v9 = vpop.f32.mrf.mxu0  ;;  %v3510_v28 = vadd.f32 %v8878_v50, %v3496_v19  ;;  %v7233_v50 = vld [vmem:[#allocation11 + $0xf0] sm:$0xf] }
 0x25b   :  { %v3829_v57 = vpop.f32.mrf.mxu2  ;;  %v3843_v8 = vpop.f32.mrf.mxu3  ;;  %v3804_v3 = vadd.f32 %v3803_v9, %v3790_v21 }
 0x25c   :  { %v3830_v7 = vadd.f32 %v3829_v57, %v3816_v0  ;;  %v3817_v11 = vpop.f32.mrf.mxu1 }
 0x25d   :  { %v3818_v12 = vadd.f32 %v3817_v11, %v3804_v3 }
 0x25e   :  { %v3844_v4 = vadd.f32 %v3843_v8, %v3830_v7  ;;  %v3524_v7 = vadd.f32 %v8882_v30, %v3510_v28  ;;  %v8152_v30 = vld [vmem:[#allocation11 + $0x174] sm:$0xf0] }
 0x25f   :  { %v8148_v28 = vld [vmem:[#allocation11 + $0x154] sm:$0xf0] }
 0x260   :  { %v4073_v51 = vmax.f32 %v3844_v4, 0.0  ;;  %v3538_v25 = vadd.f32 %v8884_v55, %v3524_v7  ;;  %v8168_v55 = vld [vmem:[#allocation11 + $0x1f4] sm:$0xf0]  ;;  %v7345_v7 = vld [vmem:[#allocation11 + $0x1d0] sm:$0xf] }
 0x262   :  { %v8927_v23 = vpack.c.bf16 %v4073_v51, %v4072_v49 }
 0x263   :  { %v3831_v34 = vpop.f32.mrf.mxu2  ;;  %v3845_v35 = vpop.f32.mrf.mxu3 }
 0x264   :  { %v3832_v24 = vadd.f32 %v3831_v34, %v3818_v12  ;;  %v3552_v12 = vadd.f32 %v8886_v13, %v3538_v25  ;;  %v7169_v34 = vld [vmem:[#allocation11 + $0x70] sm:$0xf]  ;;  %v7362_v13 = vor.u32 %v8168_v55, %v7361_v20  ;;  %v8112_v55 = vld [vmem:[#allocation11 + $0x34] sm:$0xf0] }
 0x265   :  { %v7137_v20 = vld [vmem:[#allocation11 + $0x30] sm:$0xf] }
 0x266   :  { %v8929_v29 = vadd.f32 %v3845_v35, %v3832_v24  ;;  %v8120_v24 = vld [vmem:[#allocation11 + $0x74] sm:$0xf0]  ;;  %v3566_v22 = vadd.f32 %v8888_v37, %v3552_v12  ;;  %5185 = vmatpush.bf16.msrb.mxu3 %v7362_v13  ;;  %v7138_v13 = vor.u32 %v8112_v55, %v7137_v20  ;;  %v7113_v20 = vld [vmem:[#allocation11] sm:$0xf]  ;;  %v8106_v55 = vld [vmem:[#allocation11 + $0x4] sm:$0xf0] }
 0x272   :  { %v3857_v53 = vpop.f32.mrf.mxu0 }
 0x273   :  { %v3858_v46 = vadd.f32 %v3857_v53, %v1291_v18  ;;  %v7170_v53 = vor.u32 %v8120_v24, %v7169_v34  ;;  %v8146_v34 = vld [vmem:[#allocation11 + $0x144] sm:$0xf0] }
 0x274   :  { %v3871_v10 = vpop.f32.mrf.mxu1 }
 0x275   :  { %v3872_v16 = vadd.f32 %v3871_v10, %v3858_v46  ;;  %v8136_v10 = vld [vmem:[#allocation11 + $0xf4] sm:$0xf0]  ;;  %5146 = vmatpush.bf16.msrb.mxu0 %v7170_v53  ;;  %v3580_v46 = vadd.f32 %v8893_v26, %v3566_v22  ;;  %v7337_v53 = vld [vmem:[#allocation11 + $0x1c0] sm:$0xf]  ;;  %v7201_v22 = vld [vmem:[#allocation11 + $0xb0] sm:$0xf] }
 0x276   :  { %v8116_v26 = vld [vmem:[#allocation11 + $0x54] sm:$0xf0] }
 0x277   :  { %v3594_v19 = vadd.f32 %v8895_v36, %v3580_v46  ;;  %v7145_v36 = vld [vmem:[#allocation11 + $0x40] sm:$0xf] }
 0x27a   :  { %v3859_v33 = vpop.f32.mrf.mxu0 }
 0x27b   :  { %v3885_v31 = vpop.f32.mrf.mxu2  ;;  %v3899_v42 = vpop.f32.mrf.mxu3  ;;  %v3860_v59 = vadd.f32 %v3859_v33, %v1291_v18  ;;  %v7234_v33 = vor.u32 %v8136_v10, %v7233_v50  ;;  %v8162_v10 = vld [vmem:[#allocation11 + $0x1c4] sm:$0xf0] }
 0x27c   :  { %v3873_v39 = vpop.f32.mrf.mxu1  ;;  %v3886_v21 = vadd.f32 %v3885_v31, %v3872_v16  ;;  %v7297_v31 = vld [vmem:[#allocation11 + $0x170] sm:$0xf]  ;;  %v8134_v16 = vld [vmem:[#allocation11 + $0xe4] sm:$0xf0] }
 0x27d   :  { %v3874_v2 = vadd.f32 %v3873_v39, %v3860_v59  ;;  %v7298_v39 = vor.u32 %v8152_v30, %v7297_v31  ;;  %5159 = vmatpush.bf16.msrb.mxu1 %v7234_v33  ;;  %v8166_v59 = vld [vmem:[#allocation11 + $0x1e4] sm:$0xf0]  ;;  %v7338_v33 = vor.u32 %v8162_v10, %v7337_v53  ;;  %v8156_v53 = vld [vmem:[#allocation11 + $0x194] sm:$0xf0] }
 0x27e   :  { %v3900_v58 = vadd.f32 %v3899_v42, %v3886_v21 }
 0x27f   :  { %5172 = vmatpush.bf16.msrb.mxu2 %v7298_v39 }
 0x283   :  { %v3887_v40 = vpop.f32.mrf.mxu2  ;;  %v3901_v44 = vpop.f32.mrf.mxu3 }
 0x284   :  { %v3888_v56 = vadd.f32 %v3887_v40, %v3874_v2  ;;  %v7153_v2 = vld [vmem:[#allocation11 + $0x50] sm:$0xf] }
 0x286   :  { %v3902_v0 = vadd.f32 %v3901_v44, %v3888_v56  ;;  %v8118_v44 = vld [vmem:[#allocation11 + $0x64] sm:$0xf0] }
 0x292   :  { %v3913_v41 = vpop.f32.mrf.mxu0 }
 0x293   :  { %v3914_v5 = vadd.f32 %v3913_v41, %v3900_v58  ;;  %v7161_v41 = vld [vmem:[#allocation11 + $0x60] sm:$0xf] }
 0x294   :  { %v3927_v15 = vpop.f32.mrf.mxu1  ;;  %v7162_v32 = vor.u32 %v8118_v44, %v7161_v41  ;;  %v8128_v41 = vld [vmem:[#allocation11 + $0xb4] sm:$0xf0]  ;;  %v7265_v44 = vld [vmem:[#allocation11 + $0x130] sm:$0xf] }
 0x295   :  { %v3928_v63 = vadd.f32 %v3927_v15, %v3914_v5  ;;  %v7217_v5 = vld [vmem:[#allocation11 + $0xd0] sm:$0xf]  ;;  %v7202_v46 = vor.u32 %v8128_v41, %v7201_v22  ;;  %v7177_v22 = vld [vmem:[#allocation11 + $0x80] sm:$0xf]  ;;  %v7114_v41 = vor.u32 %v8106_v55, %v7113_v20  ;;  %v8212_v20 = vld [vmem:[#allocation11 + $0x354] sm:$0xf0] }
 0x296   :  { %5147 = vmatpush.bf16.msrb.mxu0 %v7162_v32  ;;  %v7329_v32 = vld [vmem:[#allocation11 + $0x1b0] sm:$0xf] }
 0x297   :  { %v7601_v55 = vld [vmem:[#allocation11 + $0x3d0] sm:$0xf] }
 0x29a   :  { %v3915_v48 = vpop.f32.mrf.mxu0 }
 0x29b   :  { %v3941_v38 = vpop.f32.mrf.mxu2  ;;  %v3955_v54 = vpop.f32.mrf.mxu3  ;;  %v3916_v8 = vadd.f32 %v3915_v48, %v3902_v0 }
 0x29c   :  { %v3929_v60 = vpop.f32.mrf.mxu1  ;;  %v3942_v57 = vadd.f32 %v3941_v38, %v3928_v63  ;;  %v7289_v38 = vld [vmem:[#allocation11 + $0x160] sm:$0xf]  ;;  %v7154_v63 = vor.u32 %v8116_v26, %v7153_v2  ;;  %v8142_v26 = vld [vmem:[#allocation11 + $0x124] sm:$0xf0] }
 0x29d   :  { %v3930_v4 = vadd.f32 %v3929_v60, %v3916_v8  ;;  %v7290_v37 = vor.u32 %v8150_v61, %v7289_v38  ;;  %v7354_v60 = vor.u32 %v8166_v59, %v7353_v45  ;;  %v8164_v8 = vld [vmem:[#allocation11 + $0x1d4] sm:$0xf0]  ;;  %v8951_v61 = vrot.slane %v8927_v23, 3  ;;  %v7129_v45 = vld [vmem:[#allocation11 + $0x20] sm:$0xf] }
 0x29e   :  { %v3956_v9 = vadd.f32 %v3955_v54, %v3942_v57  ;;  %v7226_v54 = vor.u32 %v8134_v16, %v7225_v27  ;;  %5148 = vmatpush.bf16.msrb.mxu0 %v7154_v63  ;;  %v7346_v25 = vor.u32 %v8164_v8, %v7345_v7  ;;  %v8144_v27 = vld [vmem:[#allocation11 + $0x134] sm:$0xf0]  ;;  %v8110_v59 = vld [vmem:[#allocation11 + $0x24] sm:$0xf0]  ;;  %v7257_v2 = vld [vmem:[#allocation11 + $0x120] sm:$0xf] }
 0x29f   :  { %5173 = vmatpush.bf16.msrb.mxu2 %v7290_v37  ;;  %5186 = vmatpush.bf16.msrb.mxu3 %v7354_v60  ;;  %v8160_v16 = vld [vmem:[#allocation11 + $0x1b4] sm:$0xf0]  ;;  %v7321_v63 = vld [vmem:[#allocation11 + $0x1a0] sm:$0xf]  ;;  %v4099_v7 = vsel %vm9133_vm14, %v8927_v23, %v8951_v61  ;;  %v7121_v8 = vld [vmem:[#allocation11 + $0x10] sm:$0xf] }
 0x2a0   :  { %5160 = vmatpush.bf16.msrb.mxu1 %v7226_v54  ;;  %v7330_v54 = vor.u32 %v8160_v16, %v7329_v32  ;;  %v8154_v16 = vld [vmem:[#allocation11 + $0x184] sm:$0xf0] }
 0x2a3   :  { %v3943_v52 = vpop.f32.mrf.mxu2  ;;  %v3957_v62 = vpop.f32.mrf.mxu3  ;;  %5187 = vmatpush.bf16.msrb.mxu3 %v7346_v25  ;;  %v4109_v25 = vsel %vm666_vm4, %v8927_v23, %v8951_v61 }
 0x2a4   :  { %v3944_v49 = vadd.f32 %v3943_v52, %v3930_v4  ;;  %v8114_v4 = vld [vmem:[#allocation11 + $0x44] sm:$0xf0] }
 0x2a5   :  { %v7146_v12 = vor.u32 %v8114_v4, %v7145_v36 }
 0x2a6   :  { %v3958_v18 = vadd.f32 %v3957_v62, %v3944_v49  ;;  %v7281_v62 = vld [vmem:[#allocation11 + $0x150] sm:$0xf]  ;;  %v8130_v49 = vld [vmem:[#allocation11 + $0xc4] sm:$0xf0] }
 0x2a7   :  { %5149 = vmatpush.bf16.msrb.mxu0 %v7146_v12  ;;  %5188 = vmatpush.bf16.msrb.mxu3 %v7338_v33  ;;  %v7249_v12 = vld [vmem:[#allocation11 + $0x110] sm:$0xf] }
 0x2ab   :  { %5150 = vmatpush.bf16.msrb.mxu0 %v7138_v13  ;;  %5189 = vmatpush.bf16.msrb.mxu3 %v7330_v54  ;;  %v8122_v13 = vld [vmem:[#allocation11 + $0x84] sm:$0xf0] }
 0x2b2   :  { %v3969_v17 = vpop.f32.mrf.mxu0 }
 0x2b3   :  { %v3970_v11 = vadd.f32 %v3969_v17, %v3956_v9  ;;  %v8132_v17 = vld [vmem:[#allocation11 + $0xd4] sm:$0xf0]  ;;  %v3608_v9 = vadd.f32 %v8902_v47, %v3594_v19 }
 0x2b4   :  { %v3983_v6 = vpop.f32.mrf.mxu1  ;;  %v7218_v57 = vor.u32 %v8132_v17, %v7217_v5  ;;  %v8158_v17 = vld [vmem:[#allocation11 + $0x1a4] sm:$0xf0] }
 0x2b5   :  { %v3984_v35 = vadd.f32 %v3983_v6, %v3970_v11  ;;  %v7282_v6 = vor.u32 %v8148_v28, %v7281_v62  ;;  %v7209_v11 = vld [vmem:[#allocation11 + $0xc0] sm:$0xf]  ;;  %v3622_v47 = vadd.f32 %v8904_v14, %v3608_v9  ;;  %v4076_v14 = vmax.f32 %v8929_v29, 0.0  ;;  %v8108_v9 = vld [vmem:[#allocation11 + $0x14] sm:$0xf0] }
 0x2b6   :  { %5161 = vmatpush.bf16.msrb.mxu1 %v7218_v57  ;;  %v7210_v50 = vor.u32 %v8130_v49, %v7209_v11  ;;  %v7130_v29 = vor.u32 %v8110_v59, %v7129_v45  ;;  %v7322_v57 = vor.u32 %v8158_v17, %v7321_v63  ;;  %v8140_v49 = vld [vmem:[#allocation11 + $0x114] sm:$0xf0]  ;;  %v7489_v45 = vld [vmem:[#allocation11 + $0x2f0] sm:$0xf] }
 0x2b7   :  { %5174 = vmatpush.bf16.msrb.mxu2 %v7282_v6  ;;  %v4075_v38 = vmax.f32 %v3622_v47, 0.0  ;;  %v4094_v6 = vsel %vm628_vm0, %v8927_v23, %v8951_v61  ;;  %v7250_v33 = vor.u32 %v8140_v49, %v7249_v12  ;;  %v8200_v59 = vld [vmem:[#allocation11 + $0x2f4] sm:$0xf0]  ;;  %v8230_v49 = vld [vmem:[#allocation11 + $0x3e4] sm:$0xf0] }
 0x2b8   :  { %5151 = vmatpush.bf16.msrb.mxu0 %v7130_v29  ;;  %5190 = vmatpush.bf16.msrb.mxu3 %v7322_v57  ;;  %v7490_v29 = vor.u32 %v8200_v59, %v7489_v45  ;;  %v8198_v57 = vld [vmem:[#allocation11 + $0x2e4] sm:$0xf0] }
 0x2b9   :  { %v8953_v5 = vpack.c.bf16 %v4076_v14, %v4075_v38  ;;  %v8138_v14 = vld [vmem:[#allocation11 + $0x104] sm:$0xf0]  ;;  %v7425_v38 = vld [vmem:[#allocation11 + $0x270] sm:$0xf] }
 0x2ba   :  { %v3971_v51 = vpop.f32.mrf.mxu0  ;;  %5162 = vmatpush.bf16.msrb.mxu1 %v7210_v50 }
 0x2bb   :  { %v3997_v3 = vpop.f32.mrf.mxu2  ;;  %v4011_v43 = vpop.f32.mrf.mxu3  ;;  %v3972_v15 = vadd.f32 %v3971_v51, %v3958_v18  ;;  %v7273_v51 = vld [vmem:[#allocation11 + $0x140] sm:$0xf]  ;;  %v4089_v10 = vrot.slane %v8953_v5, 3 }
 0x2bc   :  { %v3985_v42 = vpop.f32.mrf.mxu1  ;;  %v3998_v40 = vadd.f32 %v3997_v3, %v3984_v35  ;;  %v7274_v35 = vor.u32 %v8146_v34, %v7273_v51 }
 0x2bd   :  { %v3986_v56 = vadd.f32 %v3985_v42, %v3972_v15  ;;  %v7266_v15 = vor.u32 %v8144_v27, %v7265_v44  ;;  %v7178_v44 = vor.u32 %v8122_v13, %v7177_v22  ;;  %v7241_v27 = vld [vmem:[#allocation11 + $0x100] sm:$0xf]  ;;  %v8228_v22 = vld [vmem:[#allocation11 + $0x3d4] sm:$0xf0] }
 0x2be   :  { %v4012_v48 = vadd.f32 %v4011_v43, %v3998_v40  ;;  %5175 = vmatpush.bf16.msrb.mxu2 %v7274_v35  ;;  %5163 = vmatpush.bf16.msrb.mxu1 %v7202_v46  ;;  %v7313_v35 = vld [vmem:[#allocation11 + $0x190] sm:$0xf]  ;;  %v7305_v46 = vld [vmem:[#allocation11 + $0x180] sm:$0xf]  ;;  %v7242_v32 = vor.u32 %v8138_v14, %v7241_v27  ;;  %v8194_v14 = vld [vmem:[#allocation11 + $0x2c4] sm:$0xf0] }
 0x2bf   :  { %v7306_v54 = vor.u32 %v8154_v16, %v7305_v46  ;;  %v7529_v46 = vld [vmem:[#allocation11 + $0x340] sm:$0xf] }
 0x2c2   :  { %5176 = vmatpush.bf16.msrb.mxu2 %v7266_v15 }
 0x2c3   :  { %v3999_v21 = vpop.f32.mrf.mxu2  ;;  %v4013_v1 = vpop.f32.mrf.mxu3 }
 0x2c4   :  { %v4000_v3 = vadd.f32 %v3999_v21, %v3986_v56 }
 0x2c6   :  { %v4014_v31 = vadd.f32 %v4013_v1, %v4000_v3  ;;  %v8126_v1 = vld [vmem:[#allocation11 + $0xa4] sm:$0xf0]  ;;  %v7185_v3 = vld [vmem:[#allocation11 + $0x90] sm:$0xf] }
 0x2d2   :  { %v4025_v58 = vpop.f32.mrf.mxu0 }
 0x2d3   :  { %v4026_v52 = vadd.f32 %v4025_v58, %v4012_v48  ;;  %v4039_v0 = vpop.f32.mrf.mxu1  ;;  %v7193_v48 = vld [vmem:[#allocation11 + $0xa0] sm:$0xf] }
 0x2d4   :  { %v7194_v56 = vor.u32 %v8126_v1, %v7193_v48  ;;  %v7553_v48 = vld [vmem:[#allocation11 + $0x370] sm:$0xf]  ;;  %v8216_v1 = vld [vmem:[#allocation11 + $0x374] sm:$0xf0] }
 0x2d5   :  { %v4040_v43 = vadd.f32 %v4039_v0, %v4026_v52  ;;  %v7258_v52 = vor.u32 %v8142_v26, %v7257_v2  ;;  %v7617_v2 = vld [vmem:[#allocation11 + $0x3f0] sm:$0xf]  ;;  %v7554_v26 = vor.u32 %v8216_v1, %v7553_v48  ;;  %v8176_v1 = vld [vmem:[#allocation11 + $0x234] sm:$0xf0] }
 0x2d6   :  { %5164 = vmatpush.bf16.msrb.mxu1 %v7194_v56  ;;  %v7417_v56 = vld [vmem:[#allocation11 + $0x260] sm:$0xf] }
 0x2d7   :  { %5177 = vmatpush.bf16.msrb.mxu2 %v7258_v52  ;;  %v8182_v52 = vld [vmem:[#allocation11 + $0x264] sm:$0xf0] }
 0x2d9   :  { %v4053_v24 = vpop.f32.mrf.mxu2 }
 0x2da   :  { %v4054_v30 = vadd.f32 %v4053_v24, %v4040_v43  ;;  %v4027_v42 = vpop.f32.mrf.mxu0  ;;  %v8124_v43 = vld [vmem:[#allocation11 + $0x94] sm:$0xf0] }
 0x2db   :  { %v4067_v39 = vpop.f32.mrf.mxu3  ;;  %v4028_v40 = vadd.f32 %v4027_v42, %v4014_v31  ;;  %v4041_v37 = vpop.f32.mrf.mxu1  ;;  %v7186_v42 = vor.u32 %v8124_v43, %v7185_v3  ;;  %5178 = vmatpush.bf16.msrb.mxu2 %v7250_v33  ;;  %v7609_v43 = vld [vmem:[#allocation11 + $0x3e0] sm:$0xf]  ;;  %v7537_v33 = vld [vmem:[#allocation11 + $0x350] sm:$0xf] }
 0x2dc   :  { %v4068_v18 = vadd.f32 %v4067_v39, %v4054_v30  ;;  %v7122_v30 = vor.u32 %v8108_v9, %v7121_v8  ;;  %v7314_v39 = vor.u32 %v8156_v53, %v7313_v35  ;;  %v7610_v53 = vor.u32 %v8230_v49, %v7609_v43  ;;  %v8206_v49 = vld [vmem:[#allocation11 + $0x324] sm:$0xf0] }
 0x2dd   :  { %v4042_v60 = vadd.f32 %v4041_v37, %v4028_v40  ;;  %5165 = vmatpush.bf16.msrb.mxu1 %v7186_v42  ;;  %v8196_v42 = vld [vmem:[#allocation11 + $0x2d4] sm:$0xf0]  ;;  %v7538_v13 = vor.u32 %v8212_v20, %v7537_v33  ;;  %v7505_v33 = vld [vmem:[#allocation11 + $0x310] sm:$0xf] }
 0x2de   :  { %v4074_v21 = vmax.f32 %v4068_v18, 0.0  ;;  %5152 = vmatpush.bf16.msrb.mxu0 %v7122_v30  ;;  %5191 = vmatpush.bf16.msrb.mxu3 %v7314_v39  ;;  %v7473_v30 = vld [vmem:[#allocation11 + $0x2d0] sm:$0xf]  ;;  %v8220_v20 = vld [vmem:[#allocation11 + $0x394] sm:$0xf0] }
 0x2df   :  { %5179 = vmatpush.bf16.msrb.mxu2 %v7242_v32  ;;  %v7474_v39 = vor.u32 %v8196_v42, %v7473_v30  ;;  %v8210_v32 = vld [vmem:[#allocation11 + $0x344] sm:$0xf0]  ;;  %v7441_v30 = vld [vmem:[#allocation11 + $0x290] sm:$0xf]  ;;  %v8188_v42 = vld [vmem:[#allocation11 + $0x294] sm:$0xf0] }
 0x2e0   :  { %v4079_v58 = vpack.c.bf16 %v4074_v21, %v4074_v21  ;;  %v8184_v21 = vld [vmem:[#allocation11 + $0x274] sm:$0xf0]  ;;  %v7530_v59 = vor.u32 %v8210_v32, %v7529_v46  ;;  %v7433_v46 = vld [vmem:[#allocation11 + $0x280] sm:$0xf]  ;;  %v8186_v32 = vld [vmem:[#allocation11 + $0x284] sm:$0xf0] }
 0x2e1   :  { %v4055_v19 = vpop.f32.mrf.mxu2  ;;  %v7426_v37 = vor.u32 %v8184_v21, %v7425_v38  ;;  %5166 = vmatpush.bf16.msrb.mxu1 %v7178_v44  ;;  %v7465_v44 = vld [vmem:[#allocation11 + $0x2c0] sm:$0xf] }
 0x2e2   :  { %v8955_v62 = vrot.slane %v4079_v58, 6  ;;  %v8957_v28 = vrot.slane %v4079_v58, 1  ;;  %v4056_v0 = vadd.f32 %v4055_v19, %v4042_v60  ;;  %5153 = vmatpush.bf16.msrb.mxu0 %v7114_v41  ;;  %v8232_v19 = vld [vmem:[#allocation11 + $0x3f4] sm:$0xf0]  ;;  %5192 = vmatpush.bf16.msrb.mxu3 %v7306_v54  ;;  %v7602_v41 = vor.u32 %v8228_v22, %v7601_v55  ;;  %v7593_v21 = vld [vmem:[#allocation11 + $0x3c0] sm:$0xf] }
 0x2e3   :  { %v4069_v50 = vpop.f32.mrf.mxu3  ;;  %v7618_v17 = vor.u32 %v8232_v19, %v7617_v2  ;;  %5224 = vmatpush.bf16.msra.mxu2 %v7554_v26  ;;  %v7466_v38 = vor.u32 %v8194_v14, %v7465_v44  ;;  %v8226_v54 = vld [vmem:[#allocation11 + $0x3c4] sm:$0xf0]  ;;  %v7457_v2 = vld [vmem:[#allocation11 + $0x2b0] sm:$0xf]  ;;  %v8192_v26 = vld [vmem:[#allocation11 + $0x2b4] sm:$0xf0] }
 0x2e4   :  { %v4097_v36 = vsel %vm631_vm1, %v8955_v62, %v8957_v28  ;;  %v4100_v4 = vsel %vm666_vm4, %v8955_v62, %v8957_v28  ;;  %v4110_v11 = vsel %vm670_vm8, %v8955_v62, %v8957_v28  ;;  %v4070_v31 = vadd.f32 %v4069_v50, %v4056_v0  ;;  %v7481_v0 = vld [vmem:[#allocation11 + $0x2e0] sm:$0xf]  ;;  %v8180_v50 = vld [vmem:[#allocation11 + $0x254] sm:$0xf0]  ;;  %v8170_v44 = vld [vmem:[#allocation11 + $0x204] sm:$0xf0] }
 0x2e5   :  { %v8978_v51 = vsel %vm635_vm5, %v4094_v6, %v4097_v36  ;;  %v4101_v34 = vsel %vm668_vm6, %v4099_v7, %v4100_v4  ;;  %v8982_v24 = vsel %vm4111_vm12, %v4109_v25, %v4110_v11  ;;  %v7545_v6 = vld [vmem:[#allocation11 + $0x360] sm:$0xf]  ;;  %v4117_v7 = vsel %vm628_vm0, %v8953_v5, %v4089_v10  ;;  %5211 = vmatpush.bf16.msra.mxu1 %v7490_v29  ;;  %v8214_v11 = vld [vmem:[#allocation11 + $0x364] sm:$0xf0]  ;;  %vm9134_vm0 = vmmov %vm9130_vm2 }
 0x2e6   :  { %v8985_v47 = vrot.slane %v4101_v34, 1  ;;  %4127 = vst [vmem:[#allocation1] ss:$9 sm:$0xff] %v8978_v51  ;;  %v4114_v18 = vrot.slane %v8982_v24, 3  ;;  %v4077_v40 = vmax.f32 %v4070_v31, 0.0  ;;  %5198 = vmatpush.bf16.msra.mxu0 %v7426_v37  ;;  %v7418_v25 = vor.u32 %v8182_v52, %v7417_v56  ;;  %5237 = vmatpush.bf16.msra.mxu3 %v7618_v17 }
 0x2e7   :  { %v7482_v4 = vor.u32 %v8198_v57, %v7481_v0  ;;  %v7546_v12 = vor.u32 %v8214_v11, %v7545_v6  ;;  %v7409_v34 = vld [vmem:[#allocation11 + $0x250] sm:$0xf]  ;;  %v4105_v35 = vsel %vm637_vm3, %v8955_v62, %v8957_v28  ;;  %v7401_v62 = vld [vmem:[#allocation11 + $0x240] sm:$0xf]  ;;  %v8178_v28 = vld [vmem:[#allocation11 + $0x244] sm:$0xf0]  ;;  %v7594_v29 = vor.u32 %v8226_v54, %v7593_v21 }
 0x2e8   :  { %4130 = vst [vmem:[#allocation1 + $0x1] ss:$9 sm:$0xff] %v8985_v47  ;;  %v8990_v15 = vpack.c.bf16 %v4077_v40, %v4077_v40  ;;  %v7410_v31 = vor.u32 %v8180_v50, %v7409_v34  ;;  %v4104_v40 = vsel %vm631_vm1, %v8927_v23, %v8951_v61  ;;  %v7402_v16 = vor.u32 %v8178_v28, %v7401_v62  ;;  %v7393_v37 = vld [vmem:[#allocation11 + $0x230] sm:$0xf]  ;;  %v8224_v57 = vld [vmem:[#allocation11 + $0x3b4] sm:$0xf0] }
 0x2e9   :  { %5212 = vmatpush.bf16.msra.mxu1 %v7482_v4  ;;  %5225 = vmatpush.bf16.msra.mxu2 %v7546_v12  ;;  %v9022_v27 = vsel %vm691_vm7, %v4104_v40, %v4105_v35  ;;  %v7394_v19 = vor.u32 %v8176_v1, %v7393_v37  ;;  %v7458_v56 = vor.u32 %v8192_v26, %v7457_v2  ;;  %v7521_v52 = vld [vmem:[#allocation11 + $0x330] sm:$0xf]  ;;  %v7385_v6 = vld [vmem:[#allocation11 + $0x220] sm:$0xf]  ;;  %v8190_v11 = vld [vmem:[#allocation11 + $0x2a4] sm:$0xf0] }
 0x2ea   :  { %v4090_v58 = vrot.slane %v8990_v15, 6  ;;  %v4091_v60 = vrot.slane %v8990_v15, 1  ;;  %5199 = vmatpush.bf16.msra.mxu0 %v7418_v25  ;;  %5238 = vmatpush.bf16.msra.mxu3 %v7610_v53  ;;  %v4108_v48 = vrot.slane %v9022_v27, 2  ;;  %v7585_v0 = vld [vmem:[#allocation11 + $0x3b0] sm:$0xf]  ;;  %v4122_v43 = vsel %vm9134_vm0, %v8953_v5, %v4089_v10 }
 0x2eb   :  { %v8174_v25 = vld [vmem:[#allocation11 + $0x224] sm:$0xf0]  ;;  %v7449_v4 = vld [vmem:[#allocation11 + $0x2a0] sm:$0xf]  ;;  %v7377_v35 = vld [vmem:[#allocation11 + $0x210] sm:$0xf]  ;;  %v7442_v62 = vor.u32 %v8188_v42, %v7441_v30  ;;  %v7434_v37 = vor.u32 %v8186_v32, %v7433_v46 }
 0x2ec   :  { %v4120_v63 = vsel %vm631_vm1, %v4090_v58, %v4091_v60  ;;  %v7513_v12 = vld [vmem:[#allocation11 + $0x320] sm:$0xf]  ;;  %v7450_v34 = vor.u32 %v8190_v11, %v7449_v4  ;;  %v8222_v50 = vld [vmem:[#allocation11 + $0x3a4] sm:$0xf0]  ;;  %v8172_v53 = vld [vmem:[#allocation11 + $0x214] sm:$0xf0] }
 0x2ed   :  { %v9012_v36 = vsel %vm635_vm5, %v4117_v7, %v4120_v63  ;;  %5213 = vmatpush.bf16.msra.mxu1 %v7474_v39  ;;  %5226 = vmatpush.bf16.msra.mxu2 %v7538_v13  ;;  %v8208_v63 = vld [vmem:[#allocation11 + $0x334] sm:$0xf0]  ;;  %v7586_v7 = vor.u32 %v8224_v57, %v7585_v0  ;;  %v7577_v15 = vld [vmem:[#allocation11 + $0x3a0] sm:$0xf]  ;;  %v7569_v39 = vld [vmem:[#allocation11 + $0x390] sm:$0xf] }
 0x2ee   :  { %5200 = vmatpush.bf16.msra.mxu0 %v7410_v31  ;;  %5239 = vmatpush.bf16.msra.mxu3 %v7602_v41  ;;  %v7522_v17 = vor.u32 %v8208_v63, %v7521_v52  ;;  %v7514_v31 = vor.u32 %v8206_v49, %v7513_v12  ;;  %v7578_v5 = vor.u32 %v8222_v50, %v7577_v15  ;;  %v8204_v10 = vld [vmem:[#allocation11 + $0x314] sm:$0xf0]  ;;  %v7369_v28 = vld [vmem:[#allocation11 + $0x200] sm:$0xf]  ;;  %v8202_v21 = vld [vmem:[#allocation11 + $0x304] sm:$0xf0] }
 0x2ef   :  { %v9003_v8 = vld [vmem:[#allocation1] sm:$0xff]  ;;  %v9005_v9 = vld [vmem:[#allocation1 + $0x9] sm:$0xff]  ;;  %v9007_v3 = vld [vmem:[#allocation1 + $0x12] sm:$0xff]  ;;  %v7378_v41 = vor.u32 %v8172_v53, %v7377_v35  ;;  %v7506_v14 = vor.u32 %v8204_v10, %v7505_v33  ;;  %vm5396_vm1 = vcmask 519168   ;;  %vm5417_vm3 = vcmask 517120  }
 0x2f0   :  { %4137 = vst [vmem:[#allocation1] ss:$9 sm:$0xff] %v4114_v18  ;;  %v7561_v54 = vld [vmem:[#allocation11 + $0x380] sm:$0xf]  ;;  %v8218_v24 = vld [vmem:[#allocation11 + $0x384] sm:$0xf0] }
 0x2f1   :  { %4138 = vst [vmem:[#allocation1 + $0x1] ss:$9 sm:$0xff] %v9012_v36  ;;  %5214 = vmatpush.bf16.msra.mxu1 %v7466_v38  ;;  %5227 = vmatpush.bf16.msra.mxu2 %v7530_v59  ;;  %v7497_v38 = vld [vmem:[#allocation11 + $0x300] sm:$0xf]  ;;  %v4212_v30 = vrot.slane %v9007_v3, 4 }
 0x2f2   :  { %5201 = vmatpush.bf16.msra.mxu0 %v7402_v16  ;;  %5240 = vmatpush.bf16.msra.mxu3 %v7594_v29  ;;  %v7570_v16 = vor.u32 %v8220_v20, %v7569_v39  ;;  %v7498_v59 = vor.u32 %v8202_v21, %v7497_v38  ;;  %v7562_v29 = vor.u32 %v8218_v24, %v7561_v54  ;;  %v7681_v21 = vld [vmem:[#allocation11 + $0x470] sm:$0xf]  ;;  %v8248_v54 = vld [vmem:[#allocation11 + $0x474] sm:$0xf0]  ;;  %v8119_v24 = vld [vmem:[#allocation11 + $0x74] sm:$0xf] }
 0x2f5   :  { %5215 = vmatpush.bf16.msra.mxu1 %v7458_v56  ;;  %5228 = vmatpush.bf16.msra.mxu2 %v7522_v17 }
 0x2f6   :  { %5202 = vmatpush.bf16.msra.mxu0 %v7394_v19  ;;  %5241 = vmatpush.bf16.msra.mxu3 %v7586_v7 }
 0x2f8   :  { %v9024_v23 = vld [vmem:[#allocation1] sm:$0xff]  ;;  %v9026_v61 = vld [vmem:[#allocation1 + $0x9] sm:$0xff]  ;;  %v9028_v45 = vld [vmem:[#allocation1 + $0x12] sm:$0xff] }
 0x2f9   :  { %4144 = vst [vmem:[#allocation1] ss:$9 sm:$0xff] %v8978_v51  ;;  %v4123_v51 = vsel %vm666_vm4, %v4090_v58, %v4091_v60  ;;  %v7386_v60 = vor.u32 %v8174_v25, %v7385_v6  ;;  %5216 = vmatpush.bf16.msra.mxu1 %v7450_v34  ;;  %5229 = vmatpush.bf16.msra.mxu2 %v7514_v31  ;;  %v4211_v31 = vrot.slane %v9005_v9, 6  ;;  %v4218_v10 = vrot.slane %v9028_v45, 4  ;;  %vm9135_vm4 = vmmov %vm9134_vm0 }
 0x2fa   :  { %4146 = vst [vmem:[#allocation1 + $0x1] ss:$9 sm:$0xff] %v8985_v47  ;;  %v9045_v58 = vsel %vm668_vm6, %v4122_v43, %v4123_v51  ;;  %5242 = vmatpush.bf16.msra.mxu3 %v7578_v5  ;;  %v4217_v5 = vrot.slane %v9026_v61, 6 }
 0x2fb   :  { %4149 = vst [vmem:[#allocation1 + $0x2] ss:$9 sm:$0xff] %v4108_v48  ;;  %v4126_v55 = vrot.slane %v9045_v58, 1  ;;  %5203 = vmatpush.bf16.msra.mxu0 %v7386_v60  ;;  %v4224_v3 = vsel %vm635_vm5, %v9003_v8, %v4211_v31  ;;  %v7283_v31 = vld [vmem:[#allocation11 + $0x158] sm:$0xf0] }
 0x2fc   :  { %v4237_v45 = vsel %vm635_vm5, %v9024_v23, %v4217_v5 }
 0x2fd   :  { %5217 = vmatpush.bf16.msra.mxu1 %v7442_v62  ;;  %5230 = vmatpush.bf16.msra.mxu2 %v7506_v14 }
 0x2fe   :  { %5243 = vmatpush.bf16.msra.mxu3 %v7570_v16 }
 0x2ff   :  { %5204 = vmatpush.bf16.msra.mxu0 %v7378_v41 }
 0x301   :  { %5218 = vmatpush.bf16.msra.mxu1 %v7434_v37  ;;  %5231 = vmatpush.bf16.msra.mxu2 %v7498_v59  ;;  %v8135_v37 = vld [vmem:[#allocation11 + $0xf4] sm:$0xf]  ;;  %v7235_v59 = vld [vmem:[#allocation11 + $0xf8] sm:$0xf0] }
 0x302   :  { %v4150_v22 = vld [vmem:[#allocation1] sm:$0xff]  ;;  %v4151_v40 = vld [vmem:[#allocation1 + $0x9] sm:$0xff]  ;;  %v4152_v13 = vld [vmem:[#allocation1 + $0x12] sm:$0xff]  ;;  %5244 = vmatpush.bf16.msra.mxu3 %v7562_v29 }
 0x303   :  { %4153 = vst [vmem:[#allocation1] ss:$9 sm:$0xff] %v4114_v18  ;;  %v7370_v18 = vor.u32 %v8170_v44, %v7369_v28  ;;  %v4162_v1 = vshll.u32 %v4150_v22, 16  ;;  %v4174_v56 = vshll.u32 %v4152_v13, 16  ;;  %v4168_v51 = vshll.u32 %v4151_v40, 16 }
 0x304   :  { %4154 = vst [vmem:[#allocation1 + $0x1] ss:$9 sm:$0xff] %v9012_v36  ;;  %v4160_v57 = vshrl.u32 %v4150_v22, 16  ;;  %v4172_v7 = vshrl.u32 %v4152_v13, 16  ;;  %v8151_v29 = vld [vmem:[#allocation11 + $0x174] sm:$0xf] }
 0x305   :  { %4156 = vst [vmem:[#allocation1 + $0x2] ss:$9 sm:$0xff] %v4126_v55  ;;  %5205 = vmatpush.bf16.msra.mxu0 %v7370_v18  ;;  %v4164_v63 = vrot.slane %v4162_v1, 1  ;;  %v4176_v0 = vrot.slane %v4174_v56, 1  ;;  %v4170_v4 = vrot.slane %v4168_v51, 1 }
 0x306   :  { %v7171_v18 = vld [vmem:[#allocation11 + $0x78] sm:$0xf0]  ;;  %v7163_v56 = vld [vmem:[#allocation11 + $0x68] sm:$0xf0]  ;;  %v8133_v51 = vld [vmem:[#allocation11 + $0xe4] sm:$0xf] }
 0x307   :  { %v4165_v25 = vor.u32 %v4164_v63, %v4160_v57  ;;  %v4177_v43 = vor.u32 %v4176_v0, %v4172_v7  ;;  %v7299_v1 = vld [vmem:[#allocation11 + $0x178] sm:$0xf0]  ;;  %v7174_v63 = vor.u32 %v8119_v24, %v7171_v18  ;;  %v8149_v0 = vld [vmem:[#allocation11 + $0x164] sm:$0xf]  ;;  %v7291_v57 = vld [vmem:[#allocation11 + $0x168] sm:$0xf0] }
 0x308   :  { %v7195_v18 = vld [vmem:[#allocation11 + $0xa8] sm:$0xf0] }
 0x309   :  { %v4213_v27 = vrot.slane %v4165_v25, 2  ;;  %v4214_v50 = vrot.slane %v4177_v43, 6  ;;  %v7238_v25 = vor.u32 %v8135_v37, %v7235_v59  ;;  %v8141_v37 = vld [vmem:[#allocation11 + $0x124] sm:$0xf]  ;;  %v7259_v59 = vld [vmem:[#allocation11 + $0x128] sm:$0xf0] }
 0x30b   :  { %v4227_v20 = vsel %vm645_vm11, %v4212_v30, %v4213_v27  ;;  %v8244_v27 = vld [vmem:[#allocation11 + $0x454] sm:$0xf0] }
 0x30c   :  { %v4157_v2 = vld [vmem:[#allocation1] sm:$0xff]  ;;  %v4158_v26 = vld [vmem:[#allocation1 + $0x9] sm:$0xff]  ;;  %v4159_v19 = vld [vmem:[#allocation1 + $0x12] sm:$0xff]  ;;  %v4228_v44 = vsel %vm647_vm13, %v4224_v3, %v4227_v20 }
 0x30d   :  { %v4180_v52 = vshll.u32 %v4157_v2, 16  ;;  %4196 = vst [vmem:[#allocation1] ss:$9 sm:$0xff] %v8985_v47  ;;  %v4178_v6 = vshrl.u32 %v4157_v2, 16  ;;  %v4166_v47 = vshrl.u32 %v4151_v40, 16  ;;  %v4186_v58 = vshll.u32 %v4158_v26, 16 }
 0x30e   :  { %4198 = vst [vmem:[#allocation1 + $0x1] ss:$9 sm:$0xff] %v4108_v48  ;;  %v4192_v60 = vshll.u32 %v4159_v19, 16  ;;  %v4190_v42 = vshrl.u32 %v4159_v19, 16  ;;  %v4184_v13 = vshrl.u32 %v4158_v26, 16 }
 0x30f   :  { %v4182_v17 = vrot.slane %v4180_v52, 1  ;;  %v4171_v48 = vor.u32 %v4170_v4, %v4166_v47  ;;  %v7673_v2 = vld [vmem:[#allocation11 + $0x460] sm:$0xf]  ;;  %v8246_v26 = vld [vmem:[#allocation11 + $0x464] sm:$0xf0]  ;;  %v7682_v52 = vor.u32 %v8248_v54, %v7681_v21  ;;  %v7302_v4 = vor.u32 %v8151_v29, %v7299_v1 }
 0x310   :  { %v4194_v33 = vrot.slane %v4192_v60, 1  ;;  %v8117_v19 = vld [vmem:[#allocation11 + $0x64] sm:$0xf]  ;;  %v7665_v47 = vld [vmem:[#allocation11 + $0x450] sm:$0xf] }
 0x311   :  { %v4183_v11 = vor.u32 %v4182_v17, %v4178_v6  ;;  %v7227_v17 = vld [vmem:[#allocation11 + $0xe8] sm:$0xf0]  ;;  %v8115_v60 = vld [vmem:[#allocation11 + $0x54] sm:$0xf]  ;;  %v8129_v20 = vld [vmem:[#allocation11 + $0xc4] sm:$0xf] }
 0x312   :  { %v4195_v22 = vor.u32 %v4194_v33, %v4190_v42  ;;  %v7657_v42 = vld [vmem:[#allocation11 + $0x440] sm:$0xf]  ;;  %v8242_v33 = vld [vmem:[#allocation11 + $0x444] sm:$0xf0]  ;;  %v7131_v21 = vld [vmem:[#allocation11 + $0x28] sm:$0xf0] }
 0x313   :  { %v4219_v34 = vrot.slane %v4183_v11, 2 }
 0x314   :  { %v4220_v61 = vrot.slane %v4195_v22, 6  ;;  %v8145_v22 = vld [vmem:[#allocation11 + $0x144] sm:$0xf] }
 0x315   :  { %v4199_v12 = vld [vmem:[#allocation1] sm:$0xff]  ;;  %v4201_v49 = vld [vmem:[#allocation1 + $0x9] sm:$0xff]  ;;  %v9054_v15 = vld [vmem:[#allocation1 + $0x12] sm:$0xff]  ;;  %v4240_v9 = vsel %vm645_vm11, %v4218_v10, %v4219_v34 }
 0x316   :  { %4204 = vst [vmem:[#allocation1] ss:$9 sm:$0xff] %v9012_v36  ;;  %v4215_v35 = vrot.slane %v4199_v12, 4  ;;  %v4216_v53 = vrot.slane %v4201_v49, 2  ;;  %v4231_v36 = vsel %vm635_vm5, %v4171_v48, %v4214_v50  ;;  %v4241_v14 = vsel %vm647_vm13, %v4237_v45, %v4240_v9  ;;  %v7155_v34 = vld [vmem:[#allocation11 + $0x58] sm:$0xf0] }
 0x317   :  { %4205 = vst [vmem:[#allocation1 + $0x1] ss:$9 sm:$0xff] %v4126_v55  ;;  %v4188_v55 = vrot.slane %v4186_v58, 1  ;;  %v7674_v12 = vor.u32 %v8246_v26, %v7673_v2  ;;  %v7166_v49 = vor.u32 %v8117_v19, %v7163_v56  ;;  %v7230_v48 = vor.u32 %v8133_v51, %v7227_v17  ;;  %v8131_v50 = vld [vmem:[#allocation11 + $0xd4] sm:$0xf] }
 0x318   :  { %v4234_v39 = vsel %vm645_vm11, %v4215_v35, %v4216_v53  ;;  %v7294_v58 = vor.u32 %v8149_v0, %v7291_v57  ;;  %v7219_v35 = vld [vmem:[#allocation11 + $0xd8] sm:$0xf0]  ;;  %v8147_v53 = vld [vmem:[#allocation11 + $0x154] sm:$0xf]  ;;  %v7158_v30 = vor.u32 %v8115_v60, %v7155_v34  ;;  %v7658_v9 = vor.u32 %v8242_v33, %v7657_v42  ;;  %v7633_v51 = vld [vmem:[#allocation11 + $0x410] sm:$0xf] }
 0x319   :  { %v4235_v40 = vsel %vm647_vm13, %v4231_v36, %v4234_v39  ;;  %v4189_v46 = vor.u32 %v4188_v55, %v4184_v13  ;;  %v7222_v5 = vor.u32 %v8131_v50, %v7219_v35  ;;  %v7286_v10 = vor.u32 %v8147_v53, %v7283_v31  ;;  %v8113_v36 = vld [vmem:[#allocation11 + $0x44] sm:$0xf]  ;;  %v7147_v39 = vld [vmem:[#allocation11 + $0x48] sm:$0xf0]  ;;  %v7649_v13 = vld [vmem:[#allocation11 + $0x430] sm:$0xf] }
 0x31a   :  { %4403 = vst [vmem:[#allocation1 + $0x20] ss:$4 sm:$0xff] %v4235_v40  ;;  %v7211_v55 = vld [vmem:[#allocation11 + $0xc8] sm:$0xf0]  ;;  %v7150_v3 = vor.u32 %v8113_v36, %v7147_v39  ;;  %v8236_v17 = vld [vmem:[#allocation11 + $0x414] sm:$0xf0]  ;;  %v7262_v57 = vor.u32 %v8141_v37, %v7259_v59 }
 0x31b   :  { %v4244_v38 = vsel %vm635_vm5, %v4189_v46, %v4220_v61  ;;  %v7275_v40 = vld [vmem:[#allocation11 + $0x148] sm:$0xf0]  ;;  %v8240_v61 = vld [vmem:[#allocation11 + $0x434] sm:$0xf0]  ;;  %v7214_v45 = vor.u32 %v8129_v20, %v7211_v55  ;;  %v8143_v46 = vld [vmem:[#allocation11 + $0x134] sm:$0xf] }
 0x31c   :  { %v7650_v54 = vor.u32 %v8240_v61, %v7649_v13  ;;  %v8234_v34 = vld [vmem:[#allocation11 + $0x404] sm:$0xf0]  ;;  %v8105_v50 = vld [vmem:[#allocation11 + $0x4] sm:$0xf]  ;;  %v7115_v35 = vld [vmem:[#allocation11 + $0x8] sm:$0xf0] }
 0x31d   :  { %v8137_v42 = vld [vmem:[#allocation11 + $0x104] sm:$0xf]  ;;  %v7243_v33 = vld [vmem:[#allocation11 + $0x108] sm:$0xf0]  ;;  %v8183_v36 = vld [vmem:[#allocation11 + $0x274] sm:$0xf] }
 0x31e   :  { %v4206_v41 = vld [vmem:[#allocation1] sm:$0xff]  ;;  %v4208_v62 = vld [vmem:[#allocation1 + $0x9] sm:$0xff]  ;;  %v4210_v28 = vld [vmem:[#allocation1 + $0x12] sm:$0xff]  ;;  %v7246_v61 = vor.u32 %v8137_v42, %v7243_v33 }
 0x31f   :  { %4399 = vst [vmem:[#allocation1] ss:$4 sm:$0xff] %v4228_v44  ;;  %v4221_v32 = vrot.slane %v4206_v41, 4  ;;  %v4222_v16 = vrot.slane %v4208_v62, 2  ;;  %v7278_v41 = vor.u32 %v8145_v22, %v7275_v40  ;;  %v8111_v62 = vld [vmem:[#allocation11 + $0x34] sm:$0xf]  ;;  %v7118_v22 = vor.u32 %v8105_v50, %v7115_v35 }
 0x320   :  { %4401 = vst [vmem:[#allocation1 + $0x1] ss:$4 sm:$0xff] %v4241_v14  ;;  %v8127_v44 = vld [vmem:[#allocation11 + $0xb4] sm:$0xf]  ;;  %v7203_v14 = vld [vmem:[#allocation11 + $0xb8] sm:$0xf0] }
 0x321   :  { %v4247_v8 = vsel %vm645_vm11, %v4221_v32, %v4222_v16  ;;  %v7267_v32 = vld [vmem:[#allocation11 + $0x138] sm:$0xf0]  ;;  %v7641_v16 = vld [vmem:[#allocation11 + $0x420] sm:$0xf]  ;;  %v7206_v2 = vor.u32 %v8127_v44, %v7203_v14  ;;  %v8199_v20 = vld [vmem:[#allocation11 + $0x2f4] sm:$0xf] }
 0x322   :  { %v4248_v23 = vsel %vm647_vm13, %v4244_v38, %v4247_v8  ;;  %v8238_v38 = vld [vmem:[#allocation11 + $0x424] sm:$0xf0]  ;;  %v8109_v8 = vld [vmem:[#allocation11 + $0x24] sm:$0xf]  ;;  %v7270_v26 = vor.u32 %v8143_v46, %v7267_v32  ;;  %v7427_v39 = vld [vmem:[#allocation11 + $0x278] sm:$0xf0] }
 0x323   :  { %4405 = vst [vmem:[#allocation1 + $0x21] ss:$4 sm:$0xff] %v4248_v23  ;;  %v8125_v23 = vld [vmem:[#allocation11 + $0xa4] sm:$0xf]  ;;  %v7491_v40 = vld [vmem:[#allocation11 + $0x2f8] sm:$0xf0] }
 0x324   :  { %v7198_v0 = vor.u32 %v8125_v23, %v7195_v18  ;;  %v7494_v44 = vor.u32 %v8199_v20, %v7491_v40  ;;  %v8181_v46 = vld [vmem:[#allocation11 + $0x264] sm:$0xf]  ;;  %v7419_v32 = vld [vmem:[#allocation11 + $0x268] sm:$0xf0]  ;;  %v8163_v18 = vld [vmem:[#allocation11 + $0x1d4] sm:$0xf] }
 0x325   :  { %v7422_v23 = vor.u32 %v8181_v46, %v7419_v32  ;;  %v7347_v37 = vld [vmem:[#allocation11 + $0x1d8] sm:$0xf0]  ;;  %v8159_v50 = vld [vmem:[#allocation11 + $0x1b4] sm:$0xf]  ;;  %v8157_v20 = vld [vmem:[#allocation11 + $0x1a4] sm:$0xf] }
 0x326   :  { %v7331_v35 = vld [vmem:[#allocation11 + $0x1b8] sm:$0xf0]  ;;  %v8191_v42 = vld [vmem:[#allocation11 + $0x2b4] sm:$0xf] }
 0x327   :  { %v9075_v6 = vld.sshfl [vmem:[#allocation1] sm:$0xff pattern:$0x73625140]  ;;  %v9077_v7 = vld.sshfl [vmem:[#allocation1 + $0x8] sm:$0xff pattern:$0x73625140] }
 0x328   :  { %5154 = vmatmul.bf16.vlgmr.msrb.gmra.mxu0 %v9075_v6  ;;  %5167 = vmatmul.bf16.vlgmr.msrb.gmra.mxu1 %v9077_v7  ;;  %v9081_v11 = vld.sshfl [vmem:[#allocation1 + $0x10] sm:$0xff pattern:$0x73625140]  ;;  %v9083_v43 = vld.sshfl [vmem:[#allocation1 + $0x18] sm:$0xff pattern:$0x73625140] }
 0x329   :  { %5180 = vmatmul.bf16.vlgmr.msrb.gmra.mxu2 %v9081_v11  ;;  %5193 = vmatmul.bf16.vlgmr.msrb.gmra.mxu3 %v9083_v43  ;;  %4414 = vst [vmem:[#allocation1] ss:$4 sm:$0xff] %v9054_v15  ;;  %v7666_v15 = vor.u32 %v8244_v27, %v7665_v47  ;;  %v8139_v47 = vld [vmem:[#allocation11 + $0x114] sm:$0xf]  ;;  %v7251_v27 = vld [vmem:[#allocation11 + $0x118] sm:$0xf0] }
 0x32a   :  { %4415 = vst [vmem:[#allocation1 + $0x1] ss:$4 sm:$0xff] %v4210_v28  ;;  %5250 = vmatpush.bf16.msrb.mxu0 %v7682_v52  ;;  %5263 = vmatpush.bf16.msrb.mxu1 %v7174_v63  ;;  %v7139_v28 = vld [vmem:[#allocation11 + $0x38] sm:$0xf0]  ;;  %v7642_v52 = vor.u32 %v8238_v38, %v7641_v16  ;;  %v7134_v63 = vor.u32 %v8109_v8, %v7131_v21  ;;  %v8197_v16 = vld [vmem:[#allocation11 + $0x2e4] sm:$0xf] }
 0x32b   :  { %5276 = vmatpush.bf16.msrb.mxu2 %v7238_v25  ;;  %5289 = vmatpush.bf16.msrb.mxu3 %v7302_v4  ;;  %v7142_v24 = vor.u32 %v8111_v62, %v7139_v28  ;;  %v9088_v29 = vld.sshfl [vmem:[#allocation1 + $0x20] sm:$0xff pattern:$0x73625140]  ;;  %v9090_v1 = vld.sshfl [vmem:[#allocation1 + $0x28] sm:$0xff pattern:$0x73625140]  ;;  %v7254_v31 = vor.u32 %v8139_v47, %v7251_v27 }
 0x32c   :  { %v9094_v19 = vld.sshfl [vmem:[#allocation1 + $0x30] sm:$0xff pattern:$0x73625140]  ;;  %v9096_v56 = vld.sshfl [vmem:[#allocation1 + $0x38] sm:$0xff pattern:$0x73625140] }
 0x32d   :  { %v8107_v25 = vld [vmem:[#allocation11 + $0x14] sm:$0xf]  ;;  %v7123_v4 = vld [vmem:[#allocation11 + $0x18] sm:$0xf0]  ;;  %v8165_v62 = vld [vmem:[#allocation11 + $0x1e4] sm:$0xf] }
 0x32e   :  { %5251 = vmatpush.bf16.msrb.mxu0 %v7674_v12  ;;  %5264 = vmatpush.bf16.msrb.mxu1 %v7166_v49  ;;  %v8123_v12 = vld [vmem:[#allocation11 + $0x94] sm:$0xf]  ;;  %v7187_v49 = vld [vmem:[#allocation11 + $0x98] sm:$0xf0]  ;;  %v7126_v60 = vor.u32 %v8107_v25, %v7123_v4  ;;  %v7355_v28 = vld [vmem:[#allocation11 + $0x1e8] sm:$0xf0] }
 0x32f   :  { %5277 = vmatpush.bf16.msrb.mxu2 %v7230_v48  ;;  %5290 = vmatpush.bf16.msrb.mxu3 %v7294_v58  ;;  %v7625_v48 = vld [vmem:[#allocation11 + $0x400] sm:$0xf]  ;;  %v7634_v58 = vor.u32 %v8236_v17, %v7633_v51  ;;  %v7190_v53 = vor.u32 %v8123_v12, %v7187_v49  ;;  %v7483_v38 = vld [vmem:[#allocation11 + $0x2e8] sm:$0xf0]  ;;  %v8213_v8 = vld [vmem:[#allocation11 + $0x364] sm:$0xf] }
 0x330   :  { %v7626_v55 = vor.u32 %v8234_v34, %v7625_v48  ;;  %v7547_v21 = vld [vmem:[#allocation11 + $0x368] sm:$0xf0]  ;;  %v7486_v59 = vor.u32 %v8197_v16, %v7483_v38  ;;  %v7475_v51 = vld [vmem:[#allocation11 + $0x2d8] sm:$0xf0]  ;;  %v8211_v17 = vld [vmem:[#allocation11 + $0x354] sm:$0xf] }
 0x331   :  { %v8161_v4 = vld [vmem:[#allocation11 + $0x1c4] sm:$0xf]  ;;  %v7339_v12 = vld [vmem:[#allocation11 + $0x1c8] sm:$0xf0]  ;;  %v7459_v33 = vld [vmem:[#allocation11 + $0x2b8] sm:$0xf0] }
 0x332   :  { %5252 = vmatpush.bf16.msrb.mxu0 %v7666_v15  ;;  %5265 = vmatpush.bf16.msrb.mxu1 %v7158_v30  ;;  %v8121_v15 = vld [vmem:[#allocation11 + $0x84] sm:$0xf]  ;;  %v7179_v30 = vld [vmem:[#allocation11 + $0x88] sm:$0xf0]  ;;  %v8171_v16 = vld [vmem:[#allocation11 + $0x214] sm:$0xf] }
 0x333   :  { %5278 = vmatpush.bf16.msrb.mxu2 %v7222_v5  ;;  %5291 = vmatpush.bf16.msrb.mxu3 %v7286_v10  ;;  %v8167_v5 = vld [vmem:[#allocation11 + $0x1f4] sm:$0xf]  ;;  %v7363_v10 = vld [vmem:[#allocation11 + $0x1f8] sm:$0xf0]  ;;  %v7182_v13 = vor.u32 %v8121_v15, %v7179_v30  ;;  %v8177_v27 = vld [vmem:[#allocation11 + $0x244] sm:$0xf] }
 0x334   :  { %v7403_v48 = vld [vmem:[#allocation11 + $0x248] sm:$0xf0]  ;;  %v8175_v15 = vld [vmem:[#allocation11 + $0x234] sm:$0xf]  ;;  %v7395_v30 = vld [vmem:[#allocation11 + $0x238] sm:$0xf0] }
 0x335   :  { %v7531_v34 = vld [vmem:[#allocation11 + $0x348] sm:$0xf0]  ;;  %v7379_v38 = vld [vmem:[#allocation11 + $0x218] sm:$0xf0] }
 0x336   :  { %5253 = vmatpush.bf16.msrb.mxu0 %v7658_v9  ;;  %5266 = vmatpush.bf16.msrb.mxu1 %v7150_v3  ;;  %v8215_v9 = vld [vmem:[#allocation11 + $0x374] sm:$0xf]  ;;  %v7555_v3 = vld [vmem:[#allocation11 + $0x378] sm:$0xf0] }
 0x337   :  { %5279 = vmatpush.bf16.msrb.mxu2 %v7214_v45  ;;  %5292 = vmatpush.bf16.msrb.mxu3 %v7278_v41  ;;  %v7366_v45 = vor.u32 %v8167_v5, %v7363_v10  ;;  %v7430_v41 = vor.u32 %v8183_v36, %v7427_v39  ;;  %v7558_v14 = vor.u32 %v8215_v9, %v7555_v3  ;;  %v8207_v5 = vld [vmem:[#allocation11 + $0x334] sm:$0xf]  ;;  %v7523_v10 = vld [vmem:[#allocation11 + $0x338] sm:$0xf0]  ;;  %v8173_v9 = vld [vmem:[#allocation11 + $0x224] sm:$0xf] }
 0x338   :  { %5206 = vmatmul.bf16.vlgmr.msra.gmra.mxu0 %v9088_v29  ;;  %5219 = vmatmul.bf16.vlgmr.msra.gmra.mxu1 %v9090_v1  ;;  %v7334_v36 = vor.u32 %v8159_v50, %v7331_v35  ;;  %v7398_v39 = vor.u32 %v8175_v15, %v7395_v30  ;;  %v7526_v40 = vor.u32 %v8207_v5, %v7523_v10  ;;  %v7387_v3 = vld [vmem:[#allocation11 + $0x228] sm:$0xf0]  ;;  %v8245_v50 = vld [vmem:[#allocation11 + $0x464] sm:$0xf]  ;;  %v8227_v15 = vld [vmem:[#allocation11 + $0x3d4] sm:$0xf] }
 0x339   :  { %5232 = vmatmul.bf16.vlgmr.msra.gmra.mxu2 %v9094_v19  ;;  %5245 = vmatmul.bf16.vlgmr.msra.gmra.mxu3 %v9096_v56  ;;  %v7675_v35 = vld [vmem:[#allocation11 + $0x468] sm:$0xf0]  ;;  %v7603_v30 = vld [vmem:[#allocation11 + $0x3d8] sm:$0xf0] }
 0x33a   :  { %5254 = vmatpush.bf16.msrb.mxu0 %v7650_v54  ;;  %5267 = vmatpush.bf16.msrb.mxu1 %v7142_v24  ;;  %v9100_v54 = vld.sshfl [vmem:[#allocation1] sm:$0xff pattern:$0x73625140]  ;;  %v7358_v24 = vor.u32 %v8165_v62, %v7355_v28  ;;  %v7390_v28 = vor.u32 %v8173_v9, %v7387_v3  ;;  %v7606_v5 = vor.u32 %v8227_v15, %v7603_v30  ;;  %v8239_v9 = vld [vmem:[#allocation11 + $0x434] sm:$0xf] }
 0x33b   :  { %5280 = vmatpush.bf16.msrb.mxu2 %v7206_v2  ;;  %5293 = vmatpush.bf16.msrb.mxu3 %v7270_v26  ;;  %v7550_v2 = vor.u32 %v8213_v8, %v7547_v21  ;;  %v8179_v26 = vld [vmem:[#allocation11 + $0x254] sm:$0xf]  ;;  %v7443_v21 = vld [vmem:[#allocation11 + $0x298] sm:$0xf0] }
 0x33c   :  { %v8187_v8 = vld [vmem:[#allocation11 + $0x294] sm:$0xf]  ;;  %v7651_v3 = vld [vmem:[#allocation11 + $0x438] sm:$0xf0] }
 0x33e   :  { %5255 = vmatpush.bf16.msrb.mxu0 %v7642_v52  ;;  %5268 = vmatpush.bf16.msrb.mxu1 %v7134_v63  ;;  %v7411_v52 = vld [vmem:[#allocation11 + $0x258] sm:$0xf0]  ;;  %v8195_v63 = vld [vmem:[#allocation11 + $0x2d4] sm:$0xf] }
 0x33f   :  { %5281 = vmatpush.bf16.msrb.mxu2 %v7198_v0  ;;  %5294 = vmatpush.bf16.msrb.mxu3 %v7262_v57  ;;  %v7539_v0 = vld [vmem:[#allocation11 + $0x358] sm:$0xf0]  ;;  %v7350_v57 = vor.u32 %v8163_v18, %v7347_v37  ;;  %v7414_v25 = vor.u32 %v8179_v26, %v7411_v52  ;;  %v7478_v49 = vor.u32 %v8195_v63, %v7475_v51  ;;  %v8169_v26 = vld [vmem:[#allocation11 + $0x204] sm:$0xf]  ;;  %v7371_v51 = vld [vmem:[#allocation11 + $0x208] sm:$0xf0] }
 0x340   :  { %v7542_v47 = vor.u32 %v8211_v17, %v7539_v0  ;;  %v7382_v37 = vor.u32 %v8171_v16, %v7379_v38  ;;  %v7446_v52 = vor.u32 %v8187_v8, %v7443_v21  ;;  %v8185_v17 = vld [vmem:[#allocation11 + $0x284] sm:$0xf]  ;;  %v7435_v0 = vld [vmem:[#allocation11 + $0x288] sm:$0xf0] }
 0x341   :  { %v8217_v8 = vld [vmem:[#allocation11 + $0x384] sm:$0xf]  ;;  %v7563_v21 = vld [vmem:[#allocation11 + $0x388] sm:$0xf0] }
 0x342   :  { %5256 = vmatpush.bf16.msrb.mxu0 %v7634_v58  ;;  %5269 = vmatpush.bf16.msrb.mxu1 %v7126_v60  ;;  %v7467_v58 = vld [vmem:[#allocation11 + $0x2c8] sm:$0xf0]  ;;  %v8209_v60 = vld [vmem:[#allocation11 + $0x344] sm:$0xf] }
 0x343   :  { %5282 = vmatpush.bf16.msrb.mxu2 %v7190_v53  ;;  %5295 = vmatpush.bf16.msrb.mxu3 %v7254_v31  ;;  %v7534_v31 = vor.u32 %v8209_v60, %v7531_v34 }
 0x346   :  { %5257 = vmatpush.bf16.msrb.mxu0 %v7626_v55  ;;  %5270 = vmatpush.bf16.msrb.mxu1 %v7118_v22  ;;  %v7323_v55 = vld [vmem:[#allocation11 + $0x1a8] sm:$0xf0]  ;;  %v7462_v22 = vor.u32 %v8191_v42, %v7459_v33  ;;  %v8243_v42 = vld [vmem:[#allocation11 + $0x454] sm:$0xf]  ;;  %v7667_v33 = vld [vmem:[#allocation11 + $0x458] sm:$0xf0] }
 0x347   :  { %5283 = vmatpush.bf16.msrb.mxu2 %v7182_v13  ;;  %5296 = vmatpush.bf16.msrb.mxu3 %v7246_v61  ;;  %v8189_v13 = vld [vmem:[#allocation11 + $0x2a4] sm:$0xf]  ;;  %v7451_v61 = vld [vmem:[#allocation11 + $0x2a8] sm:$0xf0]  ;;  %v7326_v62 = vor.u32 %v8157_v20, %v7323_v55  ;;  %v7670_v10 = vor.u32 %v8243_v42, %v7667_v33 }
 0x348   :  { %v7454_v46 = vor.u32 %v8189_v13, %v7451_v61  ;;  %v8241_v20 = vld [vmem:[#allocation11 + $0x444] sm:$0xf]  ;;  %v7659_v55 = vld [vmem:[#allocation11 + $0x448] sm:$0xf0] }
 0x349   :  { %5258 = vmatmul.bf16.vlgmr.msrb.gmra.mxu0 %v9100_v54  ;;  %5271 = vmatmul.bf16.vlgmr.msrb.gmra.mxu1 %v9075_v6  ;;  %v8193_v6 = vld [vmem:[#allocation11 + $0x2c4] sm:$0xf]  ;;  %v7579_v61 = vld [vmem:[#allocation11 + $0x3a8] sm:$0xf0] }
 0x34a   :  { %5302 = vmatpush.bf16.msra.mxu0 %v7366_v45  ;;  %5315 = vmatpush.bf16.msra.mxu1 %v7430_v41  ;;  %v7470_v53 = vor.u32 %v8193_v6, %v7467_v58  ;;  %v8205_v45 = vld [vmem:[#allocation11 + $0x324] sm:$0xf]  ;;  %v7515_v41 = vld [vmem:[#allocation11 + $0x328] sm:$0xf0]  ;;  %v7438_v6 = vor.u32 %v8185_v17, %v7435_v0 }
 0x34b   :  { %5328 = vmatpush.bf16.msra.mxu2 %v7494_v44  ;;  %5341 = vmatpush.bf16.msra.mxu3 %v7558_v14  ;;  %v8155_v44 = vld [vmem:[#allocation11 + $0x194] sm:$0xf]  ;;  %v7315_v14 = vld [vmem:[#allocation11 + $0x198] sm:$0xf0]  ;;  %v7518_v32 = vor.u32 %v8205_v45, %v7515_v41  ;;  %v8221_v13 = vld [vmem:[#allocation11 + $0x3a4] sm:$0xf] }
 0x34c   :  { %5284 = vmatmul.bf16.vlgmr.msrb.gmra.mxu2 %v9077_v7  ;;  %5297 = vmatmul.bf16.vlgmr.msrb.gmra.mxu3 %v9081_v11  ;;  %v7342_v7 = vor.u32 %v8161_v4, %v7339_v12  ;;  %v7406_v11 = vor.u32 %v8177_v27, %v7403_v48  ;;  %v7318_v18 = vor.u32 %v8155_v44, %v7315_v14  ;;  %v8231_v4 = vld [vmem:[#allocation11 + $0x3f4] sm:$0xf]  ;;  %v7619_v12 = vld [vmem:[#allocation11 + $0x3f8] sm:$0xf0]  ;;  %v8237_v45 = vld [vmem:[#allocation11 + $0x424] sm:$0xf] }
 0x34d   :  { %v7374_v48 = vor.u32 %v8169_v26, %v7371_v51  ;;  %v7622_v60 = vor.u32 %v8231_v4, %v7619_v12  ;;  %v7643_v41 = vld [vmem:[#allocation11 + $0x428] sm:$0xf0]  ;;  %v8219_v44 = vld [vmem:[#allocation11 + $0x394] sm:$0xf]  ;;  %v7571_v14 = vld [vmem:[#allocation11 + $0x398] sm:$0xf0] }
 0x34e   :  { %5303 = vmatpush.bf16.msra.mxu0 %v7358_v24  ;;  %5316 = vmatpush.bf16.msra.mxu1 %v7422_v23  ;;  %v8203_v24 = vld [vmem:[#allocation11 + $0x314] sm:$0xf]  ;;  %v7507_v23 = vld [vmem:[#allocation11 + $0x318] sm:$0xf0]  ;;  %v7574_v16 = vor.u32 %v8219_v44, %v7571_v14  ;;  %v4393_v26 = vld [vmem:[#allocation13] sm:$0x3] }
 0x34f   :  { %5329 = vmatpush.bf16.msra.mxu2 %v7486_v59  ;;  %5342 = vmatpush.bf16.msra.mxu3 %v7550_v2  ;;  %v8153_v59 = vld [vmem:[#allocation11 + $0x184] sm:$0xf]  ;;  %v7307_v2 = vld [vmem:[#allocation11 + $0x188] sm:$0xf0]  ;;  %v7510_v63 = vor.u32 %v8203_v24, %v7507_v23 }
 0x350   :  { %v7310_v27 = vor.u32 %v8153_v59, %v7307_v2  ;;  %v8233_v24 = vld [vmem:[#allocation11 + $0x404] sm:$0xf]  ;;  %v7627_v23 = vld [vmem:[#allocation11 + $0x408] sm:$0xf0] }
 0x352   :  { %5304 = vmatpush.bf16.msra.mxu0 %v7350_v57  ;;  %5317 = vmatpush.bf16.msra.mxu1 %v7414_v25  ;;  %v8201_v57 = vld [vmem:[#allocation11 + $0x304] sm:$0xf]  ;;  %v7499_v25 = vld [vmem:[#allocation11 + $0x308] sm:$0xf0] }
 0x353   :  { %5330 = vmatpush.bf16.msra.mxu2 %v7478_v49  ;;  %5343 = vmatpush.bf16.msra.mxu3 %v7542_v47  ;;  %v8247_v49 = vld [vmem:[#allocation11 + $0x474] sm:$0xf]  ;;  %v7683_v47 = vld [vmem:[#allocation11 + $0x478] sm:$0xf0]  ;;  %v7502_v58 = vor.u32 %v8201_v57, %v7499_v25 }
 0x354   :  { %v7686_v34 = vor.u32 %v8247_v49, %v7683_v47 }
 0x356   :  { %5305 = vmatpush.bf16.msra.mxu0 %v7342_v7  ;;  %5318 = vmatpush.bf16.msra.mxu1 %v7406_v11  ;;  %v8229_v7 = vld [vmem:[#allocation11 + $0x3e4] sm:$0xf]  ;;  %v7611_v11 = vld [vmem:[#allocation11 + $0x3e8] sm:$0xf0] }
 0x357   :  { %5331 = vmatpush.bf16.msra.mxu2 %v7470_v53  ;;  %5344 = vmatpush.bf16.msra.mxu3 %v7534_v31  ;;  %v7614_v53 = vor.u32 %v8229_v7, %v7611_v11  ;;  %v7678_v31 = vor.u32 %v8245_v50, %v7675_v35 }
 0x35a   :  { %5306 = vmatpush.bf16.msra.mxu0 %v7334_v36  ;;  %5319 = vmatpush.bf16.msra.mxu1 %v7398_v39  ;;  %v8225_v36 = vld [vmem:[#allocation11 + $0x3c4] sm:$0xf]  ;;  %v7595_v39 = vld [vmem:[#allocation11 + $0x3c8] sm:$0xf0] }
 0x35b   :  { %5332 = vmatpush.bf16.msra.mxu2 %v7462_v22  ;;  %5345 = vmatpush.bf16.msra.mxu3 %v7526_v40  ;;  %v7662_v22 = vor.u32 %v8241_v20, %v7659_v55  ;;  %v7587_v40 = vld [vmem:[#allocation11 + $0x3b8] sm:$0xf0] }
 0x35e   :  { %5307 = vmatpush.bf16.msra.mxu0 %v7326_v62  ;;  %5320 = vmatpush.bf16.msra.mxu1 %v7390_v28  ;;  %v7582_v62 = vor.u32 %v8221_v13, %v7579_v61  ;;  %v7646_v28 = vor.u32 %v8237_v45, %v7643_v41 }
 0x35f   :  { %5333 = vmatpush.bf16.msra.mxu2 %v7454_v46  ;;  %5346 = vmatpush.bf16.msra.mxu3 %v7518_v32  ;;  %v8235_v46 = vld [vmem:[#allocation11 + $0x414] sm:$0xf]  ;;  %v7635_v32 = vld [vmem:[#allocation11 + $0x418] sm:$0xf0] }
 0x360   :  { %v7638_v38 = vor.u32 %v8235_v46, %v7635_v32 }
 0x362   :  { %5308 = vmatpush.bf16.msra.mxu0 %v7318_v18  ;;  %5321 = vmatpush.bf16.msra.mxu1 %v7382_v37  ;;  %v7566_v18 = vor.u32 %v8217_v8, %v7563_v21  ;;  %v7630_v37 = vor.u32 %v8233_v24, %v7627_v23 }
 0x363   :  { %5334 = vmatpush.bf16.msra.mxu2 %v7446_v52  ;;  %5347 = vmatpush.bf16.msra.mxu3 %v7510_v63  ;;  %v4395_v52 = vperm.slane %v4393_v26, 0 }
 0x366   :  { %5309 = vmatpush.bf16.msra.mxu0 %v7310_v27  ;;  %5322 = vmatpush.bf16.msra.mxu1 %v7374_v48 }
 0x367   :  { %5335 = vmatpush.bf16.msra.mxu2 %v7438_v6  ;;  %5348 = vmatpush.bf16.msra.mxu3 %v7502_v58 }
 0x369   :  { %5310 = vmatmul.bf16.vlgmr.msra.gmra.mxu0 %v9083_v43  ;;  %5323 = vmatmul.bf16.vlgmr.msra.gmra.mxu1 %v9088_v29  ;;  %v7598_v43 = vor.u32 %v8225_v36, %v7595_v39  ;;  %v8223_v29 = vld [vmem:[#allocation11 + $0x3b4] sm:$0xf] }
 0x36a   :  { %5354 = vmatpush.bf16.msrb.mxu0 %v7622_v60  ;;  %5367 = vmatpush.bf16.msrb.mxu1 %v7686_v34 }
 0x36b   :  { %5336 = vmatmul.bf16.vlgmr.msra.gmra.mxu2 %v9090_v1  ;;  %5349 = vmatmul.bf16.vlgmr.msra.gmra.mxu3 %v9094_v19  ;;  %v7590_v1 = vor.u32 %v8223_v29, %v7587_v40  ;;  %v7654_v19 = vor.u32 %v8239_v9, %v7651_v3 }
 0x36e   :  { %5355 = vmatpush.bf16.msrb.mxu0 %v7614_v53  ;;  %5368 = vmatpush.bf16.msrb.mxu1 %v7678_v31 }
 0x372   :  { %5356 = vmatpush.bf16.msrb.mxu0 %v7606_v5  ;;  %5369 = vmatpush.bf16.msrb.mxu1 %v7670_v10 }
 0x376   :  { %5357 = vmatpush.bf16.msrb.mxu0 %v7598_v43  ;;  %5370 = vmatpush.bf16.msrb.mxu1 %v7662_v22  ;;  %v4396_v43 = vperm.slane %v4393_v26, 1 }
 0x37a   :  { %5358 = vmatpush.bf16.msrb.mxu0 %v7590_v1  ;;  %5371 = vmatpush.bf16.msrb.mxu1 %v7654_v19 }
 0x37e   :  { %5359 = vmatpush.bf16.msrb.mxu0 %v7582_v62  ;;  %5372 = vmatpush.bf16.msrb.mxu1 %v7646_v28 }
 0x382   :  { %5360 = vmatpush.bf16.msrb.mxu0 %v7574_v16  ;;  %5373 = vmatpush.bf16.msrb.mxu1 %v7638_v38 }
 0x386   :  { %5361 = vmatpush.bf16.msrb.mxu0 %v7566_v18  ;;  %5374 = vmatpush.bf16.msrb.mxu1 %v7630_v37 }
 0x389   :  { %5362 = vmatmul.bf16.vlgmr.msrb.gmra.mxu0 %v9096_v56  ;;  %5375 = vmatmul.bf16.vlgmr.msrb.gmra.mxu1 %v9100_v54 }
 0x3a5   :  { %v5155_v59 = vpop.f32.mrf.mxu0  ;;  %v5168_v2 = vpop.f32.mrf.mxu1 }
 0x3a6   :  { %v5156_v57 = vadd.f32 %v5155_v59, %v4395_v52 }
 0x3a8   :  { %v5169_v25 = vadd.f32 %v5168_v2, %v5156_v57 }
 0x3ac   :  { %v5181_v63 = vpop.f32.mrf.mxu2  ;;  %v5194_v51 = vpop.f32.mrf.mxu3 }
 0x3ad   :  { %v5157_v17 = vpop.f32.mrf.mxu0  ;;  %v5170_v0 = vpop.f32.mrf.mxu1  ;;  %v5182_v27 = vadd.f32 %v5181_v63, %v5169_v25 }
 0x3af   :  { %v5195_v48 = vadd.f32 %v5194_v51, %v5182_v27 }
 0x3b4   :  { %v5183_v4 = vpop.f32.mrf.mxu2  ;;  %v5196_v12 = vpop.f32.mrf.mxu3 }
 0x3b5   :  { %v5207_v49 = vpop.f32.mrf.mxu0  ;;  %v5220_v47 = vpop.f32.mrf.mxu1 }
 0x3b6   :  { %v5208_v6 = vadd.f32 %v5207_v49, %v5195_v48 }
 0x3b8   :  { %v5221_v34 = vadd.f32 %v5220_v47, %v5208_v6 }
 0x3bc   :  { %v5233_v56 = vpop.f32.mrf.mxu2  ;;  %v5246_v58 = vpop.f32.mrf.mxu3 }
 0x3bd   :  { %v5209_v54 = vpop.f32.mrf.mxu0  ;;  %v5222_v60 = vpop.f32.mrf.mxu1  ;;  %v5234_v7 = vadd.f32 %v5233_v56, %v5221_v34 }
 0x3bf   :  { %v5247_v35 = vadd.f32 %v5246_v58, %v5234_v7 }
 0x3c4   :  { %v5235_v11 = vpop.f32.mrf.mxu2  ;;  %v5248_v50 = vpop.f32.mrf.mxu3 }
 0x3c6   :  { %v5259_v53 = vpop.f32.mrf.mxu0  ;;  %v5272_v31 = vpop.f32.mrf.mxu1 }
 0x3c7   :  { %v5260_v15 = vadd.f32 %v5259_v53, %v5247_v35  ;;  %v5273_v3 = vadd.f32 %v5272_v31, %v4396_v43 }
 0x3c9   :  { %v5380_v30 = vmax.f32 %v5260_v15, 0.0 }
 0x3cb   :  { %5383 = vrot.lane.b32.xlu0 %v5380_v30, %s8494_s25 }
 0x3ce   :  { %v5261_v5 = vpop.f32.mrf.mxu0  ;;  %v5274_v10 = vpop.f32.mrf.mxu1 }
 0x3cf   :  { %v5285_v42 = vpop.f32.mrf.mxu2  ;;  %v5298_v33 = vpop.f32.mrf.mxu3 }
 0x3d0   :  { %v5286_v1 = vadd.f32 %v5285_v42, %v5273_v3 }
 0x3d2   :  { %v5299_v61 = vadd.f32 %v5298_v33, %v5286_v1 }
 0x3d7   :  { %v5287_v36 = vpop.f32.mrf.mxu2  ;;  %v5300_v39 = vpop.f32.mrf.mxu3 }
 0x3e6   :  { %v5311_v20 = vpop.f32.mrf.mxu0  ;;  %v5324_v55 = vpop.f32.mrf.mxu1 }
 0x3e7   :  { %v5312_v45 = vadd.f32 %v5311_v20, %v5299_v61 }
 0x3e9   :  { %v5325_v41 = vadd.f32 %v5324_v55, %v5312_v45 }
 0x3ee   :  { %v5337_v22 = vpop.f32.mrf.mxu2  ;;  %v5350_v29 = vpop.f32.mrf.mxu3 }
 0x3ef   :  { %v5313_v40 = vpop.f32.mrf.mxu0  ;;  %v5326_v9 = vpop.f32.mrf.mxu1  ;;  %v5338_v62 = vadd.f32 %v5337_v22, %v5325_v41 }
 0x3f1   :  { %v5351_v28 = vadd.f32 %v5350_v29, %v5338_v62 }
 0x3f6   :  { %v5339_v19 = vpop.f32.mrf.mxu2  ;;  %v5352_v13 = vpop.f32.mrf.mxu3 }
 0x406   :  { %v5363_v44 = vpop.f32.mrf.mxu0  ;;  %v5376_v14 = vpop.f32.mrf.mxu1 }
 0x407   :  { %v5364_v46 = vadd.f32 %v5363_v44, %v5351_v28 }
 0x409   :  { %v5377_v32 = vadd.f32 %v5376_v14, %v5364_v46 }
 0x40b   :  { %v5381_v16 = vmax.f32 %v5377_v32, 0.0 }
 0x40d   :  { %5389 = vrot.lane.b32.xlu0 %v5381_v16, %s8494_s25 }
 0x40e   :  { %v5365_v38 = vpop.f32.mrf.mxu0  ;;  %v5378_v8 = vpop.f32.mrf.mxu1 }
 0x43d   :  { %v5384_v21 = vpop.permute.xlu0 %5383 }
 0x43e   :  { %v5386_v24 = vadd.f32 %v5384_v21, %v5380_v30 }
 0x440   :  { %v5387_v23 = vadd.f32 %v5386_v24, %v5381_v16 }
 0x47f   :  { %v5390_v18 = vpop.permute.xlu0 %5389 }
 0x480   :  { %v5392_v37 = vadd.f32 %v5390_v18, %v5387_v23 }
 0x482   :  { %v5394_v59 = vrot.slane %v5392_v37, 4  ;;  %v5397_v2 = vsel %vm5396_vm1, %v5392_v37, 0.0 }
 0x483   :  { %v5398_v26 = vrot.slane %v5397_v2, 4 }
 0x484   :  { %v5404_v52 = vsel %vm5396_vm1, %v5394_v59, 0.0 }
 0x485   :  { %v5399_v63 = vadd.f32 %v5398_v26, %v5397_v2  ;;  %v5405_v51 = vrot.slane %v5404_v52, 4 }
 0x487   :  { %v5400_v17 = vrot.slane %v5399_v63, 2  ;;  %v5406_v0 = vadd.f32 %v5405_v51, %v5404_v52 }
 0x489   :  { %v5401_v57 = vadd.f32 %v5400_v17, %v5399_v63  ;;  %v5407_v25 = vrot.slane %v5406_v0, 2 }
 0x48b   :  { %v5402_v4 = vrot.slane %v5401_v57, 1  ;;  %v5408_v12 = vadd.f32 %v5407_v25, %v5406_v0 }
 0x48d   :  { %v5403_v49 = vadd.f32 %v5402_v4, %v5401_v57  ;;  %v5409_v47 = vrot.slane %v5408_v12, 1 }
 0x48f   :  { %v5410_v27 = vadd.f32 %v5409_v47, %v5408_v12  ;;  %v5411_v48 = vmul.f32 0.0625, %v5403_v49 }
 0x491   :  { %v5412_v6 = vmul.f32 0.0625, %v5410_v27 }
 0x493   :  { %v5415_v56 = vsel %vm9135_vm4, %v5412_v6, %v5411_v48 }
 0x494   :  { %5418 = vst.msk [vmem:[#allocation14] sm:$0x3] %vm5417_vm3, %v5415_v56 }
 0x495   :  { %5429 = dma.vmem_to_hbm [thread:$0]  %s5425_s6, 32, %s5427_s17, [#allocation4]  }
 0x496   :  { %8482 = dma.done.wait [#allocation4], 32  }
 0x497   :  { %8483 = vsyncadd [#allocation4], 4294967264 }
 0x498   :  { %5434 = vsyncpa [#allocation3], 1 }
 0x499   :  { %5435 = vsyncpa [#allocation6], 1 }
 0x49a   :  { %5436 = vsyncpa [#allocation9], 1 }
 0x49b   :  { %5437 = vsyncpa [#allocation12], 1 }
 0x49c   :  { %5438 = vsyncpa [#allocation4], 1 }

</bundles_post_ra>
